<compile_context>
chip_gen: v5e
topology: v5e:2x2
jax: 0.10.0
libtpu: 0.0.40
codegen_flags: <defaults>
</compile_context>

<pallas_src>
import jax
import jax.numpy as jnp
from jax import lax
from jax.experimental import pallas as pl
from jax.experimental.pallas import tpu as pltpu

# ---------------------------------------------------------------------------
# Hyper-parameters fixed by the PyTorch module.
# ---------------------------------------------------------------------------
FEAT_DIM = 512            # backbone output / feat_dim
HIDDEN = 256              # action-branch hidden width
N_ACTION = 8              # action logits
PAD_N = 128               # lane-dense padding for the final projection
OUT_HW = 224              # F.interpolate target size
LN_EPS = 1e-5             # nn.LayerNorm default eps

# Row layout of the packed (16, 512) f32 vector table (one DMA).
VEC_ROWS = 16
(R_BB_B, R_LN_I_G, R_LN_I_B, R_B_I1, R_B_I2,
 R_LN_A_G, R_LN_A_B, R_B_A1, R_B_A2) = range(9)


# ---------------------------------------------------------------------------
# Resize-fusion weights: column means of the bilinear resize matrix.
# mean over the resized 224x224 plane == kh^T @ img @ kw  (exact algebra for
# align_corners=False, half-pixel centers).
# ---------------------------------------------------------------------------
def _resize_mean_weights(out_size, in_size):
    dst = jnp.arange(out_size, dtype=jnp.float32)
    src = jnp.clip((dst + 0.5) * (in_size / out_size) - 0.5, 0.0, in_size - 1.0)
    i0 = jnp.floor(src).astype(jnp.int32)
    i1 = jnp.minimum(i0 + 1, in_size - 1)
    w1 = src - i0.astype(jnp.float32)
    acc = jnp.zeros((in_size,), jnp.float32)
    acc = acc.at[i0].add(1.0 - w1).at[i1].add(w1)
    return acc / out_size                           # (in_size,), sums to 1


# ---------------------------------------------------------------------------
# The single fused kernel.
#   Grid axis 0 tiles the backbone reduction dim K = C*T*H*W ("arbitrary").
#   acc_ref : (B*V, 512) f32 VMEM scratch — backbone features accumulator.
#   On the last step: bias, view-mean pooling, inter trunk, action head.
# TODO(synk): the frozen pretrained MViT-v2-S video backbone has no clean
# Pallas equivalent; it is replaced by a deterministic stand-in (mean over the
# resized pixels per (c,t) plane -> Linear 512), with the bilinear resize
# folded into the projection weight.  The algebraic fold is exact only because
# this stand-in is linear in the pixels.
# ---------------------------------------------------------------------------
def _fused_forward_kernel(x_ref, w_ref, avg_ref, vec_ref, wbig_ref, wa2_ref,
                          out_ref, acc_ref):
    k = pl.program_id(0)

    @pl.when(k == 0)
    def _():
        acc_ref[...] = jnp.zeros_like(acc_ref)

    # Resize + backbone stand-in: K-tiled bf16 matmul, f32 accumulation.
    acc_ref[...] += jnp.dot(x_ref[...].astype(jnp.bfloat16), w_ref[...],
                            preferred_element_type=jnp.float32)

    @pl.when(k == pl.num_programs(0) - 1)
    def _():
        def layer_norm(u, g, b):
            mu = jnp.mean(u, axis=-1, keepdims=True)
            var = jnp.mean((u - mu) * (u - mu), axis=-1, keepdims=True)
            return (u - mu) * lax.rsqrt(var + LN_EPS) * g + b

        def dense(u, w_slice, bias, relu=True):
            y = (jnp.dot(u.astype(jnp.bfloat16), w_slice,
                         preferred_element_type=jnp.float32) + bias)
            return jnp.maximum(y, 0.0) if relu else y

        feats = acc_ref[...] + vec_ref[R_BB_B:R_BB_B + 1, :]          # (B*V, 512)

        # ViewAvgAggregate('mean'): pooled_view = mean over views, expressed as
        # an MXU matmul with a precomputed (B, B*V) averaging matrix.
        pooled = jnp.dot(avg_ref[...], feats,
                         preferred_element_type=jnp.float32)          # (B, 512)

        # inter trunk: LN -> Linear -> ReLU -> Linear -> ReLU
        h = layer_norm(pooled, vec_ref[R_LN_I_G:R_LN_I_G + 1, :],
                       vec_ref[R_LN_I_B:R_LN_I_B + 1, :])
        h = dense(h, wbig_ref[:, 0:FEAT_DIM], vec_ref[R_B_I1:R_B_I1 + 1, :])
        h = dense(h, wbig_ref[:, FEAT_DIM:2 * FEAT_DIM],
                  vec_ref[R_B_I2:R_B_I2 + 1, :])

        # action branch: LN -> Linear(512,256) -> ReLU -> Dropout(eval=id)
        #                 -> Linear(256,8) (padded to 128 output lanes)
        a = layer_norm(h, vec_ref[R_LN_A_G:R_LN_A_G + 1, :],
                       vec_ref[R_LN_A_B:R_LN_A_B + 1, :])
        a = dense(a, wbig_ref[:, 2 * FEAT_DIM:2 * FEAT_DIM + HIDDEN],
                  vec_ref[R_B_A1:R_B_A1 + 1, :HIDDEN])
        out_ref[...] = dense(a, wa2_ref[...],
                             vec_ref[R_B_A2:R_B_A2 + 1, :PAD_N], relu=False)


def _choose_tile_k(k):
    """Largest power-of-two multiple of 128 dividing K (capped), else full K."""
    if k % 128 != 0:
        return k                      # full-dim block satisfies the constraint
    for cand in (2048, 1024, 512, 256, 128):
        if k % cand == 0:
            return cand
    return k


# ---------------------------------------------------------------------------
# Full forward pass (plain-JAX glue is just the input reshape + logits slice).
# ---------------------------------------------------------------------------
def simple_action_forward(x, params):
    b, v, c, t, h, w = x.shape
    bv = b * v
    k = c * t * h * w
    # The PyTorch reshape to (B*V*T, C, H, W) + interpolate + reshape back is a
    # per-(H, W)-plane resize in the original (B, V, C, T) ordering; its pixel
    # mean is folded into params["fused_bb_w"] at prepare time.
    x_flat = x.reshape(bv, k)                 # native dtype; cast in-kernel

    tile_k = _choose_tile_k(k)
    nk = k // tile_k

    avg = params["avg_mat"]
    vecs = params["vecs"]
    wbig = params["w_big"]
    wa2 = params["w_a2p"]

    logits_padded = pl.pallas_call(
        _fused_forward_kernel,
        out_shape=jax.ShapeDtypeStruct((b, PAD_N), jnp.float32),
        grid=(nk,),
        in_specs=[
            pl.BlockSpec((bv, tile_k), lambda i: (0, i)),          # x K-tile
            pl.BlockSpec((tile_k, FEAT_DIM), lambda i: (i, 0)),    # fused weight K-tile
            pl.BlockSpec(avg.shape, lambda i: (0, 0)),             # (B, B*V) avg matrix
            pl.BlockSpec(vecs.shape, lambda i: (0, 0)),            # packed vectors
            pl.BlockSpec(wbig.shape, lambda i: (0, 0)),            # w_i1|w_i2|w_a1
            pl.BlockSpec(wa2.shape, lambda i: (0, 0)),             # padded final proj
        ],
        out_specs=pl.BlockSpec((b, PAD_N), lambda i: (0, 0)),
        scratch_shapes=[pltpu.VMEM((bv, FEAT_DIM), jnp.float32)],
        compiler_params=pltpu.CompilerParams(
            dimension_semantics=("arbitrary",),
            vmem_limit_bytes=32 * 1024 * 1024),
    )(x_flat, params["fused_bb_w"], avg, vecs, wbig, wa2)

    return logits_padded[:, :N_ACTION]                             # (B, 8)


# ---------------------------------------------------------------------------
# Parameter initialization (deterministic, synthetic) + one-time prepare step.
# ---------------------------------------------------------------------------
def init_params(key, c, t):
    ks = iter(jax.random.split(key, 16))

    def w(shape, fan_in):
        return (jax.random.normal(next(ks), shape, jnp.float32)
                / jnp.sqrt(jnp.float32(fan_in)))

    zeros = lambda s: jnp.zeros(s, jnp.float32)
    ones = lambda s: jnp.ones(s, jnp.float32)

    return {
        # backbone stand-in: (mean over resized pixels per (c,t) plane) -> Linear 512
        "bb_w": w((c * t, FEAT_DIM), c * t), "bb_b": zeros((FEAT_DIM,)),
        # inter trunk
        "ln_i_g": ones((FEAT_DIM,)), "ln_i_b": zeros((FEAT_DIM,)),
        "w_i1": w((FEAT_DIM, FEAT_DIM), FEAT_DIM), "b_i1": zeros((FEAT_DIM,)),
        "w_i2": w((FEAT_DIM, FEAT_DIM), FEAT_DIM), "b_i2": zeros((FEAT_DIM,)),
        # action branch
        "ln_a_g": ones((FEAT_DIM,)), "ln_a_b": zeros((FEAT_DIM,)),
        "w_a1": w((FEAT_DIM, HIDDEN), FEAT_DIM), "b_a1": zeros((HIDDEN,)),
        "w_a2": w((HIDDEN, N_ACTION), HIDDEN), "b_a2": zeros((N_ACTION,)),
    }


def prepare_model(params, b, v, h, w):
    """One-time packing: fold the bilinear-resize mean into the backbone weight,
    cast all matmul weights to bf16, pack small vectors, build the view-average
    matrix.  Runs once, outside the jitted forward."""
    kh = _resize_mean_weights(OUT_HW, h)                  # (H,)
    kw = _resize_mean_weights(OUT_HW, w)                  # (W,)
    k2d = (kh[:, None] * kw[None, :]).reshape(1, h * w, 1)
    ct = params["bb_w"].shape[0]
    fused = (k2d * params["bb_w"][:, None, :]).reshape(ct * h * w, FEAT_DIM)

    vecs = jnp.zeros((VEC_ROWS, FEAT_DIM), jnp.float32)
    vecs = vecs.at[R_BB_B].set(params["bb_b"])
    vecs = vecs.at[R_LN_I_G].set(params["ln_i_g"])
    vecs = vecs.at[R_LN_I_B].set(params["ln_i_b"])
    vecs = vecs.at[R_B_I1].set(params["b_i1"])
    vecs = vecs.at[R_B_I2].set(params["b_i2"])
    vecs = vecs.at[R_LN_A_G].set(params["ln_a_g"])
    vecs = vecs.at[R_LN_A_B].set(params["ln_a_b"])
    vecs = vecs.at[R_B_A1, :HIDDEN].set(params["b_a1"])
    vecs = vecs.at[R_B_A2, :N_ACTION].set(params["b_a2"])

    w_big = jnp.concatenate([params["w_i1"], params["w_i2"], params["w_a1"]],
                            axis=1)                       # (512, 1280)
    w_a2p = jnp.pad(params["w_a2"], ((0, 0), (0, PAD_N - N_ACTION)))

    # ViewAvgAggregate('mean'): rows of the backbone output are ordered
    # (batch-major, views contiguous), so the averaging matrix is
    # repeat(eye(B), V, axis=1) / V.
    avg_mat = jnp.repeat(jnp.eye(b, dtype=jnp.float32), v, axis=1) / float(v)

    return {
        "fused_bb_w": fused.astype(jnp.bfloat16),
        "w_big": w_big.astype(jnp.bfloat16),
        "w_a2p": w_a2p.astype(jnp.bfloat16),
        "vecs": vecs,                                     # f32 (LN/bias precision)
        "avg_mat": avg_mat,                               # f32, tiny
    }


if __name__ == "__main__":
    B, V, C, T, H, W = 2, 2, 3, 4, 16, 16
    key = jax.random.PRNGKey(0)
    kx, kp = jax.random.split(key)
    x = jax.random.normal(kx, (B, V, C, T, H, W), jnp.float32)

    params = prepare_model(init_params(kp, C, T), B, V, H, W)

    action_logits = jax.jit(simple_action_forward)(x, params)
    jax.block_until_ready(action_logits)

    assert action_logits.shape == (B, N_ACTION), action_logits.shape
    assert bool(jnp.all(jnp.isfinite(action_logits)))
    print("KERNEL_OK")
</pallas_src>

<mosaic_0001>
module attributes {stable_mosaic.version = 11 : i64} {
  func.func @_fused_forward_kernel(%arg0: i32, %arg1: memref<4x1024xf32, #tpu.memory_space<vmem>>, %arg2: memref<1024x512xbf16, #tpu.memory_space<vmem>>, %arg3: memref<2x4xf32, #tpu.memory_space<vmem>>, %arg4: memref<16x512xf32, #tpu.memory_space<vmem>>, %arg5: memref<512x1280xbf16, #tpu.memory_space<vmem>>, %arg6: memref<256x128xbf16, #tpu.memory_space<vmem>>, %arg7: memref<2x128xf32, #tpu.memory_space<vmem>>, %arg8: memref<4x512xf32, #tpu.memory_space<vmem>>) attributes {dimension_semantics = [#tpu.dimension_semantics<arbitrary>], iteration_bounds = array<i64: 3>, scalar_prefetch = 0 : i64, scratch_operands = 1 : i64, tpu.core_type = #tpu.core_type<tc>, window_params = [{transform_indices = @transform_0, window_bounds = array<i64: 4, 1024>}, {transform_indices = @transform_1, window_bounds = array<i64: 1024, 512>}, {pipeline_mode = #tpu.pipeline_mode<synchronous>, transform_indices = @transform_2, window_bounds = array<i64: 2, 4>}, {pipeline_mode = #tpu.pipeline_mode<synchronous>, transform_indices = @transform_3, window_bounds = array<i64: 16, 512>}, {pipeline_mode = #tpu.pipeline_mode<synchronous>, transform_indices = @transform_4, window_bounds = array<i64: 512, 1280>}, {pipeline_mode = #tpu.pipeline_mode<synchronous>, transform_indices = @transform_5, window_bounds = array<i64: 256, 128>}, {pipeline_mode = #tpu.pipeline_mode<synchronous>, transform_indices = @transform_6, window_bounds = array<i64: 2, 128>}]} {
    %c0_i32 = arith.constant 0 : i32
    %0 = arith.cmpi eq, %arg0, %c0_i32 : i32
    %1 = arith.extui %0 : i1 to i32
    %c0_i32_0 = arith.constant 0 : i32
    %2 = arith.cmpi ne, %1, %c0_i32_0 : i32
    scf.if %2 {
      %cst_9 = arith.constant 0.000000e+00 : f32
      %13 = vector.broadcast %cst_9 : f32 to vector<4x512xf32>
      %c0_10 = arith.constant 0 : index
      %c0_11 = arith.constant 0 : index
      %14 = vector.load %arg8[%c0_10, %c0_11] : memref<4x512xf32, #tpu.memory_space<vmem>>, vector<4x512xf32>
      tpu.vector_store %arg8[%c0_10, %c0_11], %13 {strides = array<i32>} : memref<4x512xf32, #tpu.memory_space<vmem>>, vector<4x512xf32>,
    } else {
    }
    %c0 = arith.constant 0 : index
    %c0_1 = arith.constant 0 : index
    %3 = vector.load %arg8[%c0, %c0_1] : memref<4x512xf32, #tpu.memory_space<vmem>>, vector<4x512xf32>
    %c0_2 = arith.constant 0 : index
    %c0_3 = arith.constant 0 : index
    %4 = vector.load %arg1[%c0_2, %c0_3] : memref<4x1024xf32, #tpu.memory_space<vmem>>, vector<4x1024xf32>
    %5 = arith.truncf %4 : vector<4x1024xf32> to vector<4x1024xbf16>
    %c0_4 = arith.constant 0 : index
    %c0_5 = arith.constant 0 : index
    %6 = vector.load %arg2[%c0_4, %c0_5] : memref<1024x512xbf16, #tpu.memory_space<vmem>>, vector<1024x512xbf16>
    %cst = arith.constant dense<0.000000e+00> : vector<4x512xf32>
    %7 = tpu.matmul %5, %6, %cst {dimension_numbers = #tpu.dot_dimension_numbers<[1], [0], [0], [1], [0, 0, 1, 1], [], []>} : vector<4x1024xbf16>, vector<1024x512xbf16>, vector<4x512xf32> -> vector<4x512xf32>
    %8 = arith.addf %3, %7 : vector<4x512xf32>
    %c0_6 = arith.constant 0 : index
    %c0_7 = arith.constant 0 : index
    %9 = vector.load %arg8[%c0_6, %c0_7] : memref<4x512xf32, #tpu.memory_space<vmem>>, vector<4x512xf32>
    tpu.vector_store %arg8[%c0_6, %c0_7], %8 {strides = array<i32>} : memref<4x512xf32, #tpu.memory_space<vmem>>, vector<4x512xf32>,
    %c2_i32 = arith.constant 2 : i32
    %10 = arith.cmpi eq, %arg0, %c2_i32 : i32
    %11 = arith.extui %10 : i1 to i32
    %c0_i32_8 = arith.constant 0 : i32
    %12 = arith.cmpi ne, %11, %c0_i32_8 : i32
    scf.if %12 {
      %c0_9 = arith.constant 0 : index
      %c0_10 = arith.constant 0 : index
      %13 = vector.load %arg8[%c0_9, %c0_10] : memref<4x512xf32, #tpu.memory_space<vmem>>, vector<4x512xf32>
      %c0_11 = arith.constant 0 : index
      %c0_12 = arith.constant 0 : index
      %14 = vector.load %arg4[%c0_11, %c0_12] : memref<16x512xf32, #tpu.memory_space<vmem>>, vector<1x512xf32>
      %15 = vector.broadcast %14 : vector<1x512xf32> to vector<4x512xf32>
      %16 = arith.addf %13, %15 : vector<4x512xf32>
      %c0_13 = arith.constant 0 : index
      %c0_14 = arith.constant 0 : index
      %17 = vector.load %arg3[%c0_13, %c0_14] : memref<2x4xf32, #tpu.memory_space<vmem>>, vector<2x4xf32>
      %cst_15 = arith.constant dense<0.000000e+00> : vector<2x512xf32>
      %18 = tpu.matmul %17, %16, %cst_15 {dimension_numbers = #tpu.dot_dimension_numbers<[1], [0], [0], [1], [0, 0, 1, 1], [], []>} : vector<2x4xf32>, vector<4x512xf32>, vector<2x512xf32> -> vector<2x512xf32>
      %c1 = arith.constant 1 : index
      %c0_16 = arith.constant 0 : index
      %19 = vector.load %arg4[%c1, %c0_16] : memref<16x512xf32, #tpu.memory_space<vmem>>, vector<1x512xf32>
      %c2 = arith.constant 2 : index
      %c0_17 = arith.constant 0 : index
      %20 = vector.load %arg4[%c2, %c0_17] : memref<16x512xf32, #tpu.memory_space<vmem>>, vector<1x512xf32>
      %cst_18 = arith.constant dense<0.000000e+00> : vector<2xf32>
      %21 = vector.multi_reduction <add>, %18, %cst_18 [1] : vector<2x512xf32> to vector<2xf32>
      %22 = vector.shape_cast %21 : vector<2xf32> to vector<2x1xf32>
      %cst_19 = arith.constant 5.120000e+02 : f32
      %23 = vector.broadcast %cst_19 : f32 to vector<2x1xf32>
      %24 = arith.divf %22, %23 : vector<2x1xf32>
      %25 = vector.broadcast %24 : vector<2x1xf32> to vector<2x512xf32>
      %26 = arith.subf %18, %25 : vector<2x512xf32>
      %27 = vector.broadcast %24 : vector<2x1xf32> to vector<2x512xf32>
      %28 = arith.subf %18, %27 : vector<2x512xf32>
      %29 = arith.mulf %26, %28 : vector<2x512xf32>
      %cst_20 = arith.constant dense<0.000000e+00> : vector<2xf32>
      %30 = vector.multi_reduction <add>, %29, %cst_20 [1] : vector<2x512xf32> to vector<2xf32>
      %31 = vector.shape_cast %30 : vector<2xf32> to vector<2x1xf32>
      %cst_21 = arith.constant 5.120000e+02 : f32
      %32 = vector.broadcast %cst_21 : f32 to vector<2x1xf32>
      %33 = arith.divf %31, %32 : vector<2x1xf32>
      %34 = vector.broadcast %24 : vector<2x1xf32> to vector<2x512xf32>
      %35 = arith.subf %18, %34 : vector<2x512xf32>
      %cst_22 = arith.constant 9.99999974E-6 : f32
      %36 = vector.broadcast %cst_22 : f32 to vector<2x1xf32>
      %37 = arith.addf %33, %36 : vector<2x1xf32>
      %38 = math.rsqrt %37 : vector<2x1xf32>
      %39 = vector.broadcast %38 : vector<2x1xf32> to vector<2x512xf32>
      %40 = arith.mulf %35, %39 : vector<2x512xf32>
      %41 = vector.broadcast %19 : vector<1x512xf32> to vector<2x512xf32>
      %42 = arith.mulf %40, %41 : vector<2x512xf32>
      %43 = vector.broadcast %20 : vector<1x512xf32> to vector<2x512xf32>
      %44 = arith.addf %42, %43 : vector<2x512xf32>
      %c0_23 = arith.constant 0 : index
      %c0_24 = arith.constant 0 : index
      %45 = vector.load %arg5[%c0_23, %c0_24] : memref<512x1280xbf16, #tpu.memory_space<vmem>>, vector<512x512xbf16>
      %c3 = arith.constant 3 : index
      %c0_25 = arith.constant 0 : index
      %46 = vector.load %arg4[%c3, %c0_25] : memref<16x512xf32, #tpu.memory_space<vmem>>, vector<1x512xf32>
      %47 = arith.truncf %44 : vector<2x512xf32> to vector<2x512xbf16>
      %cst_26 = arith.constant dense<0.000000e+00> : vector<2x512xf32>
      %48 = tpu.matmul %47, %45, %cst_26 {dimension_numbers = #tpu.dot_dimension_numbers<[1], [0], [0], [1], [0, 0, 1, 1], [], []>} : vector<2x512xbf16>, vector<512x512xbf16>, vector<2x512xf32> -> vector<2x512xf32>
      %49 = vector.broadcast %46 : vector<1x512xf32> to vector<2x512xf32>
      %50 = arith.addf %48, %49 : vector<2x512xf32>
      %cst_27 = arith.constant 0.000000e+00 : f32
      %51 = vector.broadcast %cst_27 : f32 to vector<2x512xf32>
      %52 = arith.maximumf %50, %51 : vector<2x512xf32>
      %c0_28 = arith.constant 0 : index
      %c512 = arith.constant 512 : index
      %53 = vector.load %arg5[%c0_28, %c512] : memref<512x1280xbf16, #tpu.memory_space<vmem>>, vector<512x512xbf16>
      %c4 = arith.constant 4 : index
      %c0_29 = arith.constant 0 : index
      %54 = vector.load %arg4[%c4, %c0_29] : memref<16x512xf32, #tpu.memory_space<vmem>>, vector<1x512xf32>
      %55 = arith.truncf %52 : vector<2x512xf32> to vector<2x512xbf16>
      %cst_30 = arith.constant dense<0.000000e+00> : vector<2x512xf32>
      %56 = tpu.matmul %55, %53, %cst_30 {dimension_numbers = #tpu.dot_dimension_numbers<[1], [0], [0], [1], [0, 0, 1, 1], [], []>} : vector<2x512xbf16>, vector<512x512xbf16>, vector<2x512xf32> -> vector<2x512xf32>
      %57 = vector.broadcast %54 : vector<1x512xf32> to vector<2x512xf32>
      %58 = arith.addf %56, %57 : vector<2x512xf32>
      %cst_31 = arith.constant 0.000000e+00 : f32
      %59 = vector.broadcast %cst_31 : f32 to vector<2x512xf32>
      %60 = arith.maximumf %58, %59 : vector<2x512xf32>
      %c5 = arith.constant 5 : index
      %c0_32 = arith.constant 0 : index
      %61 = vector.load %arg4[%c5, %c0_32] : memref<16x512xf32, #tpu.memory_space<vmem>>, vector<1x512xf32>
      %c6 = arith.constant 6 : index
      %c0_33 = arith.constant 0 : index
      %62 = vector.load %arg4[%c6, %c0_33] : memref<16x512xf32, #tpu.memory_space<vmem>>, vector<1x512xf32>
      %cst_34 = arith.constant dense<0.000000e+00> : vector<2xf32>
      %63 = vector.multi_reduction <add>, %60, %cst_34 [1] : vector<2x512xf32> to vector<2xf32>
      %64 = vector.shape_cast %63 : vector<2xf32> to vector<2x1xf32>
      %cst_35 = arith.constant 5.120000e+02 : f32
      %65 = vector.broadcast %cst_35 : f32 to vector<2x1xf32>
      %66 = arith.divf %64, %65 : vector<2x1xf32>
      %67 = vector.broadcast %66 : vector<2x1xf32> to vector<2x512xf32>
      %68 = arith.subf %60, %67 : vector<2x512xf32>
      %69 = vector.broadcast %66 : vector<2x1xf32> to vector<2x512xf32>
      %70 = arith.subf %60, %69 : vector<2x512xf32>
      %71 = arith.mulf %68, %70 : vector<2x512xf32>
      %cst_36 = arith.constant dense<0.000000e+00> : vector<2xf32>
      %72 = vector.multi_reduction <add>, %71, %cst_36 [1] : vector<2x512xf32> to vector<2xf32>
      %73 = vector.shape_cast %72 : vector<2xf32> to vector<2x1xf32>
      %cst_37 = arith.constant 5.120000e+02 : f32
      %74 = vector.broadcast %cst_37 : f32 to vector<2x1xf32>
      %75 = arith.divf %73, %74 : vector<2x1xf32>
      %76 = vector.broadcast %66 : vector<2x1xf32> to vector<2x512xf32>
      %77 = arith.subf %60, %76 : vector<2x512xf32>
      %cst_38 = arith.constant 9.99999974E-6 : f32
      %78 = vector.broadcast %cst_38 : f32 to vector<2x1xf32>
      %79 = arith.addf %75, %78 : vector<2x1xf32>
      %80 = math.rsqrt %79 : vector<2x1xf32>
      %81 = vector.broadcast %80 : vector<2x1xf32> to vector<2x512xf32>
      %82 = arith.mulf %77, %81 : vector<2x512xf32>
      %83 = vector.broadcast %61 : vector<1x512xf32> to vector<2x512xf32>
      %84 = arith.mulf %82, %83 : vector<2x512xf32>
      %85 = vector.broadcast %62 : vector<1x512xf32> to vector<2x512xf32>
      %86 = arith.addf %84, %85 : vector<2x512xf32>
      %c0_39 = arith.constant 0 : index
      %c1024 = arith.constant 1024 : index
      %87 = vector.load %arg5[%c0_39, %c1024] : memref<512x1280xbf16, #tpu.memory_space<vmem>>, vector<512x256xbf16>
      %c7 = arith.constant 7 : index
      %c0_40 = arith.constant 0 : index
      %88 = vector.load %arg4[%c7, %c0_40] : memref<16x512xf32, #tpu.memory_space<vmem>>, vector<1x256xf32>
      %89 = arith.truncf %86 : vector<2x512xf32> to vector<2x512xbf16>
      %cst_41 = arith.constant dense<0.000000e+00> : vector<2x256xf32>
      %90 = tpu.matmul %89, %87, %cst_41 {dimension_numbers = #tpu.dot_dimension_numbers<[1], [0], [0], [1], [0, 0, 1, 1], [], []>} : vector<2x512xbf16>, vector<512x256xbf16>, vector<2x256xf32> -> vector<2x256xf32>
      %91 = vector.broadcast %88 : vector<1x256xf32> to vector<2x256xf32>
      %92 = arith.addf %90, %91 : vector<2x256xf32>
      %cst_42 = arith.constant 0.000000e+00 : f32
      %93 = vector.broadcast %cst_42 : f32 to vector<2x256xf32>
      %94 = arith.maximumf %92, %93 : vector<2x256xf32>
      %c0_43 = arith.constant 0 : index
      %c0_44 = arith.constant 0 : index
      %95 = vector.load %arg6[%c0_43, %c0_44] : memref<256x128xbf16, #tpu.memory_space<vmem>>, vector<256x128xbf16>
      %c8 = arith.constant 8 : index
      %c0_45 = arith.constant 0 : index
      %96 = vector.load %arg4[%c8, %c0_45] : memref<16x512xf32, #tpu.memory_space<vmem>>, vector<1x128xf32>
      %97 = arith.truncf %94 : vector<2x256xf32> to vector<2x256xbf16>
      %cst_46 = arith.constant dense<0.000000e+00> : vector<2x128xf32>
      %98 = tpu.matmul %97, %95, %cst_46 {dimension_numbers = #tpu.dot_dimension_numbers<[1], [0], [0], [1], [0, 0, 1, 1], [], []>} : vector<2x256xbf16>, vector<256x128xbf16>, vector<2x128xf32> -> vector<2x128xf32>
      %99 = vector.broadcast %96 : vector<1x128xf32> to vector<2x128xf32>
      %100 = arith.addf %98, %99 : vector<2x128xf32>
      %c0_47 = arith.constant 0 : index
      %c0_48 = arith.constant 0 : index
      %101 = vector.load %arg7[%c0_47, %c0_48] : memref<2x128xf32, #tpu.memory_space<vmem>>, vector<2x128xf32>
      tpu.vector_store %arg7[%c0_47, %c0_48], %100 {strides = array<i32>} : memref<2x128xf32, #tpu.memory_space<vmem>>, vector<2x128xf32>,
    } else {
    }
    return
  }
  func.func @transform_0(%arg0: i32) -> (i32, i32) {
    %c0_i32 = arith.constant 0 : i32
    %c0_i32_0 = arith.constant 0 : i32
    return %c0_i32, %arg0 : i32, i32
  }
  func.func @transform_1(%arg0: i32) -> (i32, i32) {
    %c0_i32 = arith.constant 0 : i32
    %c0_i32_0 = arith.constant 0 : i32
    return %arg0, %c0_i32 : i32, i32
  }
  func.func @transform_2(%arg0: i32) -> (i32, i32) {
    %c0_i32 = arith.constant 0 : i32
    %c0_i32_0 = arith.constant 0 : i32
    %c0_i32_1 = arith.constant 0 : i32
    return %c0_i32, %c0_i32_0 : i32, i32
  }
  func.func @transform_3(%arg0: i32) -> (i32, i32) {
    %c0_i32 = arith.constant 0 : i32
    %c0_i32_0 = arith.constant 0 : i32
    %c0_i32_1 = arith.constant 0 : i32
    return %c0_i32, %c0_i32_0 : i32, i32
  }
  func.func @transform_4(%arg0: i32) -> (i32, i32) {
    %c0_i32 = arith.constant 0 : i32
    %c0_i32_0 = arith.constant 0 : i32
    %c0_i32_1 = arith.constant 0 : i32
    return %c0_i32, %c0_i32_0 : i32, i32
  }
  func.func @transform_5(%arg0: i32) -> (i32, i32) {
    %c0_i32 = arith.constant 0 : i32
    %c0_i32_0 = arith.constant 0 : i32
    %c0_i32_1 = arith.constant 0 : i32
    return %c0_i32, %c0_i32_0 : i32, i32
  }
  func.func @transform_6(%arg0: i32) -> (i32, i32) {
    %c0_i32 = arith.constant 0 : i32
    %c0_i32_0 = arith.constant 0 : i32
    %c0_i32_1 = arith.constant 0 : i32
    return %c0_i32, %c0_i32_0 : i32, i32
  }
}

</mosaic_0001>

<bundles_post_ra>
// kernel: simple_action_forward.1
= control target key start
LH: loop header
LB: loop body
LE: loop exit
PB: predicated region body
PF: predicated region fallthrough
CT: control target
= control target key end

     0   :  { %11 = vsyncpa [#allocation4], 0  ;;  %s9666_s0 = inlined_call_operand.vmem [shape: f32[4,3072], index: 0, kind: input, shape index: {}]   ;;  %s9667_s1 = inlined_call_operand.hbm [shape: bf16[3072,512], index: 1, kind: input, shape index: {}]   ;;  %s9668_s2 = inlined_call_operand.hbm [shape: f32[2,4], index: 2, kind: input, shape index: {}]   ;;  %s9669_s3 = inlined_call_operand.hbm [shape: f32[16,512], index: 3, kind: input, shape index: {}]   ;;  %s9670_s4 = inlined_call_operand.hbm [shape: bf16[512,1280], index: 4, kind: input, shape index: {}]   ;;  %s9671_s5 = inlined_call_operand.hbm [shape: bf16[256,128], index: 5, kind: input, shape index: {}]   ;;  %s9672_s6 = inlined_call_operand.hbm [shape: f32[2,128], index: 6, kind: output, shape index: {}]  }
   0x1   :  { %13 = vsyncpa [#allocation4 + $0x1], 0 }
   0x2   :  { %14 = vsyncpa [#allocation7], 0 }
   0x3   :  { %15 = vsyncpa [#allocation10], 0 }
   0x4   :  { %16 = vsyncpa [#allocation5], 0  ;;  %s8770_s21 = smov 0   ;;  %s8772_s22 = smov 0  }
   0x5   :  { %s8774_s23 = smov 0   ;;  %s8776_s24 = smov 0  }
   0x6 LB: > { %s8789_s25 = sadd.s32 4294967295, %s8718_s24   ;;  %p68_p0 = scmp.ne.s32.totalorder %s8710_s22, %s8706_s21  ;;  %s8718_s24 = sphi %s8776_s24, %s9680_s24   ;;  %s8714_s23 = sphi %s8774_s23, %s9679_s23   ;;  %s8710_s22 = sphi %s8772_s22, %s9678_s22   ;;  %s8706_s21 = sphi %s8770_s21, %s9677_s21  }
   0x7   : > { %p69_p1 = scmp.eq.s32.totalorder %s8789_s25, 0  ;;  %p5397_p2 = scmp.ge.s32.totalorder %s8718_s24, 1 }
   0x8   : > { %p184_p3 = scmp.lt.s32.totalorder %s8718_s24, 4  ;;  %p5398_p4 = scmp.ne.s32.totalorder %s8789_s25, 0 }
   0x9   : > { %p8798_p5 = por %p69_p1, %p68_p0  ;;  %s196_s29 = sshll.u32 %s9668_s2, 4  ;;  %s197_s29 = int_to_ptr.hbm [resolvable:$true] %s196_s29 }
   0xa   : > { %p8805_p6 = pnand %p5397_p2, %p184_p3  ;;  %s8720_s7 = smov [#allocation6]  }
   0xb   : > { %s198_s8 = sshll.u32 %s8720_s7, 4  ;;  %s221_s11 = sshll.u32 %s9670_s4, 4  ;;  %s199_s8 = int_to_ptr.vmem [resolvable:$true] %s198_s8  ;;  %s222_s11 = int_to_ptr.hbm [resolvable:$true] %s221_s11 }
   0xc   : > { %p8413_p7 = pneg %p8805_p6  ;;  %s8721_s13 = smov [#allocation9]  }
   0xd   : > { %s223_s14 = sshll.u32 %s8721_s13, 4  ;;  %s8722_s15 = smov 640   ;;  %s224_s14 = int_to_ptr.vmem [resolvable:$true] %s223_s14 }
   0xe   : > { %p8816_p8 = pnand %p8413_p7, %p69_p1  ;;  %s8723_s16 = smov 40  }
   0xf   : > { %s207_s19 = sshll.u32 %s9669_s3, 4  ;;  %s8724_s20 = smov [#allocation8]   ;;  %s208_s19 = int_to_ptr.hbm [resolvable:$true] %s207_s19 }
  0x10   : > { %8416 = dma.hbm_to_vmem [thread:$0]  (!%p8816_p8), %s197_s29, 32, %s199_s8, [#allocation7]  }
  0x11   : > { %8422 = dma.hbm_to_vmem [thread:$0]  (!%p8816_p8), %s222_s11, 40960, %s224_s14, [#allocation10], %s8722_s15, %s8722_s15, %s8723_s16  }
  0x12   : > { %s209_s21 = sshll.u32 %s8724_s20, 4  ;;  %s235_s29 = sshll.u32 %s9671_s5, 4  ;;  %s210_s21 = int_to_ptr.vmem [resolvable:$true] %s209_s21  ;;  %s236_s29 = int_to_ptr.hbm [resolvable:$true] %s235_s29 }
  0x13   : > { %s8725_s7 = smov 512   ;;  %s8726_s8 = smov 32  }
  0x14   : > { %8419 = dma.hbm_to_vmem [thread:$0]  (!%p8816_p8), %s208_s19, 1024, %s210_s21, [#allocation7], %s8725_s7, %s8725_s7, %s8726_s8  }
  0x15   : > { %s8727_s9 = smov [#allocation11]   ;;  %s8728_s11 = smov 64  }
  0x16   : > { %s237_s10 = sshll.u32 %s8727_s9, 4  ;;  %s8729_s13 = smov 4   ;;  %s238_s10 = int_to_ptr.vmem [resolvable:$true] %s237_s10 }
  0x17   : > { %8425 = dma.hbm_to_vmem [thread:$0]  (!%p8816_p8), %s236_s29, 2048, %s238_s10, [#allocation10], %s8728_s11, %s8728_s11, %s8729_s13  }
  0x18   : > { %s8835_s14 = sadd.s32 1, %s8718_s24   ;;  %s55_s16 = sadd.s32 1, %s8714_s23 }
  0x19   : > { %s52_s15 = ssub.s32 %s8718_s24, %s8835_s14  ;;  %p62_p10 = scmp.ne.s32.totalorder %s8714_s23, %s8710_s22 }
  0x1a   : > { %p53_p9 = scmp.eq.s32.totalorder %s52_s15, 0  ;;  %p63_p11 = scmp.eq.s32.totalorder %s8718_s24, 0 }
  0x1b   : > { %p8434_p13 = scmp.lt.s32.totalorder %s8718_s24, 3  ;;  %s260_s18 = sand.u32 1, %s8714_s23  }
  0x1c   : > { %s8844_s17 = scalar_select %p53_p9, %s8714_s23, %s55_s16  }
  0x1d   : > { %p64_p12 = por %p63_p11, %p62_p10  ;;  %s7798_s19 = sshll.u32 %s8718_s24, 11 }
  0x1e   : > { %s5403_s20 = sshll.u32 %s260_s18, 11  ;;  %s270_s12 = scalar_lea.hbm %s9667_s1, %s7798_s19 }
  0x1f   : > { %s271_s28 = sshll.u32 %s270_s12, 4  ;;  %s264_s29 = scalar_lea.vmem [#allocation3], %s5403_s20  ;;  %s272_s28 = int_to_ptr.hbm [resolvable:$true] %s271_s28 }
  0x20   : > { %s273_s7 = sshll.u32 %s264_s29, 4  ;;  %p8852_p0 = pnand %p8434_p13, %p64_p12  ;;  %s274_s7 = int_to_ptr.vmem [resolvable:$true] %s273_s7 }
  0x21   : > { %s261_s9 = scalar_lea.sflag [#allocation4], %s260_s18  ;;  %s8614_s10 = sshra.s32 %s272_s28, 4  ;;  %s8615_s10 = int_to_ptr.hbm [resolvable:$true] %s8614_s10 }
  0x22   : > { %s8616_s11 = scalar_lea.hbm %s8615_s10, 2048  ;;  %p8618_p3 = pneg %p8852_p0 }
  0x23   : > { %p8617_p2 = scmp.ne.s32.totalorder %s8615_s10, %s8616_s11  ;;  %s8621_s15 = scalar_lea.hbm %s9667_s1, 6144 }
  0x24   : > { %p8622_p9 = scmp.lt.s32.totalorder %s8615_s10, %s9667_s1  ;;  %p8623_p10 = scmp.lt.s32.totalorder %s8621_s15, %s8616_s11 }
  0x25   : > { %p8619_p7 = pnand %p8618_p3, %p8617_p2 }
  0x26   : > { %p8624_p11 = por %p8623_p10, %p8622_p9 }
  0x27   : > { %p8620_p8 = pneg %p8619_p7 }
  0x29   : > { %p8625_p12 = pnand %p8624_p11, %p8620_p8 }
  0x2b   : > { %8628 = shalt.err (!%p8625_p12)
}
  0x2c   : > { %s8730_s18 = smov 256   ;;  %s8731_s20 = smov 16  }
  0x2d   : > { %8429 = dma.hbm_to_vmem [thread:$0]  (!%p8852_p0), %s272_s28, 32768, %s274_s7, %s261_s9, %s8730_s18, %s8730_s18, %s8731_s20  }
  0x2e   : > { %285 = sbr.rel (%p8805_p6) target bundleno = 1888 (0x760), region = 44  ;;  %s287_s21 = sand.u32 (!%p8805_p6), 1, %s8710_s22  }
  0x2f   : > { %s5408_s27 = sshll.u32 (!%p8805_p6), %s287_s21, 11  ;;  %s288_s12 = scalar_lea.sflag (!%p8805_p6), [#allocation4], %s287_s21 }
  0x30   : > { %s8869_s29 = scalar_lea.vmem (!%p8805_p6), [#allocation3], %s5408_s27 }
  0x33   : > { %8689 = dma.done.wait (%p8798_p5), %s288_s12, 32768  }
  0x34   : > { %8691 = vsyncadd (%p8798_p5), %s288_s12, 4294934528 }
  0x35   : > { %8693 = dma.done.wait (%p69_p1), [#allocation7], 1056  }
  0x36   : > { %8695 = vsyncadd (%p69_p1), [#allocation7], 4294966240 }
  0x37   : > { %8697 = dma.done.wait (%p69_p1), [#allocation10], 43008  }
  0x38   : > { %8699 = vsyncadd (%p69_p1), [#allocation10], 4294924288  ;;  %s5413_s30 = sshll.u32 %s8789_s25, 3 }
  0x39   : > { %p342_p6 = scmp.lt.s32.totalorder %s5413_s30, 23  ;;  %351 = sbr.rel (%p5398_p4) target bundleno = 65 (0x41), region = 68 }
  0x3b   : > { %s9682_s30 = smov (!%p342_p6, %s5413_s30), 23 }
  0x3c   : > { %s5414_s28 = sshll.u32 %s9682_s30, 2 }
  0x3d   : > { %s8887_s8 = scalar_lea.vmem %s9666_s0, %s5414_s28 }
  0x3e   : > { %v8732_v0 = vmov 0.0  }
  0x3f   : > { %352 = vst [vmem:[#allocation2] sm:$0xff] %v8732_v0 }
  0x40   : > { %353 = vst [vmem:[#allocation2 + $0x8] sm:$0xff] %v8732_v0 }
  0x41 PF: > { %v5530_v1 = vld [vmem:[%s8869_s29 + $0xe0] sm:$0xf]  ;;  %v7829_v2 = vld [vmem:[%s8869_s29 + $0xec] sm:$0xf0]  ;;  %vm2353_vm0 = vcmask 1043456   ;;  %p6440_p1 = scmp.ne.s32.totalorder %s8789_s25, 2 }
  0x42   : > { %v5658_v3 = vld [vmem:[%s8869_s29 + $0x1e0] sm:$0xf]  ;;  %v5531_v4 = vor.u32 %v7829_v2, %v5530_v1  ;;  %v7861_v5 = vld [vmem:[%s8869_s29 + $0x1ec] sm:$0xf0] }
  0x43   : > { %v5786_v6 = vld [vmem:[%s8869_s29 + $0x2e0] sm:$0xf]  ;;  %v7893_v7 = vld [vmem:[%s8869_s29 + $0x2ec] sm:$0xf0]  ;;  %v5659_v8 = vor.u32 %v7861_v5, %v5658_v3 }
  0x44   : > { %v5787_v9 = vor.u32 %v7893_v7, %v5786_v6  ;;  %v5914_v10 = vld [vmem:[%s8869_s29 + $0x3e0] sm:$0xf]  ;;  %v7925_v11 = vld [vmem:[%s8869_s29 + $0x3ec] sm:$0xf0]  ;;  %1931 = vmatpush.bf16.msra.mxu0 %v5531_v4 }
  0x45   : > { %v5514_v12 = vld [vmem:[%s8869_s29 + $0xc0] sm:$0xf]  ;;  %v5915_v13 = vor.u32 %v7925_v11, %v5914_v10  ;;  %v7825_v14 = vld [vmem:[%s8869_s29 + $0xcc] sm:$0xf0]  ;;  %1944 = vmatpush.bf16.msra.mxu1 %v5659_v8 }
  0x46   : > { %v5642_v15 = vld [vmem:[%s8869_s29 + $0x1c0] sm:$0xf]  ;;  %v7857_v16 = vld [vmem:[%s8869_s29 + $0x1cc] sm:$0xf0]  ;;  %1957 = vmatpush.bf16.msra.mxu2 %v5787_v9  ;;  %v5515_v17 = vor.u32 %v7825_v14, %v5514_v12 }
  0x47   : > { %v5643_v18 = vor.u32 %v7857_v16, %v5642_v15  ;;  %v5770_v19 = vld [vmem:[%s8869_s29 + $0x2c0] sm:$0xf]  ;;  %v7889_v20 = vld [vmem:[%s8869_s29 + $0x2cc] sm:$0xf0]  ;;  %1970 = vmatpush.bf16.msra.mxu3 %v5915_v13 }
  0x48   : > { %v5898_v21 = vld [vmem:[%s8869_s29 + $0x3c0] sm:$0xf]  ;;  %v5771_v22 = vor.u32 %v7889_v20, %v5770_v19  ;;  %v7921_v23 = vld [vmem:[%s8869_s29 + $0x3cc] sm:$0xf0]  ;;  %1932 = vmatpush.bf16.msra.mxu0 %v5515_v17 }
  0x49   : > { %v5498_v24 = vld [vmem:[%s8869_s29 + $0xa0] sm:$0xf]  ;;  %v7821_v25 = vld [vmem:[%s8869_s29 + $0xac] sm:$0xf0]  ;;  %v5899_v26 = vor.u32 %v7921_v23, %v5898_v21  ;;  %1945 = vmatpush.bf16.msra.mxu1 %v5643_v18 }
  0x4a   : > { %v5626_v27 = vld [vmem:[%s8869_s29 + $0x1a0] sm:$0xf]  ;;  %v7853_v28 = vld [vmem:[%s8869_s29 + $0x1ac] sm:$0xf0]  ;;  %v5499_v30 = vor.u32 %v7821_v25, %v5498_v24  ;;  %1958 = vmatpush.bf16.msra.mxu2 %v5771_v22 }
  0x4b   : > { %v5754_v29 = vld [vmem:[%s8869_s29 + $0x2a0] sm:$0xf]  ;;  %v7885_v31 = vld [vmem:[%s8869_s29 + $0x2ac] sm:$0xf0]  ;;  %v5627_v34 = vor.u32 %v7853_v28, %v5626_v27  ;;  %1971 = vmatpush.bf16.msra.mxu3 %v5899_v26 }
  0x4c   : > { %v5882_v32 = vld [vmem:[%s8869_s29 + $0x3a0] sm:$0xf]  ;;  %v7917_v33 = vld [vmem:[%s8869_s29 + $0x3ac] sm:$0xf0]  ;;  %v5755_v35 = vor.u32 %v7885_v31, %v5754_v29  ;;  %1933 = vmatpush.bf16.msra.mxu0 %v5499_v30 }
  0x4d   : > { %v5482_v36 = vld [vmem:[%s8869_s29 + $0x80] sm:$0xf]  ;;  %v7817_v37 = vld [vmem:[%s8869_s29 + $0x8c] sm:$0xf0]  ;;  %v5883_v39 = vor.u32 %v7917_v33, %v5882_v32  ;;  %1946 = vmatpush.bf16.msra.mxu1 %v5627_v34 }
  0x4e   : > { %v5610_v38 = vld [vmem:[%s8869_s29 + $0x180] sm:$0xf]  ;;  %v7849_v40 = vld [vmem:[%s8869_s29 + $0x18c] sm:$0xf0]  ;;  %v5483_v45 = vor.u32 %v7817_v37, %v5482_v36  ;;  %1959 = vmatpush.bf16.msra.mxu2 %v5755_v35 }
  0x4f   : > { %v5738_v41 = vld [vmem:[%s8869_s29 + $0x280] sm:$0xf]  ;;  %v7881_v42 = vld [vmem:[%s8869_s29 + $0x28c] sm:$0xf0]  ;;  %v5611_v46 = vor.u32 %v7849_v40, %v5610_v38  ;;  %1972 = vmatpush.bf16.msra.mxu3 %v5883_v39 }
  0x50   : > { %v5866_v43 = vld [vmem:[%s8869_s29 + $0x380] sm:$0xf]  ;;  %v7913_v44 = vld [vmem:[%s8869_s29 + $0x38c] sm:$0xf0]  ;;  %v5739_v47 = vor.u32 %v7881_v42, %v5738_v41  ;;  %1934 = vmatpush.bf16.msra.mxu0 %v5483_v45 }
  0x51   : > { %v5466_v48 = vld [vmem:[%s8869_s29 + $0x60] sm:$0xf]  ;;  %v7813_v49 = vld [vmem:[%s8869_s29 + $0x6c] sm:$0xf0]  ;;  %v5867_v51 = vor.u32 %v7913_v44, %v5866_v43  ;;  %1947 = vmatpush.bf16.msra.mxu1 %v5611_v46 }
  0x52   : > { %v5594_v50 = vld [vmem:[%s8869_s29 + $0x160] sm:$0xf]  ;;  %v7845_v52 = vld [vmem:[%s8869_s29 + $0x16c] sm:$0xf0]  ;;  %v5467_v57 = vor.u32 %v7813_v49, %v5466_v48  ;;  %1960 = vmatpush.bf16.msra.mxu2 %v5739_v47 }
  0x53   : > { %v5722_v53 = vld [vmem:[%s8869_s29 + $0x260] sm:$0xf]  ;;  %v7877_v54 = vld [vmem:[%s8869_s29 + $0x26c] sm:$0xf0]  ;;  %v5595_v58 = vor.u32 %v7845_v52, %v5594_v50  ;;  %1973 = vmatpush.bf16.msra.mxu3 %v5867_v51 }
  0x54   : > { %v5850_v55 = vld [vmem:[%s8869_s29 + $0x360] sm:$0xf]  ;;  %v7909_v56 = vld [vmem:[%s8869_s29 + $0x36c] sm:$0xf0]  ;;  %v5723_v59 = vor.u32 %v7877_v54, %v5722_v53  ;;  %1935 = vmatpush.bf16.msra.mxu0 %v5467_v57 }
  0x55   : > { %v5450_v60 = vld [vmem:[%s8869_s29 + $0x40] sm:$0xf]  ;;  %v7809_v61 = vld [vmem:[%s8869_s29 + $0x4c] sm:$0xf0]  ;;  %v5851_v63 = vor.u32 %v7909_v56, %v5850_v55  ;;  %1948 = vmatpush.bf16.msra.mxu1 %v5595_v58 }
  0x56   : > { %v5578_v62 = vld [vmem:[%s8869_s29 + $0x140] sm:$0xf]  ;;  %v7841_v0 = vld [vmem:[%s8869_s29 + $0x14c] sm:$0xf0]  ;;  %v5451_v5 = vor.u32 %v7809_v61, %v5450_v60  ;;  %1961 = vmatpush.bf16.msra.mxu2 %v5723_v59 }
  0x57   : > { %v5706_v1 = vld [vmem:[%s8869_s29 + $0x240] sm:$0xf]  ;;  %v7873_v2 = vld [vmem:[%s8869_s29 + $0x24c] sm:$0xf0]  ;;  %v5579_v6 = vor.u32 %v7841_v0, %v5578_v62  ;;  %1974 = vmatpush.bf16.msra.mxu3 %v5851_v63 }
  0x58   : > { %v5834_v3 = vld [vmem:[%s8869_s29 + $0x340] sm:$0xf]  ;;  %v7905_v4 = vld [vmem:[%s8869_s29 + $0x34c] sm:$0xf0]  ;;  %v5707_v7 = vor.u32 %v7873_v2, %v5706_v1  ;;  %1936 = vmatpush.bf16.msra.mxu0 %v5451_v5 }
  0x59   : > { %v5434_v8 = vld [vmem:[%s8869_s29 + $0x20] sm:$0xf]  ;;  %v7805_v9 = vld [vmem:[%s8869_s29 + $0x2c] sm:$0xf0]  ;;  %v5835_v11 = vor.u32 %v7905_v4, %v5834_v3  ;;  %1949 = vmatpush.bf16.msra.mxu1 %v5579_v6 }
  0x5a   : > { %v5562_v10 = vld [vmem:[%s8869_s29 + $0x120] sm:$0xf]  ;;  %v7837_v12 = vld [vmem:[%s8869_s29 + $0x12c] sm:$0xf0]  ;;  %v5435_v17 = vor.u32 %v7805_v9, %v5434_v8  ;;  %1962 = vmatpush.bf16.msra.mxu2 %v5707_v7  ;;  %v356_v9 = vld [vmem:[%s8887_s8] sm:$0xff] }
  0x5b   : > { %v5690_v13 = vld [vmem:[%s8869_s29 + $0x220] sm:$0xf]  ;;  %v7869_v14 = vld [vmem:[%s8869_s29 + $0x22c] sm:$0xf0]  ;;  %v5563_v20 = vor.u32 %v7837_v12, %v5562_v10  ;;  %1975 = vmatpush.bf16.msra.mxu3 %v5835_v11  ;;  %364 = vst [vmem:[#allocation1] ss:$2 sm:$0xff] %v356_v9 }
  0x5c   : > { %v5818_v15 = vld [vmem:[%s8869_s29 + $0x320] sm:$0xf]  ;;  %v7901_v16 = vld [vmem:[%s8869_s29 + $0x32c] sm:$0xf0]  ;;  %v5691_v21 = vor.u32 %v7869_v14, %v5690_v13  ;;  %1937 = vmatpush.bf16.msra.mxu0 %v5435_v17  ;;  %v7827_v9 = vld [vmem:[%s8869_s29 + $0xe4] sm:$0xf] }
  0x5d   : > { %v5418_v18 = vld [vmem:[%s8869_s29] sm:$0xf]  ;;  %v7801_v19 = vld [vmem:[%s8869_s29 + $0xc] sm:$0xf0]  ;;  %v5819_v25 = vor.u32 %v7901_v16, %v5818_v15  ;;  %1950 = vmatpush.bf16.msra.mxu1 %v5563_v20 }
  0x5e   : > { %v5546_v22 = vld [vmem:[%s8869_s29 + $0x100] sm:$0xf]  ;;  %v7833_v23 = vld [vmem:[%s8869_s29 + $0x10c] sm:$0xf0]  ;;  %v5419_v32 = vor.u32 %v7801_v19, %v5418_v18  ;;  %1963 = vmatpush.bf16.msra.mxu2 %v5691_v21 }
  0x5f   : > { %v5674_v24 = vld [vmem:[%s8869_s29 + $0x200] sm:$0xf]  ;;  %v7865_v26 = vld [vmem:[%s8869_s29 + $0x20c] sm:$0xf0]  ;;  %v5547_v36 = vor.u32 %v7833_v23, %v5546_v22  ;;  %1976 = vmatpush.bf16.msra.mxu3 %v5819_v25 }
  0x60   : > { %v5802_v27 = vld [vmem:[%s8869_s29 + $0x300] sm:$0xf]  ;;  %v7897_v28 = vld [vmem:[%s8869_s29 + $0x30c] sm:$0xf0]  ;;  %v5675_v37 = vor.u32 %v7865_v26, %v5674_v24  ;;  %1938 = vmatpush.bf16.msra.mxu0 %v5419_v32 }
  0x61   : > { %v6042_v29 = vld [vmem:[%s8869_s29 + $0x4e0] sm:$0xf]  ;;  %v7957_v30 = vld [vmem:[%s8869_s29 + $0x4ec] sm:$0xf0]  ;;  %v5803_v40 = vor.u32 %v7897_v28, %v5802_v27  ;;  %1951 = vmatpush.bf16.msra.mxu1 %v5547_v36 }
  0x62   : > { %v6170_v31 = vld [vmem:[%s8869_s29 + $0x5e0] sm:$0xf]  ;;  %v7989_v33 = vld [vmem:[%s8869_s29 + $0x5ec] sm:$0xf0]  ;;  %v6043_v41 = vor.u32 %v7957_v30, %v6042_v29  ;;  %1964 = vmatpush.bf16.msra.mxu2 %v5675_v37 }
  0x63   : > { %v6298_v34 = vld [vmem:[%s8869_s29 + $0x6e0] sm:$0xf]  ;;  %v8021_v35 = vld [vmem:[%s8869_s29 + $0x6ec] sm:$0xf0]  ;;  %v6171_v42 = vor.u32 %v7989_v33, %v6170_v31  ;;  %1977 = vmatpush.bf16.msra.mxu3 %v5803_v40 }
  0x64   : > { %v6426_v38 = vld [vmem:[%s8869_s29 + $0x7e0] sm:$0xf]  ;;  %v8053_v39 = vld [vmem:[%s8869_s29 + $0x7ec] sm:$0xf0]  ;;  %v6299_v43 = vor.u32 %v8021_v35, %v6298_v34  ;;  %1983 = vmatpush.bf16.msrb.mxu0 %v6043_v41 }
  0x65   : > { %v6026_v44 = vld [vmem:[%s8869_s29 + $0x4c0] sm:$0xf]  ;;  %v7953_v45 = vld [vmem:[%s8869_s29 + $0x4cc] sm:$0xf0]  ;;  %v6427_v47 = vor.u32 %v8053_v39, %v6426_v38  ;;  %1996 = vmatpush.bf16.msrb.mxu1 %v6171_v42 }
  0x66   : > { %v6154_v46 = vld [vmem:[%s8869_s29 + $0x5c0] sm:$0xf]  ;;  %v7985_v48 = vld [vmem:[%s8869_s29 + $0x5cc] sm:$0xf0]  ;;  %v6027_v53 = vor.u32 %v7953_v45, %v6026_v44  ;;  %2009 = vmatpush.bf16.msrb.mxu2 %v6299_v43 }
  0x67   : > { %v6282_v49 = vld [vmem:[%s8869_s29 + $0x6c0] sm:$0xf]  ;;  %v8017_v50 = vld [vmem:[%s8869_s29 + $0x6cc] sm:$0xf0]  ;;  %v6155_v56 = vor.u32 %v7985_v48, %v6154_v46  ;;  %2022 = vmatpush.bf16.msrb.mxu3 %v6427_v47 }
  0x68   : > { %v6410_v51 = vld [vmem:[%s8869_s29 + $0x7c0] sm:$0xf]  ;;  %v8049_v52 = vld [vmem:[%s8869_s29 + $0x7cc] sm:$0xf0]  ;;  %v6283_v57 = vor.u32 %v8017_v50, %v6282_v49  ;;  %1984 = vmatpush.bf16.msrb.mxu0 %v6027_v53 }
  0x69   : > { %v6010_v54 = vld [vmem:[%s8869_s29 + $0x4a0] sm:$0xf]  ;;  %v7949_v55 = vld [vmem:[%s8869_s29 + $0x4ac] sm:$0xf0]  ;;  %v6411_v61 = vor.u32 %v8049_v52, %v6410_v51  ;;  %1997 = vmatpush.bf16.msrb.mxu1 %v6155_v56 }
  0x6a   : > { %v6138_v58 = vld [vmem:[%s8869_s29 + $0x5a0] sm:$0xf]  ;;  %v7981_v59 = vld [vmem:[%s8869_s29 + $0x5ac] sm:$0xf0]  ;;  %v6011_v2 = vor.u32 %v7949_v55, %v6010_v54  ;;  %2010 = vmatpush.bf16.msrb.mxu2 %v6283_v57 }
  0x6b   : > { %v357_v60 = vld [vmem:[%s8887_s8 + $0x8] sm:$0xff]  ;;  %v6266_v62 = vld [vmem:[%s8869_s29 + $0x6a0] sm:$0xf]  ;;  %v6139_v5 = vor.u32 %v7981_v59, %v6138_v58  ;;  %2023 = vmatpush.bf16.msrb.mxu3 %v6411_v61  ;;  %v371_v37 = vld.sshfl [vmem:[#allocation1] sm:$0xff pattern:$0x75316420] }
  0x6c   : > { %v8013_v63 = vld [vmem:[%s8869_s29 + $0x6ac] sm:$0xf0]  ;;  %366 = vst [vmem:[#allocation1 + $0x10] ss:$2 sm:$0xff] %v357_v60  ;;  %v6394_v0 = vld [vmem:[%s8869_s29 + $0x7a0] sm:$0xf]  ;;  %1985 = vmatpush.bf16.msrb.mxu0 %v6011_v2  ;;  %v9008_v43 = vpack.c.bf16 %v371_v37, %v371_v37 }
  0x6d   : > { %v8045_v1 = vld [vmem:[%s8869_s29 + $0x7ac] sm:$0xf0]  ;;  %v5994_v3 = vld [vmem:[%s8869_s29 + $0x480] sm:$0xf]  ;;  %v6267_v6 = vor.u32 %v8013_v63, %v6266_v62  ;;  %1998 = vmatpush.bf16.msrb.mxu1 %v6139_v5  ;;  %v358_v59 = vld [vmem:[%s8887_s8 + $0x10] sm:$0xff] }
  0x6e   : > { %v7945_v4 = vld [vmem:[%s8869_s29 + $0x48c] sm:$0xf0]  ;;  %v6122_v7 = vld [vmem:[%s8869_s29 + $0x580] sm:$0xf]  ;;  %v6395_v10 = vor.u32 %v8045_v1, %v6394_v0  ;;  %1939 = vmatmul.bf16.vlgmr.msra.gmra.mxu0 %v9008_v43  ;;  %368 = vst [vmem:[#allocation1 + $0x20] ss:$2 sm:$0xff] %v358_v59 }
  0x6f   : > { %v7977_v8 = vld [vmem:[%s8869_s29 + $0x58c] sm:$0xf0]  ;;  %v6250_v11 = vld [vmem:[%s8869_s29 + $0x680] sm:$0xf]  ;;  %v5995_v15 = vor.u32 %v7945_v4, %v5994_v3  ;;  %2011 = vmatpush.bf16.msrb.mxu2 %v6267_v6 }
  0x70   : > { %v8009_v12 = vld [vmem:[%s8869_s29 + $0x68c] sm:$0xf0]  ;;  %v6378_v13 = vld [vmem:[%s8869_s29 + $0x780] sm:$0xf]  ;;  %v6123_v19 = vor.u32 %v7977_v8, %v6122_v7  ;;  %2024 = vmatpush.bf16.msrb.mxu3 %v6395_v10  ;;  %v5532_v10 = vld [vmem:[%s8869_s29 + $0xf0] sm:$0xf0] }
  0x71   : > { %v8041_v14 = vld [vmem:[%s8869_s29 + $0x78c] sm:$0xf0]  ;;  %v5978_v16 = vld [vmem:[%s8869_s29 + $0x460] sm:$0xf]  ;;  %v6251_v20 = vor.u32 %v8009_v12, %v6250_v11  ;;  %1986 = vmatpush.bf16.msrb.mxu0 %v5995_v15  ;;  %v7859_v11 = vld [vmem:[%s8869_s29 + $0x1e4] sm:$0xf] }
  0x72   : > { %v7941_v17 = vld [vmem:[%s8869_s29 + $0x46c] sm:$0xf0]  ;;  %v6106_v18 = vld [vmem:[%s8869_s29 + $0x560] sm:$0xf]  ;;  %v6379_v23 = vor.u32 %v8041_v14, %v6378_v13  ;;  %1999 = vmatpush.bf16.msrb.mxu1 %v6123_v19  ;;  %v5660_v12 = vld [vmem:[%s8869_s29 + $0x1f0] sm:$0xf0] }
  0x73   : > { %v373_v21 = vld.sshfl [vmem:[#allocation1 + $0x10] sm:$0xff pattern:$0x75316420]  ;;  %v374_v22 = vld.sshfl [vmem:[#allocation1 + $0x18] sm:$0xff pattern:$0x75316420]  ;;  %v5979_v31 = vor.u32 %v7941_v17, %v5978_v16  ;;  %2012 = vmatpush.bf16.msrb.mxu2 %v6251_v20 }
  0x74   : > { %v7973_v24 = vld [vmem:[%s8869_s29 + $0x56c] sm:$0xf0]  ;;  %v6234_v25 = vld [vmem:[%s8869_s29 + $0x660] sm:$0xf]  ;;  %v8995_v27 = vpack.c.bf16 %v373_v21, %v373_v21  ;;  %v8999_v30 = vpack.c.bf16 %v374_v22, %v374_v22  ;;  %2025 = vmatpush.bf16.msrb.mxu3 %v6379_v23  ;;  %v7891_v14 = vld [vmem:[%s8869_s29 + $0x2e4] sm:$0xf]  ;;  %v5535_v23 = vor.u32 %v7827_v9, %v5532_v10 }
  0x75   : > { %v8005_v26 = vld [vmem:[%s8869_s29 + $0x66c] sm:$0xf0]  ;;  %v6362_v28 = vld [vmem:[%s8869_s29 + $0x760] sm:$0xf]  ;;  %v6107_v35 = vor.u32 %v7973_v24, %v6106_v18  ;;  %1987 = vmatpush.bf16.msrb.mxu0 %v5979_v31  ;;  %v5788_v15 = vld [vmem:[%s8869_s29 + $0x2f0] sm:$0xf0] }
  0x76   : > { %v8037_v29 = vld [vmem:[%s8869_s29 + $0x76c] sm:$0xf0]  ;;  %1965 = vmatmul.bf16.vlgmr.msra.gmra.mxu2 %v8995_v27  ;;  %v5962_v32 = vld [vmem:[%s8869_s29 + $0x440] sm:$0xf]  ;;  %v6235_v36 = vor.u32 %v8005_v26, %v6234_v25  ;;  %1978 = vmatmul.bf16.vlgmr.msra.gmra.mxu3 %v8999_v30  ;;  %v7923_v16 = vld [vmem:[%s8869_s29 + $0x3e4] sm:$0xf] }
  0x77   : > { %v7937_v33 = vld [vmem:[%s8869_s29 + $0x44c] sm:$0xf0]  ;;  %v6090_v34 = vld [vmem:[%s8869_s29 + $0x540] sm:$0xf]  ;;  %v6363_v39 = vor.u32 %v8037_v29, %v6362_v28  ;;  %2000 = vmatpush.bf16.msrb.mxu1 %v6107_v35  ;;  %v5916_v19 = vld [vmem:[%s8869_s29 + $0x3f0] sm:$0xf0]  ;;  %v5663_v28 = vor.u32 %v7859_v11, %v5660_v12  ;;  %v5791_v29 = vor.u32 %v7891_v14, %v5788_v15 }
  0x78   : > { %v372_v38 = vld.sshfl [vmem:[#allocation1 + $0x8] sm:$0xff pattern:$0x75316420]  ;;  %v6218_v41 = vld [vmem:[%s8869_s29 + $0x640] sm:$0xf]  ;;  %v5963_v47 = vor.u32 %v7937_v33, %v5962_v32  ;;  %2013 = vmatpush.bf16.msrb.mxu2 %v6235_v36  ;;  %v5919_v33 = vor.u32 %v7923_v16, %v5916_v19 }
  0x79   : > { %v7969_v40 = vld [vmem:[%s8869_s29 + $0x54c] sm:$0xf0]  ;;  %v9010_v44 = vpack.c.bf16 %v372_v38, %v372_v38  ;;  %v6346_v45 = vld [vmem:[%s8869_s29 + $0x740] sm:$0xf]  ;;  %2026 = vmatpush.bf16.msrb.mxu3 %v6363_v39  ;;  %v7823_v20 = vld [vmem:[%s8869_s29 + $0xc4] sm:$0xf] }
  0x7a   : > { %v8001_v42 = vld [vmem:[%s8869_s29 + $0x64c] sm:$0xf0]  ;;  %v5946_v48 = vld [vmem:[%s8869_s29 + $0x420] sm:$0xf]  ;;  %v6091_v51 = vor.u32 %v7969_v40, %v6090_v34  ;;  %1988 = vmatpush.bf16.msrb.mxu0 %v5963_v47  ;;  %v5516_v21 = vld [vmem:[%s8869_s29 + $0xd0] sm:$0xf0] }
  0x7b   : > { %v8033_v46 = vld [vmem:[%s8869_s29 + $0x74c] sm:$0xf0]  ;;  %1952 = vmatmul.bf16.vlgmr.msra.gmra.mxu1 %v9010_v44  ;;  %v6074_v50 = vld [vmem:[%s8869_s29 + $0x520] sm:$0xf]  ;;  %v6219_v52 = vor.u32 %v8001_v42, %v6218_v41  ;;  %v7855_v24 = vld [vmem:[%s8869_s29 + $0x1c4] sm:$0xf]  ;;  %v5519_v42 = vor.u32 %v7823_v20, %v5516_v21 }
  0x7c   : > { %v7933_v49 = vld [vmem:[%s8869_s29 + $0x42c] sm:$0xf0]  ;;  %v6202_v54 = vld [vmem:[%s8869_s29 + $0x620] sm:$0xf]  ;;  %v6347_v56 = vor.u32 %v8033_v46, %v6346_v45  ;;  %2001 = vmatpush.bf16.msrb.mxu1 %v6091_v51  ;;  %v5644_v31 = vld [vmem:[%s8869_s29 + $0x1d0] sm:$0xf0] }
  0x7d   : > { %v7965_v53 = vld [vmem:[%s8869_s29 + $0x52c] sm:$0xf0]  ;;  %v6330_v57 = vld [vmem:[%s8869_s29 + $0x720] sm:$0xf]  ;;  %v5947_v62 = vor.u32 %v7933_v49, %v5946_v48  ;;  %2014 = vmatpush.bf16.msrb.mxu2 %v6219_v52  ;;  %v7887_v34 = vld [vmem:[%s8869_s29 + $0x2c4] sm:$0xf]  ;;  %v5647_v45 = vor.u32 %v7855_v24, %v5644_v31 }
  0x7e   : > { %v7997_v55 = vld [vmem:[%s8869_s29 + $0x62c] sm:$0xf0]  ;;  %v359_v58 = vld [vmem:[%s8887_s8 + $0x18] sm:$0xff]  ;;  %v6075_v1 = vor.u32 %v7965_v53, %v6074_v50  ;;  %2027 = vmatpush.bf16.msrb.mxu3 %v6347_v56  ;;  %v5772_v35 = vld [vmem:[%s8869_s29 + $0x2d0] sm:$0xf0] }
  0x7f   : > { %v8029_v60 = vld [vmem:[%s8869_s29 + $0x72c] sm:$0xf0]  ;;  %v5930_v61 = vld [vmem:[%s8869_s29 + $0x400] sm:$0xf]  ;;  %370 = vst [vmem:[#allocation1 + $0x30] ss:$2 sm:$0xff] %v359_v58  ;;  %v6203_v2 = vor.u32 %v7997_v55, %v6202_v54  ;;  %1989 = vmatpush.bf16.msrb.mxu0 %v5947_v62  ;;  %v5775_v46 = vor.u32 %v7887_v34, %v5772_v35 }
  0x80   : > { %v7929_v63 = vld [vmem:[%s8869_s29 + $0x40c] sm:$0xf0]  ;;  %v6058_v0 = vld [vmem:[%s8869_s29 + $0x500] sm:$0xf]  ;;  %v6331_v6 = vor.u32 %v8029_v60, %v6330_v57  ;;  %2002 = vmatpush.bf16.msrb.mxu1 %v6075_v1  ;;  %v7919_v36 = vld [vmem:[%s8869_s29 + $0x3c4] sm:$0xf] }
  0x81   : > { %v7961_v3 = vld [vmem:[%s8869_s29 + $0x50c] sm:$0xf0]  ;;  %v6186_v4 = vld [vmem:[%s8869_s29 + $0x600] sm:$0xf]  ;;  %v5931_v13 = vor.u32 %v7929_v63, %v5930_v61  ;;  %2015 = vmatpush.bf16.msrb.mxu2 %v6203_v2  ;;  %v5900_v38 = vld [vmem:[%s8869_s29 + $0x3d0] sm:$0xf0] }
  0x82   : > { %v7993_v5 = vld [vmem:[%s8869_s29 + $0x60c] sm:$0xf0]  ;;  %v6314_v7 = vld [vmem:[%s8869_s29 + $0x700] sm:$0xf]  ;;  %v6059_v17 = vor.u32 %v7961_v3, %v6058_v0  ;;  %2028 = vmatpush.bf16.msrb.mxu3 %v6331_v6  ;;  %v7819_v47 = vld [vmem:[%s8869_s29 + $0xa4] sm:$0xf]  ;;  %v5903_v50 = vor.u32 %v7919_v36, %v5900_v38 }
  0x83   : > { %v8025_v8 = vld [vmem:[%s8869_s29 + $0x70c] sm:$0xf0]  ;;  %v6187_v18 = vor.u32 %v7993_v5, %v6186_v4  ;;  %1990 = vmatpush.bf16.msrb.mxu0 %v5931_v13  ;;  %v375_v39 = vld.sshfl [vmem:[#allocation1 + $0x20] sm:$0xff pattern:$0x75316420] }
  0x84   : > { %v6315_v22 = vor.u32 %v8025_v8, %v6314_v7  ;;  %v376_v32 = vld.sshfl [vmem:[#allocation1 + $0x28] sm:$0xff pattern:$0x75316420]  ;;  %2003 = vmatpush.bf16.msrb.mxu1 %v6059_v17  ;;  %v7851_v49 = vld [vmem:[%s8869_s29 + $0x1a4] sm:$0xf]  ;;  %v9061_v51 = vpack.c.bf16 %v375_v39, %v375_v39 }
  0x85   : > { %2016 = vmatpush.bf16.msrb.mxu2 %v6187_v18  ;;  %v9055_v41 = vpack.c.bf16 %v376_v32, %v376_v32  ;;  %v5500_v48 = vld [vmem:[%s8869_s29 + $0xb0] sm:$0xf0]  ;;  %v7883_v53 = vld [vmem:[%s8869_s29 + $0x2a4] sm:$0xf] }
  0x86   : > { %v377_v25 = vld.sshfl [vmem:[#allocation1 + $0x30] sm:$0xff pattern:$0x75316420]  ;;  %v378_v26 = vld.sshfl [vmem:[#allocation1 + $0x38] sm:$0xff pattern:$0x75316420]  ;;  %2029 = vmatpush.bf16.msrb.mxu3 %v6315_v22  ;;  %v5503_v57 = vor.u32 %v7819_v47, %v5500_v48  ;;  %1991 = vmatmul.bf16.vlgmr.msrb.gmra.mxu0 %v9061_v51 }
  0x87   : > { %v9050_v37 = vpack.c.bf16 %v377_v25, %v377_v25  ;;  %v9053_v40 = vpack.c.bf16 %v378_v26, %v378_v26  ;;  %2035 = vmatpush.bf16.msra.mxu0 %v5535_v23  ;;  %v5628_v52 = vld [vmem:[%s8869_s29 + $0x1b0] sm:$0xf0]  ;;  %v7915_v55 = vld [vmem:[%s8869_s29 + $0x3a4] sm:$0xf] }
  0x88   : > { %2048 = vmatpush.bf16.msra.mxu1 %v5663_v28  ;;  %v5756_v54 = vld [vmem:[%s8869_s29 + $0x2b0] sm:$0xf0]  ;;  %v5631_v58 = vor.u32 %v7851_v49, %v5628_v52  ;;  %v7815_v60 = vld [vmem:[%s8869_s29 + $0x84] sm:$0xf] }
  0x89   : > { %2061 = vmatpush.bf16.msra.mxu2 %v5791_v29  ;;  %2030 = vmatmul.bf16.vlgmr.msrb.gmra.mxu3 %v9053_v40  ;;  %v5884_v56 = vld [vmem:[%s8869_s29 + $0x3b0] sm:$0xf0]  ;;  %v5759_v59 = vor.u32 %v7883_v53, %v5756_v54  ;;  %v7847_v62 = vld [vmem:[%s8869_s29 + $0x184] sm:$0xf] }
  0x8a   : > { %2074 = vmatpush.bf16.msra.mxu3 %v5919_v33  ;;  %2017 = vmatmul.bf16.vlgmr.msrb.gmra.mxu2 %v9050_v37  ;;  %v5484_v61 = vld [vmem:[%s8869_s29 + $0x90] sm:$0xf0]  ;;  %v5887_v63 = vor.u32 %v7915_v55, %v5884_v56  ;;  %v7879_v1 = vld [vmem:[%s8869_s29 + $0x284] sm:$0xf] }
  0x8b   : > { %2004 = vmatmul.bf16.vlgmr.msrb.gmra.mxu1 %v9055_v41  ;;  %2036 = vmatpush.bf16.msra.mxu0 %v5519_v42  ;;  %v5612_v0 = vld [vmem:[%s8869_s29 + $0x190] sm:$0xf0]  ;;  %v7911_v3 = vld [vmem:[%s8869_s29 + $0x384] sm:$0xf]  ;;  %v5487_v5 = vor.u32 %v7815_v60, %v5484_v61 }
  0x8c   : > { %2049 = vmatpush.bf16.msra.mxu1 %v5647_v45  ;;  %v5740_v2 = vld [vmem:[%s8869_s29 + $0x290] sm:$0xf0]  ;;  %v5615_v6 = vor.u32 %v7847_v62, %v5612_v0  ;;  %v7811_v8 = vld [vmem:[%s8869_s29 + $0x64] sm:$0xf] }
  0x8d   : > { %2062 = vmatpush.bf16.msra.mxu2 %v5775_v46  ;;  %v5868_v4 = vld [vmem:[%s8869_s29 + $0x390] sm:$0xf0]  ;;  %v5743_v7 = vor.u32 %v7879_v1, %v5740_v2  ;;  %v7843_v10 = vld [vmem:[%s8869_s29 + $0x164] sm:$0xf] }
  0x8e   : > { %2075 = vmatpush.bf16.msra.mxu3 %v5903_v50  ;;  %v5468_v9 = vld [vmem:[%s8869_s29 + $0x70] sm:$0xf0]  ;;  %v5871_v11 = vor.u32 %v7911_v3, %v5868_v4  ;;  %v7875_v13 = vld [vmem:[%s8869_s29 + $0x264] sm:$0xf] }
  0x8f   : > { %2037 = vmatpush.bf16.msra.mxu0 %v5503_v57  ;;  %v5596_v12 = vld [vmem:[%s8869_s29 + $0x170] sm:$0xf0]  ;;  %v7907_v15 = vld [vmem:[%s8869_s29 + $0x364] sm:$0xf]  ;;  %v5471_v17 = vor.u32 %v7811_v8, %v5468_v9 }
  0x90   : > { %2050 = vmatpush.bf16.msra.mxu1 %v5631_v58  ;;  %v5724_v14 = vld [vmem:[%s8869_s29 + $0x270] sm:$0xf0]  ;;  %v5599_v18 = vor.u32 %v7843_v10, %v5596_v12  ;;  %v7807_v20 = vld [vmem:[%s8869_s29 + $0x44] sm:$0xf] }
  0x91   : > { %2063 = vmatpush.bf16.msra.mxu2 %v5759_v59  ;;  %v5852_v16 = vld [vmem:[%s8869_s29 + $0x370] sm:$0xf0]  ;;  %v5727_v19 = vor.u32 %v7875_v13, %v5724_v14  ;;  %v7839_v22 = vld [vmem:[%s8869_s29 + $0x144] sm:$0xf] }
  0x92   : > { %2076 = vmatpush.bf16.msra.mxu3 %v5887_v63  ;;  %v5452_v21 = vld [vmem:[%s8869_s29 + $0x50] sm:$0xf0]  ;;  %v5855_v23 = vor.u32 %v7907_v15, %v5852_v16  ;;  %v7871_v25 = vld [vmem:[%s8869_s29 + $0x244] sm:$0xf] }
  0x93   : > { %2038 = vmatpush.bf16.msra.mxu0 %v5487_v5  ;;  %v5580_v24 = vld [vmem:[%s8869_s29 + $0x150] sm:$0xf0]  ;;  %v7903_v28 = vld [vmem:[%s8869_s29 + $0x344] sm:$0xf]  ;;  %v5455_v31 = vor.u32 %v7807_v20, %v5452_v21 }
  0x94   : > { %2051 = vmatpush.bf16.msra.mxu1 %v5615_v6  ;;  %v5708_v26 = vld [vmem:[%s8869_s29 + $0x250] sm:$0xf0]  ;;  %v5583_v32 = vor.u32 %v7839_v22, %v5580_v24  ;;  %v7803_v34 = vld [vmem:[%s8869_s29 + $0x24] sm:$0xf] }
  0x95   : > { %2064 = vmatpush.bf16.msra.mxu2 %v5743_v7  ;;  %v5836_v29 = vld [vmem:[%s8869_s29 + $0x350] sm:$0xf0]  ;;  %v5711_v33 = vor.u32 %v7871_v25, %v5708_v26  ;;  %v7835_v36 = vld [vmem:[%s8869_s29 + $0x124] sm:$0xf] }
  0x96   : > { %2077 = vmatpush.bf16.msra.mxu3 %v5871_v11  ;;  %v5436_v35 = vld [vmem:[%s8869_s29 + $0x30] sm:$0xf0]  ;;  %v5839_v38 = vor.u32 %v7903_v28, %v5836_v29  ;;  %v7867_v42 = vld [vmem:[%s8869_s29 + $0x224] sm:$0xf] }
  0x97   : > { %2039 = vmatpush.bf16.msra.mxu0 %v5471_v17  ;;  %v5564_v39 = vld [vmem:[%s8869_s29 + $0x130] sm:$0xf0]  ;;  %v7899_v46 = vld [vmem:[%s8869_s29 + $0x324] sm:$0xf]  ;;  %v5439_v48 = vor.u32 %v7803_v34, %v5436_v35 }
  0x98   : > { %2052 = vmatpush.bf16.msra.mxu1 %v5599_v18  ;;  %v5692_v45 = vld [vmem:[%s8869_s29 + $0x230] sm:$0xf0]  ;;  %v7799_v49 = vld [vmem:[%s8869_s29 + $0x4] sm:$0xf]  ;;  %v5567_v52 = vor.u32 %v7835_v36, %v5564_v39 }
  0x99   : > { %2065 = vmatpush.bf16.msra.mxu2 %v5727_v19  ;;  %v5820_v47 = vld [vmem:[%s8869_s29 + $0x330] sm:$0xf0]  ;;  %v5695_v53 = vor.u32 %v7867_v42, %v5692_v45  ;;  %v7831_v54 = vld [vmem:[%s8869_s29 + $0x104] sm:$0xf] }
  0x9a   : > { %2078 = vmatpush.bf16.msra.mxu3 %v5855_v23  ;;  %v5420_v50 = vld [vmem:[%s8869_s29 + $0x10] sm:$0xf0]  ;;  %v7863_v56 = vld [vmem:[%s8869_s29 + $0x204] sm:$0xf]  ;;  %v5823_v57 = vor.u32 %v7899_v46, %v5820_v47 }
  0x9b   : > { %2040 = vmatpush.bf16.msra.mxu0 %v5455_v31  ;;  %v5548_v55 = vld [vmem:[%s8869_s29 + $0x110] sm:$0xf0]  ;;  %v7895_v59 = vld [vmem:[%s8869_s29 + $0x304] sm:$0xf]  ;;  %v5423_v0 = vor.u32 %v7799_v49, %v5420_v50 }
  0x9c   : > { %2053 = vmatpush.bf16.msra.mxu1 %v5583_v32  ;;  %v5676_v58 = vld [vmem:[%s8869_s29 + $0x210] sm:$0xf0]  ;;  %v7955_v61 = vld [vmem:[%s8869_s29 + $0x4e4] sm:$0xf]  ;;  %v5551_v4 = vor.u32 %v7831_v54, %v5548_v55 }
  0x9d   : > { %2066 = vmatpush.bf16.msra.mxu2 %v5711_v33  ;;  %v5804_v60 = vld [vmem:[%s8869_s29 + $0x310] sm:$0xf0]  ;;  %v7987_v63 = vld [vmem:[%s8869_s29 + $0x5e4] sm:$0xf]  ;;  %v5679_v5 = vor.u32 %v7863_v56, %v5676_v58 }
  0x9e   : > { %2079 = vmatpush.bf16.msra.mxu3 %v5839_v38  ;;  %v6044_v62 = vld [vmem:[%s8869_s29 + $0x4f0] sm:$0xf0]  ;;  %v8019_v2 = vld [vmem:[%s8869_s29 + $0x6e4] sm:$0xf]  ;;  %v5807_v8 = vor.u32 %v7895_v59, %v5804_v60 }
  0x9f   : > { %2041 = vmatpush.bf16.msra.mxu0 %v5439_v48  ;;  %v6172_v1 = vld [vmem:[%s8869_s29 + $0x5f0] sm:$0xf0]  ;;  %v8051_v6 = vld [vmem:[%s8869_s29 + $0x7e4] sm:$0xf]  ;;  %v6047_v9 = vor.u32 %v7955_v61, %v6044_v62 }
  0xa0   : > { %v6300_v3 = vld [vmem:[%s8869_s29 + $0x6f0] sm:$0xf0]  ;;  %2054 = vmatpush.bf16.msra.mxu1 %v5567_v52  ;;  %v6175_v10 = vor.u32 %v7987_v63, %v6172_v1  ;;  %v7951_v12 = vld [vmem:[%s8869_s29 + $0x4c4] sm:$0xf] }
  0xa1   : > { %2067 = vmatpush.bf16.msra.mxu2 %v5695_v53  ;;  %v6428_v7 = vld [vmem:[%s8869_s29 + $0x7f0] sm:$0xf0]  ;;  %v6303_v11 = vor.u32 %v8019_v2, %v6300_v3  ;;  %v7983_v14 = vld [vmem:[%s8869_s29 + $0x5c4] sm:$0xf] }
  0xa2   : > { %2080 = vmatpush.bf16.msra.mxu3 %v5823_v57  ;;  %v6028_v13 = vld [vmem:[%s8869_s29 + $0x4d0] sm:$0xf0]  ;;  %v6431_v15 = vor.u32 %v8051_v6, %v6428_v7  ;;  %v8015_v17 = vld [vmem:[%s8869_s29 + $0x6c4] sm:$0xf] }
  0xa3   : > { %2042 = vmatpush.bf16.msra.mxu0 %v5423_v0  ;;  %v6156_v16 = vld [vmem:[%s8869_s29 + $0x5d0] sm:$0xf0]  ;;  %v8047_v19 = vld [vmem:[%s8869_s29 + $0x7c4] sm:$0xf]  ;;  %v6031_v21 = vor.u32 %v7951_v12, %v6028_v13 }
  0xa4   : > { %v6284_v18 = vld [vmem:[%s8869_s29 + $0x6d0] sm:$0xf0]  ;;  %2055 = vmatpush.bf16.msra.mxu1 %v5551_v4  ;;  %v6159_v22 = vor.u32 %v7983_v14, %v6156_v16  ;;  %v7947_v24 = vld [vmem:[%s8869_s29 + $0x4a4] sm:$0xf] }
  0xa5   : > { %2068 = vmatpush.bf16.msra.mxu2 %v5679_v5  ;;  %v6412_v20 = vld [vmem:[%s8869_s29 + $0x7d0] sm:$0xf0]  ;;  %v6287_v23 = vor.u32 %v8015_v17, %v6284_v18  ;;  %v7979_v26 = vld [vmem:[%s8869_s29 + $0x5a4] sm:$0xf] }
  0xa6   : > { %2081 = vmatpush.bf16.msra.mxu3 %v5807_v8  ;;  %v6012_v25 = vld [vmem:[%s8869_s29 + $0x4b0] sm:$0xf0]  ;;  %v6415_v28 = vor.u32 %v8047_v19, %v6412_v20  ;;  %v8011_v31 = vld [vmem:[%s8869_s29 + $0x6a4] sm:$0xf]  ;;  %2043 = vmatmul.bf16.vlgmr.msra.gmra.mxu0 %v9008_v43 }
  0xa7   : > { %2087 = vmatpush.bf16.msrb.mxu0 %v6047_v9  ;;  %v6140_v29 = vld [vmem:[%s8869_s29 + $0x5b0] sm:$0xf0]  ;;  %v8043_v33 = vld [vmem:[%s8869_s29 + $0x7a4] sm:$0xf]  ;;  %v6015_v35 = vor.u32 %v7947_v24, %v6012_v25  ;;  %2056 = vmatmul.bf16.vlgmr.msra.gmra.mxu1 %v9010_v44 }
  0xa8   : > { %2100 = vmatpush.bf16.msrb.mxu1 %v6175_v10  ;;  %v6268_v32 = vld [vmem:[%s8869_s29 + $0x6b0] sm:$0xf0]  ;;  %2069 = vmatmul.bf16.vlgmr.msra.gmra.mxu2 %v8995_v27  ;;  %v6143_v36 = vor.u32 %v7979_v26, %v6140_v29  ;;  %v7943_v39 = vld [vmem:[%s8869_s29 + $0x484] sm:$0xf] }
  0xa9   : > { %2113 = vmatpush.bf16.msrb.mxu2 %v6303_v11  ;;  %v6396_v34 = vld [vmem:[%s8869_s29 + $0x7b0] sm:$0xf0]  ;;  %2082 = vmatmul.bf16.vlgmr.msra.gmra.mxu3 %v8999_v30  ;;  %v6271_v38 = vor.u32 %v8011_v31, %v6268_v32  ;;  %v7975_v45 = vld [vmem:[%s8869_s29 + $0x584] sm:$0xf] }
  0xaa   : > { %2126 = vmatpush.bf16.msrb.mxu3 %v6431_v15  ;;  %v5996_v42 = vld [vmem:[%s8869_s29 + $0x490] sm:$0xf0]  ;;  %v6399_v46 = vor.u32 %v8043_v33, %v6396_v34  ;;  %v8007_v48 = vld [vmem:[%s8869_s29 + $0x684] sm:$0xf] }
  0xab   : > { %2088 = vmatpush.bf16.msrb.mxu0 %v6031_v21  ;;  %v6124_v47 = vld [vmem:[%s8869_s29 + $0x590] sm:$0xf0]  ;;  %v8039_v50 = vld [vmem:[%s8869_s29 + $0x784] sm:$0xf]  ;;  %v5999_v53 = vor.u32 %v7943_v39, %v5996_v42  ;;  %v5538_v42 = vld [vmem:[%s8869_s29 + $0xe8] sm:$0xf] }
  0xac   : > { %2101 = vmatpush.bf16.msrb.mxu1 %v6159_v22  ;;  %v6252_v49 = vld [vmem:[%s8869_s29 + $0x690] sm:$0xf0]  ;;  %v6127_v54 = vor.u32 %v7975_v45, %v6124_v47  ;;  %v7939_v56 = vld [vmem:[%s8869_s29 + $0x464] sm:$0xf]  ;;  %v7830_v45 = vld [vmem:[%s8869_s29 + $0xf4] sm:$0xf0] }
  0xad   : > { %2114 = vmatpush.bf16.msrb.mxu2 %v6287_v23  ;;  %v6380_v52 = vld [vmem:[%s8869_s29 + $0x790] sm:$0xf0]  ;;  %v6255_v55 = vor.u32 %v8007_v48, %v6252_v49  ;;  %v7971_v58 = vld [vmem:[%s8869_s29 + $0x564] sm:$0xf]  ;;  %v7862_v48 = vld [vmem:[%s8869_s29 + $0x1f4] sm:$0xf0] }
  0xae   : > { %2127 = vmatpush.bf16.msrb.mxu3 %v6415_v28  ;;  %v5980_v57 = vld [vmem:[%s8869_s29 + $0x470] sm:$0xf0]  ;;  %v6383_v59 = vor.u32 %v8039_v50, %v6380_v52  ;;  %v8003_v61 = vld [vmem:[%s8869_s29 + $0x664] sm:$0xf]  ;;  %v5794_v49 = vld [vmem:[%s8869_s29 + $0x2e8] sm:$0xf] }
  0xaf   : > { %2089 = vmatpush.bf16.msrb.mxu0 %v6015_v35  ;;  %v6108_v60 = vld [vmem:[%s8869_s29 + $0x570] sm:$0xf0]  ;;  %v8035_v63 = vld [vmem:[%s8869_s29 + $0x764] sm:$0xf]  ;;  %v5983_v1 = vor.u32 %v7939_v56, %v5980_v57  ;;  %v7894_v50 = vld [vmem:[%s8869_s29 + $0x2f4] sm:$0xf0]  ;;  %v5539_v57 = vor.u32 %v7830_v45, %v5538_v42 }
  0xb0   : > { %2102 = vmatpush.bf16.msrb.mxu1 %v6143_v36  ;;  %v6236_v62 = vld [vmem:[%s8869_s29 + $0x670] sm:$0xf0]  ;;  %v6111_v2 = vor.u32 %v7971_v58, %v6108_v60  ;;  %v7935_v4 = vld [vmem:[%s8869_s29 + $0x444] sm:$0xf]  ;;  %v5522_v60 = vld [vmem:[%s8869_s29 + $0xc8] sm:$0xf] }
  0xb1   : > { %2115 = vmatpush.bf16.msrb.mxu2 %v6271_v38  ;;  %v6364_v0 = vld [vmem:[%s8869_s29 + $0x770] sm:$0xf0]  ;;  %v6239_v3 = vor.u32 %v8003_v61, %v6236_v62  ;;  %v7967_v6 = vld [vmem:[%s8869_s29 + $0x544] sm:$0xf]  ;;  %v7826_v61 = vld [vmem:[%s8869_s29 + $0xd4] sm:$0xf0] }
  0xb2   : > { %2128 = vmatpush.bf16.msrb.mxu3 %v6399_v46  ;;  %v5964_v5 = vld [vmem:[%s8869_s29 + $0x450] sm:$0xf0]  ;;  %v6367_v7 = vor.u32 %v8035_v63, %v6364_v0  ;;  %v7999_v9 = vld [vmem:[%s8869_s29 + $0x644] sm:$0xf]  ;;  %v5666_v46 = vld [vmem:[%s8869_s29 + $0x1e8] sm:$0xf] }
  0xb3   : > { %2090 = vmatpush.bf16.msrb.mxu0 %v5999_v53  ;;  %v6092_v8 = vld [vmem:[%s8869_s29 + $0x550] sm:$0xf0]  ;;  %v8031_v11 = vld [vmem:[%s8869_s29 + $0x744] sm:$0xf]  ;;  %v5967_v13 = vor.u32 %v7935_v4, %v5964_v5  ;;  %v5667_v58 = vor.u32 %v7862_v48, %v5666_v46  ;;  %v5650_v62 = vld [vmem:[%s8869_s29 + $0x1c8] sm:$0xf]  ;;  %v5523_v5 = vor.u32 %v7826_v61, %v5522_v60 }
  0xb4   : > { %2103 = vmatpush.bf16.msrb.mxu1 %v6127_v54  ;;  %v6220_v10 = vld [vmem:[%s8869_s29 + $0x650] sm:$0xf0]  ;;  %v6095_v14 = vor.u32 %v7967_v6, %v6092_v8  ;;  %v7931_v16 = vld [vmem:[%s8869_s29 + $0x424] sm:$0xf]  ;;  %v5922_v54 = vld [vmem:[%s8869_s29 + $0x3e8] sm:$0xf] }
  0xb5   : > { %2116 = vmatpush.bf16.msrb.mxu2 %v6255_v55  ;;  %v6348_v12 = vld [vmem:[%s8869_s29 + $0x750] sm:$0xf0]  ;;  %v6223_v15 = vor.u32 %v7999_v9, %v6220_v10  ;;  %v7963_v18 = vld [vmem:[%s8869_s29 + $0x524] sm:$0xf]  ;;  %v7926_v55 = vld [vmem:[%s8869_s29 + $0x3f4] sm:$0xf0] }
  0xb6   : > { %2129 = vmatpush.bf16.msrb.mxu3 %v6383_v59  ;;  %v5948_v17 = vld [vmem:[%s8869_s29 + $0x430] sm:$0xf0]  ;;  %v6351_v19 = vor.u32 %v8031_v11, %v6348_v12  ;;  %v7995_v21 = vld [vmem:[%s8869_s29 + $0x624] sm:$0xf]  ;;  %v5795_v59 = vor.u32 %v7894_v50, %v5794_v49  ;;  %v5923_v63 = vor.u32 %v7926_v55, %v5922_v54  ;;  %v7858_v0 = vld [vmem:[%s8869_s29 + $0x1d4] sm:$0xf0] }
  0xb7   : > { %2091 = vmatpush.bf16.msrb.mxu0 %v5983_v1  ;;  %v6076_v20 = vld [vmem:[%s8869_s29 + $0x530] sm:$0xf0]  ;;  %v8027_v23 = vld [vmem:[%s8869_s29 + $0x724] sm:$0xf]  ;;  %v5951_v25 = vor.u32 %v7931_v16, %v5948_v17  ;;  %v5778_v1 = vld [vmem:[%s8869_s29 + $0x2c8] sm:$0xf]  ;;  %v5651_v6 = vor.u32 %v7858_v0, %v5650_v62 }
  0xb8   : > { %2104 = vmatpush.bf16.msrb.mxu1 %v6111_v2  ;;  %v6204_v22 = vld [vmem:[%s8869_s29 + $0x630] sm:$0xf0]  ;;  %v7927_v26 = vld [vmem:[%s8869_s29 + $0x404] sm:$0xf]  ;;  %v6079_v29 = vor.u32 %v7963_v18, %v6076_v20  ;;  %v7890_v2 = vld [vmem:[%s8869_s29 + $0x2d4] sm:$0xf0] }
  0xb9   : > { %2117 = vmatpush.bf16.msrb.mxu2 %v6239_v3  ;;  %v6332_v24 = vld [vmem:[%s8869_s29 + $0x730] sm:$0xf0]  ;;  %v6207_v31 = vor.u32 %v7995_v21, %v6204_v22  ;;  %v7959_v32 = vld [vmem:[%s8869_s29 + $0x504] sm:$0xf]  ;;  %v5906_v3 = vld [vmem:[%s8869_s29 + $0x3c8] sm:$0xf] }
  0xba   : > { %2130 = vmatpush.bf16.msrb.mxu3 %v6367_v7  ;;  %v5932_v28 = vld [vmem:[%s8869_s29 + $0x410] sm:$0xf0]  ;;  %v7991_v34 = vld [vmem:[%s8869_s29 + $0x604] sm:$0xf]  ;;  %v6335_v35 = vor.u32 %v8027_v23, %v6332_v24  ;;  %v7922_v4 = vld [vmem:[%s8869_s29 + $0x3d4] sm:$0xf0]  ;;  %v5779_v7 = vor.u32 %v7890_v2, %v5778_v1 }
  0xbb   : > { %2092 = vmatpush.bf16.msrb.mxu0 %v5967_v13  ;;  %v6060_v33 = vld [vmem:[%s8869_s29 + $0x510] sm:$0xf0]  ;;  %v8023_v38 = vld [vmem:[%s8869_s29 + $0x704] sm:$0xf]  ;;  %v5935_v47 = vor.u32 %v7927_v26, %v5932_v28  ;;  %v5506_v8 = vld [vmem:[%s8869_s29 + $0xa8] sm:$0xf]  ;;  %v5907_v11 = vor.u32 %v7922_v4, %v5906_v3 }
  0xbc   : > { %2105 = vmatpush.bf16.msrb.mxu1 %v6095_v14  ;;  %v6188_v36 = vld [vmem:[%s8869_s29 + $0x610] sm:$0xf0]  ;;  %v6063_v52 = vor.u32 %v7959_v32, %v6060_v33  ;;  %v7822_v9 = vld [vmem:[%s8869_s29 + $0xb4] sm:$0xf0]  ;;  %v5634_v10 = vld [vmem:[%s8869_s29 + $0x1a8] sm:$0xf] }
  0xbd   : > { %2118 = vmatpush.bf16.msrb.mxu2 %v6223_v15  ;;  %v6316_v39 = vld [vmem:[%s8869_s29 + $0x710] sm:$0xf0]  ;;  %v6191_v53 = vor.u32 %v7991_v34, %v6188_v36  ;;  %v7854_v12 = vld [vmem:[%s8869_s29 + $0x1b4] sm:$0xf0]  ;;  %v5762_v13 = vld [vmem:[%s8869_s29 + $0x2a8] sm:$0xf]  ;;  %v5507_v17 = vor.u32 %v7822_v9, %v5506_v8 }
  0xbe   : > { %2131 = vmatpush.bf16.msrb.mxu3 %v6351_v19  ;;  %v6319_v56 = vor.u32 %v8023_v38, %v6316_v39  ;;  %v7886_v14 = vld [vmem:[%s8869_s29 + $0x2b4] sm:$0xf0]  ;;  %v5890_v15 = vld [vmem:[%s8869_s29 + $0x3a8] sm:$0xf]  ;;  %v5635_v18 = vor.u32 %v7854_v12, %v5634_v10 }
  0xbf   : > { %2093 = vmatpush.bf16.msrb.mxu0 %v5951_v25  ;;  %v7918_v16 = vld [vmem:[%s8869_s29 + $0x3b4] sm:$0xf0]  ;;  %v5763_v19 = vor.u32 %v7886_v14, %v5762_v13  ;;  %v5490_v20 = vld [vmem:[%s8869_s29 + $0x88] sm:$0xf] }
  0xc0   : > { %2106 = vmatpush.bf16.msrb.mxu1 %v6079_v29  ;;  %v7818_v21 = vld [vmem:[%s8869_s29 + $0x94] sm:$0xf0]  ;;  %v5618_v22 = vld [vmem:[%s8869_s29 + $0x188] sm:$0xf]  ;;  %v5891_v23 = vor.u32 %v7918_v16, %v5890_v15 }
  0xc1   : > { %2119 = vmatpush.bf16.msrb.mxu2 %v6207_v31  ;;  %v7850_v24 = vld [vmem:[%s8869_s29 + $0x194] sm:$0xf0]  ;;  %v5746_v25 = vld [vmem:[%s8869_s29 + $0x288] sm:$0xf]  ;;  %v5491_v31 = vor.u32 %v7818_v21, %v5490_v20 }
  0xc2   : > { %2132 = vmatpush.bf16.msrb.mxu3 %v6335_v35  ;;  %v7882_v26 = vld [vmem:[%s8869_s29 + $0x294] sm:$0xf0]  ;;  %v5874_v28 = vld [vmem:[%s8869_s29 + $0x388] sm:$0xf]  ;;  %v5619_v32 = vor.u32 %v7850_v24, %v5618_v22 }
  0xc3   : > { %2094 = vmatpush.bf16.msrb.mxu0 %v5935_v47  ;;  %v7914_v29 = vld [vmem:[%s8869_s29 + $0x394] sm:$0xf0]  ;;  %v5747_v33 = vor.u32 %v7882_v26, %v5746_v25  ;;  %v5474_v34 = vld [vmem:[%s8869_s29 + $0x68] sm:$0xf] }
  0xc4   : > { %2107 = vmatpush.bf16.msrb.mxu1 %v6063_v52  ;;  %v7814_v35 = vld [vmem:[%s8869_s29 + $0x74] sm:$0xf0]  ;;  %v5602_v36 = vld [vmem:[%s8869_s29 + $0x168] sm:$0xf]  ;;  %v5875_v38 = vor.u32 %v7914_v29, %v5874_v28 }
  0xc5   : > { %2120 = vmatpush.bf16.msrb.mxu2 %v6191_v53  ;;  %v7846_v39 = vld [vmem:[%s8869_s29 + $0x174] sm:$0xf0]  ;;  %v5730_v42 = vld [vmem:[%s8869_s29 + $0x268] sm:$0xf]  ;;  %v5475_v48 = vor.u32 %v7814_v35, %v5474_v34 }
  0xc6   : > { %2133 = vmatpush.bf16.msrb.mxu3 %v6319_v56  ;;  %2095 = vmatmul.bf16.vlgmr.msrb.gmra.mxu0 %v9061_v51  ;;  %v7878_v45 = vld [vmem:[%s8869_s29 + $0x274] sm:$0xf0]  ;;  %v5858_v46 = vld [vmem:[%s8869_s29 + $0x368] sm:$0xf]  ;;  %v5603_v49 = vor.u32 %v7846_v39, %v5602_v36 }
  0xc7   : > { %2139 = vmatpush.bf16.msra.mxu0 %v5539_v57  ;;  %2108 = vmatmul.bf16.vlgmr.msrb.gmra.mxu1 %v9055_v41  ;;  %v7910_v47 = vld [vmem:[%s8869_s29 + $0x374] sm:$0xf0]  ;;  %v5731_v50 = vor.u32 %v7878_v45, %v5730_v42  ;;  %v5458_v52 = vld [vmem:[%s8869_s29 + $0x48] sm:$0xf] }
  0xc8   : > { %2152 = vmatpush.bf16.msra.mxu1 %v5667_v58  ;;  %2121 = vmatmul.bf16.vlgmr.msrb.gmra.mxu2 %v9050_v37  ;;  %v7810_v53 = vld [vmem:[%s8869_s29 + $0x54] sm:$0xf0]  ;;  %v5586_v54 = vld [vmem:[%s8869_s29 + $0x148] sm:$0xf]  ;;  %v5859_v55 = vor.u32 %v7910_v47, %v5858_v46 }
  0xc9   : > { %2165 = vmatpush.bf16.msra.mxu2 %v5795_v59  ;;  %2134 = vmatmul.bf16.vlgmr.msrb.gmra.mxu3 %v9053_v40  ;;  %v7842_v56 = vld [vmem:[%s8869_s29 + $0x154] sm:$0xf0]  ;;  %v5714_v57 = vld [vmem:[%s8869_s29 + $0x248] sm:$0xf]  ;;  %v5459_v61 = vor.u32 %v7810_v53, %v5458_v52 }
  0xca   : > { %2178 = vmatpush.bf16.msra.mxu3 %v5923_v63  ;;  %v7874_v58 = vld [vmem:[%s8869_s29 + $0x254] sm:$0xf0]  ;;  %v5842_v59 = vld [vmem:[%s8869_s29 + $0x348] sm:$0xf]  ;;  %v5587_v62 = vor.u32 %v7842_v56, %v5586_v54 }
  0xcb   : > { %2140 = vmatpush.bf16.msra.mxu0 %v5523_v5  ;;  %v7906_v60 = vld [vmem:[%s8869_s29 + $0x354] sm:$0xf0]  ;;  %v5715_v63 = vor.u32 %v7874_v58, %v5714_v57  ;;  %v5442_v0 = vld [vmem:[%s8869_s29 + $0x28] sm:$0xf] }
  0xcc   : > { %2153 = vmatpush.bf16.msra.mxu1 %v5651_v6  ;;  %v7806_v1 = vld [vmem:[%s8869_s29 + $0x34] sm:$0xf0]  ;;  %v5570_v2 = vld [vmem:[%s8869_s29 + $0x128] sm:$0xf]  ;;  %v5843_v3 = vor.u32 %v7906_v60, %v5842_v59 }
  0xcd   : > { %2166 = vmatpush.bf16.msra.mxu2 %v5779_v7  ;;  %v7838_v4 = vld [vmem:[%s8869_s29 + $0x134] sm:$0xf0]  ;;  %v5698_v5 = vld [vmem:[%s8869_s29 + $0x228] sm:$0xf]  ;;  %v5443_v9 = vor.u32 %v7806_v1, %v5442_v0 }
  0xce   : > { %2179 = vmatpush.bf16.msra.mxu3 %v5907_v11  ;;  %v7870_v6 = vld [vmem:[%s8869_s29 + $0x234] sm:$0xf0]  ;;  %v5826_v7 = vld [vmem:[%s8869_s29 + $0x328] sm:$0xf]  ;;  %v5571_v12 = vor.u32 %v7838_v4, %v5570_v2 }
  0xcf   : > { %2141 = vmatpush.bf16.msra.mxu0 %v5507_v17  ;;  %v7902_v8 = vld [vmem:[%s8869_s29 + $0x334] sm:$0xf0]  ;;  %v5426_v10 = vld [vmem:[%s8869_s29 + $0x8] sm:$0xf]  ;;  %v5699_v13 = vor.u32 %v7870_v6, %v5698_v5 }
  0xd0   : > { %2154 = vmatpush.bf16.msra.mxu1 %v5635_v18  ;;  %v7802_v11 = vld [vmem:[%s8869_s29 + $0x14] sm:$0xf0]  ;;  %v5554_v14 = vld [vmem:[%s8869_s29 + $0x108] sm:$0xf]  ;;  %v5827_v17 = vor.u32 %v7902_v8, %v5826_v7 }
  0xd1   : > { %2167 = vmatpush.bf16.msra.mxu2 %v5763_v19  ;;  %v7834_v15 = vld [vmem:[%s8869_s29 + $0x114] sm:$0xf0]  ;;  %v5682_v16 = vld [vmem:[%s8869_s29 + $0x208] sm:$0xf]  ;;  %v5427_v24 = vor.u32 %v7802_v11, %v5426_v10 }
  0xd2   : > { %2180 = vmatpush.bf16.msra.mxu3 %v5891_v23  ;;  %v7866_v18 = vld [vmem:[%s8869_s29 + $0x214] sm:$0xf0]  ;;  %v5810_v19 = vld [vmem:[%s8869_s29 + $0x308] sm:$0xf]  ;;  %v5555_v29 = vor.u32 %v7834_v15, %v5554_v14 }
  0xd3   : > { %2142 = vmatpush.bf16.msra.mxu0 %v5491_v31  ;;  %v7898_v20 = vld [vmem:[%s8869_s29 + $0x314] sm:$0xf0]  ;;  %v6050_v21 = vld [vmem:[%s8869_s29 + $0x4e8] sm:$0xf]  ;;  %v5683_v31 = vor.u32 %v7866_v18, %v5682_v16 }
  0xd4   : > { %2155 = vmatpush.bf16.msra.mxu1 %v5619_v32  ;;  %v7958_v22 = vld [vmem:[%s8869_s29 + $0x4f4] sm:$0xf0]  ;;  %v6178_v23 = vld [vmem:[%s8869_s29 + $0x5e8] sm:$0xf]  ;;  %v5811_v34 = vor.u32 %v7898_v20, %v5810_v19 }
  0xd5   : > { %2168 = vmatpush.bf16.msra.mxu2 %v5747_v33  ;;  %v7990_v25 = vld [vmem:[%s8869_s29 + $0x5f4] sm:$0xf0]  ;;  %v6306_v26 = vld [vmem:[%s8869_s29 + $0x6e8] sm:$0xf]  ;;  %v6051_v35 = vor.u32 %v7958_v22, %v6050_v21 }
  0xd6   : > { %2181 = vmatpush.bf16.msra.mxu3 %v5875_v38  ;;  %v8022_v28 = vld [vmem:[%s8869_s29 + $0x6f4] sm:$0xf0]  ;;  %v6434_v32 = vld [vmem:[%s8869_s29 + $0x7e8] sm:$0xf]  ;;  %v6179_v36 = vor.u32 %v7990_v25, %v6178_v23 }
  0xd7   : > { %2143 = vmatpush.bf16.msra.mxu0 %v5475_v48  ;;  %v8054_v33 = vld [vmem:[%s8869_s29 + $0x7f4] sm:$0xf0]  ;;  %v6307_v38 = vor.u32 %v8022_v28, %v6306_v26  ;;  %v6034_v39 = vld [vmem:[%s8869_s29 + $0x4c8] sm:$0xf] }
  0xd8   : > { %2156 = vmatpush.bf16.msra.mxu1 %v5603_v49  ;;  %v7954_v42 = vld [vmem:[%s8869_s29 + $0x4d4] sm:$0xf0]  ;;  %v6162_v45 = vld [vmem:[%s8869_s29 + $0x5c8] sm:$0xf]  ;;  %v6435_v46 = vor.u32 %v8054_v33, %v6434_v32 }
  0xd9   : > { %2169 = vmatpush.bf16.msra.mxu2 %v5731_v50  ;;  %v7986_v47 = vld [vmem:[%s8869_s29 + $0x5d4] sm:$0xf0]  ;;  %v6290_v48 = vld [vmem:[%s8869_s29 + $0x6c8] sm:$0xf]  ;;  %v6035_v53 = vor.u32 %v7954_v42, %v6034_v39 }
  0xda   : > { %2182 = vmatpush.bf16.msra.mxu3 %v5859_v55  ;;  %v8018_v49 = vld [vmem:[%s8869_s29 + $0x6d4] sm:$0xf0]  ;;  %v6418_v50 = vld [vmem:[%s8869_s29 + $0x7c8] sm:$0xf]  ;;  %v6163_v54 = vor.u32 %v7986_v47, %v6162_v45 }
  0xdb   : > { %2144 = vmatpush.bf16.msra.mxu0 %v5459_v61  ;;  %v8050_v52 = vld [vmem:[%s8869_s29 + $0x7d4] sm:$0xf0]  ;;  %v6291_v55 = vor.u32 %v8018_v49, %v6290_v48  ;;  %v6018_v56 = vld [vmem:[%s8869_s29 + $0x4a8] sm:$0xf] }
  0xdc   : > { %2157 = vmatpush.bf16.msra.mxu1 %v5587_v62  ;;  %v7950_v57 = vld [vmem:[%s8869_s29 + $0x4b4] sm:$0xf0]  ;;  %v6146_v58 = vld [vmem:[%s8869_s29 + $0x5a8] sm:$0xf]  ;;  %v6419_v59 = vor.u32 %v8050_v52, %v6418_v50 }
  0xdd   : > { %2170 = vmatpush.bf16.msra.mxu2 %v5715_v63  ;;  %v7982_v60 = vld [vmem:[%s8869_s29 + $0x5b4] sm:$0xf0]  ;;  %v6274_v61 = vld [vmem:[%s8869_s29 + $0x6a8] sm:$0xf]  ;;  %v6019_v1 = vor.u32 %v7950_v57, %v6018_v56 }
  0xde   : > { %2183 = vmatpush.bf16.msra.mxu3 %v5843_v3  ;;  %v8014_v62 = vld [vmem:[%s8869_s29 + $0x6b4] sm:$0xf0]  ;;  %v6402_v63 = vld [vmem:[%s8869_s29 + $0x7a8] sm:$0xf]  ;;  %v6147_v2 = vor.u32 %v7982_v60, %v6146_v58 }
  0xdf   : > { %2145 = vmatpush.bf16.msra.mxu0 %v5443_v9  ;;  %v8046_v0 = vld [vmem:[%s8869_s29 + $0x7b4] sm:$0xf0]  ;;  %v6275_v3 = vor.u32 %v8014_v62, %v6274_v61  ;;  %v6002_v4 = vld [vmem:[%s8869_s29 + $0x488] sm:$0xf] }
  0xe0   : > { %2158 = vmatpush.bf16.msra.mxu1 %v5571_v12  ;;  %v7946_v5 = vld [vmem:[%s8869_s29 + $0x494] sm:$0xf0]  ;;  %v6130_v6 = vld [vmem:[%s8869_s29 + $0x588] sm:$0xf]  ;;  %v6403_v7 = vor.u32 %v8046_v0, %v6402_v63 }
  0xe1   : > { %2171 = vmatpush.bf16.msra.mxu2 %v5699_v13  ;;  %v7978_v8 = vld [vmem:[%s8869_s29 + $0x594] sm:$0xf0]  ;;  %v6258_v9 = vld [vmem:[%s8869_s29 + $0x688] sm:$0xf]  ;;  %v6003_v13 = vor.u32 %v7946_v5, %v6002_v4 }
  0xe2   : > { %2184 = vmatpush.bf16.msra.mxu3 %v5827_v17  ;;  %v8010_v10 = vld [vmem:[%s8869_s29 + $0x694] sm:$0xf0]  ;;  %v6386_v11 = vld [vmem:[%s8869_s29 + $0x788] sm:$0xf]  ;;  %v6131_v14 = vor.u32 %v7978_v8, %v6130_v6  ;;  %v7828_v6 = vld [vmem:[%s8869_s29 + $0xec] sm:$0xf] }
  0xe3   : > { %2146 = vmatpush.bf16.msra.mxu0 %v5427_v24  ;;  %v8042_v12 = vld [vmem:[%s8869_s29 + $0x794] sm:$0xf0]  ;;  %v6259_v15 = vor.u32 %v8010_v10, %v6258_v9  ;;  %v5986_v16 = vld [vmem:[%s8869_s29 + $0x468] sm:$0xf]  ;;  %v7860_v8 = vld [vmem:[%s8869_s29 + $0x1ec] sm:$0xf] }
  0xe4   : > { %2159 = vmatpush.bf16.msra.mxu1 %v5555_v29  ;;  %v7942_v17 = vld [vmem:[%s8869_s29 + $0x474] sm:$0xf0]  ;;  %v6114_v18 = vld [vmem:[%s8869_s29 + $0x568] sm:$0xf]  ;;  %v6387_v19 = vor.u32 %v8042_v12, %v6386_v11  ;;  %v5668_v12 = vld [vmem:[%s8869_s29 + $0x1f8] sm:$0xf0] }
  0xe5   : > { %2172 = vmatpush.bf16.msra.mxu2 %v5683_v31  ;;  %v7974_v20 = vld [vmem:[%s8869_s29 + $0x574] sm:$0xf0]  ;;  %v6242_v21 = vld [vmem:[%s8869_s29 + $0x668] sm:$0xf]  ;;  %v5987_v25 = vor.u32 %v7942_v17, %v5986_v16 }
  0xe6   : > { %2185 = vmatpush.bf16.msra.mxu3 %v5811_v34  ;;  %2147 = vmatmul.bf16.vlgmr.msra.gmra.mxu0 %v9008_v43  ;;  %v8006_v22 = vld [vmem:[%s8869_s29 + $0x674] sm:$0xf0]  ;;  %v6370_v23 = vld [vmem:[%s8869_s29 + $0x768] sm:$0xf]  ;;  %v6115_v26 = vor.u32 %v7974_v20, %v6114_v18  ;;  %v7924_v18 = vld [vmem:[%s8869_s29 + $0x3ec] sm:$0xf] }
  0xe7   : > { %2191 = vmatpush.bf16.msrb.mxu0 %v6051_v35  ;;  %2160 = vmatmul.bf16.vlgmr.msra.gmra.mxu1 %v9010_v44  ;;  %v8038_v24 = vld [vmem:[%s8869_s29 + $0x774] sm:$0xf0]  ;;  %v6243_v28 = vor.u32 %v8006_v22, %v6242_v21  ;;  %v5970_v29 = vld [vmem:[%s8869_s29 + $0x448] sm:$0xf] }
  0xe8   : > { %2204 = vmatpush.bf16.msrb.mxu1 %v6179_v36  ;;  %2173 = vmatmul.bf16.vlgmr.msra.gmra.mxu2 %v8995_v27  ;;  %v7938_v31 = vld [vmem:[%s8869_s29 + $0x454] sm:$0xf0]  ;;  %v6098_v32 = vld [vmem:[%s8869_s29 + $0x548] sm:$0xf]  ;;  %v6371_v33 = vor.u32 %v8038_v24, %v6370_v23  ;;  %v5671_v24 = vor.u32 %v7860_v8, %v5668_v12  ;;  %v7812_v12 = vld [vmem:[%s8869_s29 + $0x6c] sm:$0xf] }
  0xe9   : > { %2217 = vmatpush.bf16.msrb.mxu2 %v6307_v38  ;;  %2186 = vmatmul.bf16.vlgmr.msra.gmra.mxu3 %v8999_v30  ;;  %v7970_v34 = vld [vmem:[%s8869_s29 + $0x554] sm:$0xf0]  ;;  %v6226_v35 = vld [vmem:[%s8869_s29 + $0x648] sm:$0xf]  ;;  %v5971_v42 = vor.u32 %v7938_v31, %v5970_v29  ;;  %v7856_v29 = vld [vmem:[%s8869_s29 + $0x1cc] sm:$0xf] }
  0xea   : > { %2230 = vmatpush.bf16.msrb.mxu3 %v6435_v46  ;;  %v8002_v36 = vld [vmem:[%s8869_s29 + $0x654] sm:$0xf0]  ;;  %v6354_v38 = vld [vmem:[%s8869_s29 + $0x748] sm:$0xf]  ;;  %v6099_v45 = vor.u32 %v7970_v34, %v6098_v32  ;;  %v5652_v32 = vld [vmem:[%s8869_s29 + $0x1d8] sm:$0xf0] }
  0xeb   : > { %2192 = vmatpush.bf16.msrb.mxu0 %v6035_v53  ;;  %v8034_v39 = vld [vmem:[%s8869_s29 + $0x754] sm:$0xf0]  ;;  %v6227_v46 = vor.u32 %v8002_v36, %v6226_v35  ;;  %v5954_v47 = vld [vmem:[%s8869_s29 + $0x428] sm:$0xf]  ;;  %v1940_v9 = vpop.f32.mrf.mxu0  ;;  %v5780_v34 = vld [vmem:[%s8869_s29 + $0x2d8] sm:$0xf0] }
  0xec   : > { %2205 = vmatpush.bf16.msrb.mxu1 %v6163_v54  ;;  %v7934_v48 = vld [vmem:[%s8869_s29 + $0x434] sm:$0xf0]  ;;  %v6082_v49 = vld [vmem:[%s8869_s29 + $0x528] sm:$0xf]  ;;  %v6355_v50 = vor.u32 %v8034_v39, %v6354_v38  ;;  %v7920_v36 = vld [vmem:[%s8869_s29 + $0x3cc] sm:$0xf] }
  0xed   : > { %2218 = vmatpush.bf16.msrb.mxu2 %v6291_v55  ;;  %v7966_v52 = vld [vmem:[%s8869_s29 + $0x534] sm:$0xf0]  ;;  %v6210_v53 = vld [vmem:[%s8869_s29 + $0x628] sm:$0xf]  ;;  %v5955_v57 = vor.u32 %v7934_v48, %v5954_v47  ;;  %v5908_v38 = vld [vmem:[%s8869_s29 + $0x3d8] sm:$0xf0] }
  0xee   : > { %2231 = vmatpush.bf16.msrb.mxu3 %v6419_v59  ;;  %v7998_v54 = vld [vmem:[%s8869_s29 + $0x634] sm:$0xf0]  ;;  %v6338_v55 = vld [vmem:[%s8869_s29 + $0x728] sm:$0xf]  ;;  %v6083_v60 = vor.u32 %v7966_v52, %v6082_v49  ;;  %v7820_v47 = vld [vmem:[%s8869_s29 + $0xac] sm:$0xf] }
  0xef   : > { %2193 = vmatpush.bf16.msrb.mxu0 %v6019_v1  ;;  %v8030_v56 = vld [vmem:[%s8869_s29 + $0x734] sm:$0xf0]  ;;  %v5938_v58 = vld [vmem:[%s8869_s29 + $0x408] sm:$0xf]  ;;  %v6211_v61 = vor.u32 %v7998_v54, %v6210_v53  ;;  %v5508_v48 = vld [vmem:[%s8869_s29 + $0xb8] sm:$0xf0]  ;;  %v5911_v53 = vor.u32 %v7920_v36, %v5908_v38 }
  0xf0   : > { %2206 = vmatpush.bf16.msrb.mxu1 %v6147_v2  ;;  %v7930_v59 = vld [vmem:[%s8869_s29 + $0x414] sm:$0xf0]  ;;  %v6066_v62 = vld [vmem:[%s8869_s29 + $0x508] sm:$0xf]  ;;  %v6339_v2 = vor.u32 %v8030_v56, %v6338_v55  ;;  %v7852_v49 = vld [vmem:[%s8869_s29 + $0x1ac] sm:$0xf] }
  0xf1   : > { %2219 = vmatpush.bf16.msrb.mxu2 %v6275_v3  ;;  %v7962_v63 = vld [vmem:[%s8869_s29 + $0x514] sm:$0xf0]  ;;  %v6194_v0 = vld [vmem:[%s8869_s29 + $0x608] sm:$0xf]  ;;  %v5939_v11 = vor.u32 %v7930_v59, %v5938_v58  ;;  %v5636_v54 = vld [vmem:[%s8869_s29 + $0x1b8] sm:$0xf0]  ;;  %v5511_v59 = vor.u32 %v7820_v47, %v5508_v48 }
  0xf2   : > { %2232 = vmatpush.bf16.msrb.mxu3 %v6403_v7  ;;  %v7994_v3 = vld [vmem:[%s8869_s29 + $0x614] sm:$0xf0]  ;;  %v6322_v4 = vld [vmem:[%s8869_s29 + $0x708] sm:$0xf]  ;;  %v5540_v7 = vld [vmem:[%s8869_s29 + $0xf8] sm:$0xf0]  ;;  %v6067_v16 = vor.u32 %v7962_v63, %v6066_v62 }
  0xf3   : > { %2194 = vmatpush.bf16.msrb.mxu0 %v6003_v13  ;;  %v8026_v5 = vld [vmem:[%s8869_s29 + $0x714] sm:$0xf0]  ;;  %v7892_v13 = vld [vmem:[%s8869_s29 + $0x2ec] sm:$0xf]  ;;  %v6195_v17 = vor.u32 %v7994_v3, %v6194_v0  ;;  %v5543_v21 = vor.u32 %v7828_v6, %v5540_v7  ;;  %v5764_v56 = vld [vmem:[%s8869_s29 + $0x2b8] sm:$0xf0] }
  0xf4   : > { %2207 = vmatpush.bf16.msrb.mxu1 %v6131_v14  ;;  %v5796_v14 = vld [vmem:[%s8869_s29 + $0x2f8] sm:$0xf0]  ;;  %v6323_v20 = vor.u32 %v8026_v5, %v6322_v4  ;;  %v7884_v55 = vld [vmem:[%s8869_s29 + $0x2ac] sm:$0xf] }
  0xf5   : > { %2220 = vmatpush.bf16.msrb.mxu2 %v6259_v15  ;;  %v5892_v58 = vld [vmem:[%s8869_s29 + $0x3b8] sm:$0xf0]  ;;  %v5767_v62 = vor.u32 %v7884_v55, %v5764_v56  ;;  %v7816_v63 = vld [vmem:[%s8869_s29 + $0x8c] sm:$0xf] }
  0xf6   : > { %2233 = vmatpush.bf16.msrb.mxu3 %v6387_v19  ;;  %v5924_v19 = vld [vmem:[%s8869_s29 + $0x3f8] sm:$0xf0]  ;;  %v7880_v4 = vld [vmem:[%s8869_s29 + $0x28c] sm:$0xf] }
  0xf7   : > { %2195 = vmatpush.bf16.msrb.mxu0 %v5987_v25  ;;  %v5799_v25 = vor.u32 %v7892_v13, %v5796_v14  ;;  %v5927_v31 = vor.u32 %v7924_v18, %v5924_v19  ;;  %v5492_v0 = vld [vmem:[%s8869_s29 + $0x98] sm:$0xf0]  ;;  %v7912_v6 = vld [vmem:[%s8869_s29 + $0x38c] sm:$0xf] }
  0xf8   : > { %2208 = vmatpush.bf16.msrb.mxu1 %v6115_v26  ;;  %v1953_v1 = vpop.f32.mrf.mxu1  ;;  %v7824_v26 = vld [vmem:[%s8869_s29 + $0xcc] sm:$0xf]  ;;  %v5620_v3 = vld [vmem:[%s8869_s29 + $0x198] sm:$0xf0]  ;;  %v5495_v8 = vor.u32 %v7816_v63, %v5492_v0 }
  0xf9   : > { %2221 = vmatpush.bf16.msrb.mxu2 %v6243_v28  ;;  %v1966_v10 = vpop.f32.mrf.mxu2  ;;  %v1954_v15 = vadd.f32 %v1953_v1, %v1940_v9  ;;  %v1979_v23 = vpop.f32.mrf.mxu3  ;;  %v5524_v28 = vld [vmem:[%s8869_s29 + $0xd8] sm:$0xf0]  ;;  %v7848_v1 = vld [vmem:[%s8869_s29 + $0x18c] sm:$0xf] }
  0xfa   : > { %2234 = vmatpush.bf16.msrb.mxu3 %v6371_v33  ;;  %v7888_v33 = vld [vmem:[%s8869_s29 + $0x2cc] sm:$0xf]  ;;  %v5748_v5 = vld [vmem:[%s8869_s29 + $0x298] sm:$0xf0] }
  0xfb   : > { %2196 = vmatpush.bf16.msrb.mxu0 %v5971_v42  ;;  %v1967_v22 = vadd.f32 %v1966_v10, %v1954_v15  ;;  %v5527_v42 = vor.u32 %v7824_v26, %v5524_v28  ;;  %v5876_v7 = vld [vmem:[%s8869_s29 + $0x398] sm:$0xf0]  ;;  %v5623_v10 = vor.u32 %v7848_v1, %v5620_v3  ;;  %v7844_v14 = vld [vmem:[%s8869_s29 + $0x16c] sm:$0xf] }
  0xfc   : > { %2209 = vmatpush.bf16.msrb.mxu1 %v6099_v45  ;;  %v5655_v45 = vor.u32 %v7856_v29, %v5652_v32  ;;  %v5476_v13 = vld [vmem:[%s8869_s29 + $0x78] sm:$0xf0]  ;;  %v5879_v15 = vor.u32 %v7912_v6, %v5876_v7  ;;  %v7908_v19 = vld [vmem:[%s8869_s29 + $0x36c] sm:$0xf] }
  0xfd   : > { %2222 = vmatpush.bf16.msrb.mxu2 %v6227_v46  ;;  %v9329_v35 = vadd.f32 %v1979_v23, %v1967_v22  ;;  %v5783_v46 = vor.u32 %v7888_v33, %v5780_v34  ;;  %v5732_v18 = vld [vmem:[%s8869_s29 + $0x278] sm:$0xf0]  ;;  %v5479_v22 = vor.u32 %v7812_v12, %v5476_v13  ;;  %v7808_v26 = vld [vmem:[%s8869_s29 + $0x4c] sm:$0xf] }
  0xfe   : > { %2235 = vmatpush.bf16.msrb.mxu3 %v6355_v50  ;;  %v1942_v50 = vpop.f32.mrf.mxu0  ;;  %v5460_v28 = vld [vmem:[%s8869_s29 + $0x58] sm:$0xf0]  ;;  %v7840_v29 = vld [vmem:[%s8869_s29 + $0x14c] sm:$0xf] }
  0xff   : > { %2197 = vmatpush.bf16.msrb.mxu0 %v5955_v57  ;;  %v7916_v57 = vld [vmem:[%s8869_s29 + $0x3ac] sm:$0xf]  ;;  %v5588_v34 = vld [vmem:[%s8869_s29 + $0x158] sm:$0xf0] }
 0x100   : > { %2210 = vmatpush.bf16.msrb.mxu1 %v6083_v60  ;;  %v1955_v39 = vpop.f32.mrf.mxu1  ;;  %v5716_v36 = vld [vmem:[%s8869_s29 + $0x258] sm:$0xf0]  ;;  %v5591_v47 = vor.u32 %v7840_v29, %v5588_v34  ;;  %v7868_v55 = vld [vmem:[%s8869_s29 + $0x22c] sm:$0xf] }
 0x101   : > { %2223 = vmatpush.bf16.msrb.mxu2 %v6211_v61  ;;  %v1968_v52 = vpop.f32.mrf.mxu2  ;;  %v1981_v60 = vpop.f32.mrf.mxu3  ;;  %v5639_v61 = vor.u32 %v7852_v49, %v5636_v54  ;;  %v7904_v39 = vld [vmem:[%s8869_s29 + $0x34c] sm:$0xf]  ;;  %v5444_v50 = vld [vmem:[%s8869_s29 + $0x38] sm:$0xf0] }
 0x102   : > { %2236 = vmatpush.bf16.msrb.mxu3 %v6339_v2  ;;  %v5895_v2 = vor.u32 %v7916_v57, %v5892_v58  ;;  %v7804_v49 = vld [vmem:[%s8869_s29 + $0x2c] sm:$0xf]  ;;  %v5572_v54 = vld [vmem:[%s8869_s29 + $0x138] sm:$0xf0] }
 0x103   : > { %2198 = vmatpush.bf16.msrb.mxu0 %v5939_v11  ;;  %v5751_v11 = vor.u32 %v7880_v4, %v5748_v5  ;;  %v7836_v52 = vld [vmem:[%s8869_s29 + $0x12c] sm:$0xf]  ;;  %v5700_v56 = vld [vmem:[%s8869_s29 + $0x238] sm:$0xf0]  ;;  %v5447_v60 = vor.u32 %v7804_v49, %v5444_v50 }
 0x104   : > { %2211 = vmatpush.bf16.msrb.mxu1 %v6067_v16  ;;  %v5604_v16 = vld [vmem:[%s8869_s29 + $0x178] sm:$0xf0]  ;;  %v7900_v57 = vld [vmem:[%s8869_s29 + $0x32c] sm:$0xf]  ;;  %v5575_v63 = vor.u32 %v7836_v52, %v5572_v54  ;;  %v5703_v0 = vor.u32 %v7868_v55, %v5700_v56 }
 0x105   : > { %2224 = vmatpush.bf16.msrb.mxu2 %v6195_v17  ;;  %v7876_v17 = vld [vmem:[%s8869_s29 + $0x26c] sm:$0xf]  ;;  %v5828_v58 = vld [vmem:[%s8869_s29 + $0x338] sm:$0xf0] }
 0x106   : > { %2237 = vmatpush.bf16.msrb.mxu3 %v6323_v20  ;;  %2199 = vmatmul.bf16.vlgmr.msrb.gmra.mxu0 %v9061_v51  ;;  %v5860_v20 = vld [vmem:[%s8869_s29 + $0x378] sm:$0xf0]  ;;  %v7832_v1 = vld [vmem:[%s8869_s29 + $0x10c] sm:$0xf]  ;;  %v5831_v5 = vor.u32 %v7900_v57, %v5828_v58 }
 0x107   : > { %2243 = vmatpush.bf16.msra.mxu0 %v5543_v21  ;;  %2212 = vmatmul.bf16.vlgmr.msrb.gmra.mxu1 %v9055_v41  ;;  %v1992_v21 = vpop.f32.mrf.mxu0  ;;  %v5863_v32 = vor.u32 %v7908_v19, %v5860_v20  ;;  %v7864_v3 = vld [vmem:[%s8869_s29 + $0x20c] sm:$0xf]  ;;  %v5684_v6 = vld [vmem:[%s8869_s29 + $0x218] sm:$0xf0] }
 0x108   : > { %2256 = vmatpush.bf16.msra.mxu1 %v5671_v24  ;;  %2225 = vmatmul.bf16.vlgmr.msrb.gmra.mxu2 %v9050_v37  ;;  %v2005_v9 = vpop.f32.mrf.mxu1  ;;  %v1993_v23 = vadd.f32 %v1992_v21, %v9329_v35  ;;  %v5607_v24 = vor.u32 %v7844_v14, %v5604_v16  ;;  %v7872_v35 = vld [vmem:[%s8869_s29 + $0x24c] sm:$0xf]  ;;  %v6180_v14 = vld [vmem:[%s8869_s29 + $0x5f8] sm:$0xf0] }
 0x109   : > { %2269 = vmatpush.bf16.msra.mxu2 %v5799_v25  ;;  %2238 = vmatmul.bf16.vlgmr.msrb.gmra.mxu3 %v9053_v40  ;;  %v5735_v25 = vor.u32 %v7876_v17, %v5732_v18  ;;  %v5719_v48 = vor.u32 %v7872_v35, %v5716_v36  ;;  %v7896_v7 = vld [vmem:[%s8869_s29 + $0x30c] sm:$0xf]  ;;  %v6308_v16 = vld [vmem:[%s8869_s29 + $0x6f8] sm:$0xf0]  ;;  %v5687_v18 = vor.u32 %v7864_v3, %v5684_v6 }
 0x10a   : > { %2282 = vmatpush.bf16.msra.mxu3 %v5927_v31  ;;  %v9367_v33 = vadd.f32 %v2005_v9, %v1993_v23  ;;  %v7988_v12 = vld [vmem:[%s8869_s29 + $0x5ec] sm:$0xf]  ;;  %v6436_v20 = vld [vmem:[%s8869_s29 + $0x7f8] sm:$0xf0] }
 0x10b   : > { %2244 = vmatpush.bf16.msra.mxu0 %v5527_v42  ;;  %v5844_v42 = vld [vmem:[%s8869_s29 + $0x358] sm:$0xf0]  ;;  %v8052_v19 = vld [vmem:[%s8869_s29 + $0x7ec] sm:$0xf]  ;;  %v6183_v23 = vor.u32 %v7988_v12, %v6180_v14 }
 0x10c   : > { %2257 = vmatpush.bf16.msra.mxu1 %v5655_v45  ;;  %v9372_v38 = vpop.f32.mrf.mxu3  ;;  %v5463_v45 = vor.u32 %v7808_v26, %v5460_v28  ;;  %v6036_v26 = vld [vmem:[%s8869_s29 + $0x4d8] sm:$0xf0]  ;;  %v7984_v28 = vld [vmem:[%s8869_s29 + $0x5cc] sm:$0xf]  ;;  %v6439_v29 = vor.u32 %v8052_v19, %v6436_v20 }
 0x10d   : > { %2270 = vmatpush.bf16.msra.mxu2 %v5783_v46  ;;  %v9365_v31 = vpop.f32.mrf.mxu2  ;;  %v8016_v34 = vld [vmem:[%s8869_s29 + $0x6cc] sm:$0xf]  ;;  %v6292_v35 = vld [vmem:[%s8869_s29 + $0x6d8] sm:$0xf0] }
 0x10e   : > { %2283 = vmatpush.bf16.msra.mxu3 %v5911_v53  ;;  %v5847_v53 = vor.u32 %v7904_v39, %v5844_v42  ;;  %v8048_v36 = vld [vmem:[%s8869_s29 + $0x7cc] sm:$0xf]  ;;  %v6420_v39 = vld [vmem:[%s8869_s29 + $0x7d8] sm:$0xf0] }
 0x10f   : > { %2245 = vmatpush.bf16.msra.mxu0 %v5511_v59  ;;  %v1994_v59 = vpop.f32.mrf.mxu0  ;;  %v7980_v49 = vld [vmem:[%s8869_s29 + $0x5ac] sm:$0xf]  ;;  %v6423_v50 = vor.u32 %v8048_v36, %v6420_v39  ;;  %v6148_v52 = vld [vmem:[%s8869_s29 + $0x5b8] sm:$0xf0] }
 0x110   : > { %2258 = vmatpush.bf16.msra.mxu1 %v5639_v61  ;;  %v2007_v46 = vpop.f32.mrf.mxu1  ;;  %v7800_v61 = vld [vmem:[%s8869_s29 + $0xc] sm:$0xf]  ;;  %v6276_v54 = vld [vmem:[%s8869_s29 + $0x6b8] sm:$0xf0] }
 0x111   : > { %2271 = vmatpush.bf16.msra.mxu2 %v5767_v62  ;;  %v5428_v62 = vld [vmem:[%s8869_s29 + $0x18] sm:$0xf0]  ;;  %v6295_v46 = vor.u32 %v8016_v34, %v6292_v35  ;;  %v8044_v55 = vld [vmem:[%s8869_s29 + $0x7ac] sm:$0xf] }
 0x112   : > { %2284 = vmatpush.bf16.msra.mxu3 %v5895_v2  ;;  %v5556_v2 = vld [vmem:[%s8869_s29 + $0x118] sm:$0xf0]  ;;  %v5431_v13 = vor.u32 %v7800_v61, %v5428_v62  ;;  %v7944_v59 = vld [vmem:[%s8869_s29 + $0x48c] sm:$0xf] }
 0x113   : > { %2246 = vmatpush.bf16.msra.mxu0 %v5495_v8  ;;  %v5812_v8 = vld [vmem:[%s8869_s29 + $0x318] sm:$0xf0]  ;;  %v5559_v17 = vor.u32 %v7832_v1, %v5556_v2  ;;  %v7976_v61 = vld [vmem:[%s8869_s29 + $0x58c] sm:$0xf] }
 0x114   : > { %2259 = vmatpush.bf16.msra.mxu1 %v5623_v10  ;;  %v2033_v9 = vpop.f32.mrf.mxu3  ;;  %v7956_v10 = vld [vmem:[%s8869_s29 + $0x4ec] sm:$0xf]  ;;  %v5815_v21 = vor.u32 %v7896_v7, %v5812_v8  ;;  %v6404_v56 = vld [vmem:[%s8869_s29 + $0x7b8] sm:$0xf0] }
 0x115   : > { %2272 = vmatpush.bf16.msra.mxu2 %v5751_v11  ;;  %v2020_v4 = vpop.f32.mrf.mxu2  ;;  %v6052_v11 = vld [vmem:[%s8869_s29 + $0x4f8] sm:$0xf0]  ;;  %v7972_v7 = vld [vmem:[%s8869_s29 + $0x56c] sm:$0xf] }
 0x116   : > { %2285 = vmatpush.bf16.msra.mxu3 %v5879_v15  ;;  %v8020_v15 = vld [vmem:[%s8869_s29 + $0x6ec] sm:$0xf]  ;;  %v6132_v62 = vld [vmem:[%s8869_s29 + $0x598] sm:$0xf0] }
 0x117   : > { %2247 = vmatpush.bf16.msra.mxu0 %v5479_v22  ;;  %v6055_v22 = vor.u32 %v7956_v10, %v6052_v11  ;;  %v6388_v1 = vld [vmem:[%s8869_s29 + $0x798] sm:$0xf0]  ;;  %v6135_v3 = vor.u32 %v7976_v61, %v6132_v62  ;;  %v8004_v11 = vld [vmem:[%s8869_s29 + $0x66c] sm:$0xf] }
 0x118   : > { %2260 = vmatpush.bf16.msra.mxu1 %v5607_v24  ;;  %v6311_v24 = vor.u32 %v8020_v15, %v6308_v16  ;;  %v5988_v6 = vld [vmem:[%s8869_s29 + $0x478] sm:$0xf0]  ;;  %v7968_v20 = vld [vmem:[%s8869_s29 + $0x54c] sm:$0xf] }
 0x119   : > { %2273 = vmatpush.bf16.msra.mxu2 %v5735_v25  ;;  %v7952_v25 = vld [vmem:[%s8869_s29 + $0x4cc] sm:$0xf]  ;;  %v6116_v10 = vld [vmem:[%s8869_s29 + $0x578] sm:$0xf0] }
 0x11a   : > { %2286 = vmatpush.bf16.msra.mxu3 %v5863_v32  ;;  %v6164_v32 = vld [vmem:[%s8869_s29 + $0x5d8] sm:$0xf0]  ;;  %v6039_v42 = vor.u32 %v7952_v25, %v6036_v26  ;;  %v6119_v16 = vor.u32 %v7972_v7, %v6116_v10  ;;  %v7932_v39 = vld [vmem:[%s8869_s29 + $0x42c] sm:$0xf] }
 0x11b   : > { %2248 = vmatpush.bf16.msra.mxu0 %v5463_v45  ;;  %v6167_v45 = vor.u32 %v7984_v28, %v6164_v32  ;;  %v6244_v12 = vld [vmem:[%s8869_s29 + $0x678] sm:$0xf0]  ;;  %v8032_v28 = vld [vmem:[%s8869_s29 + $0x74c] sm:$0xf] }
 0x11c   : > { %2261 = vmatpush.bf16.msra.mxu1 %v5591_v47  ;;  %v7948_v47 = vld [vmem:[%s8869_s29 + $0x4ac] sm:$0xf]  ;;  %v6372_v14 = vld [vmem:[%s8869_s29 + $0x778] sm:$0xf0] }
 0x11d   : > { %2274 = vmatpush.bf16.msra.mxu2 %v5719_v48  ;;  %v6020_v48 = vld [vmem:[%s8869_s29 + $0x4b8] sm:$0xf0] }
 0x11e   : > { %2287 = vmatpush.bf16.msra.mxu3 %v5847_v53  ;;  %v8012_v53 = vld [vmem:[%s8869_s29 + $0x6ac] sm:$0xf]  ;;  %v6023_v57 = vor.u32 %v7948_v47, %v6020_v48  ;;  %v5972_v19 = vld [vmem:[%s8869_s29 + $0x458] sm:$0xf0] }
 0x11f   : > { %2249 = vmatpush.bf16.msra.mxu0 %v5447_v60  ;;  %v6279_v58 = vor.u32 %v8012_v53, %v6276_v54  ;;  %v6004_v60 = vld [vmem:[%s8869_s29 + $0x498] sm:$0xf0] }
 0x120   : > { %2262 = vmatpush.bf16.msra.mxu1 %v5575_v63  ;;  %v6260_v63 = vld [vmem:[%s8869_s29 + $0x698] sm:$0xf0] }
 0x121   : > { %2275 = vmatpush.bf16.msra.mxu2 %v5703_v0  ;;  %v8040_v0 = vld [vmem:[%s8869_s29 + $0x78c] sm:$0xf]  ;;  %v6228_v25 = vld [vmem:[%s8869_s29 + $0x658] sm:$0xf0] }
 0x122   : > { %2288 = vmatpush.bf16.msra.mxu3 %v5831_v5  ;;  %v7940_v5 = vld [vmem:[%s8869_s29 + $0x46c] sm:$0xf]  ;;  %v6391_v9 = vor.u32 %v8040_v0, %v6388_v1  ;;  %v6084_v48 = vld [vmem:[%s8869_s29 + $0x538] sm:$0xf0] }
 0x123   : > { %2250 = vmatpush.bf16.msra.mxu0 %v5431_v13  ;;  %v9428_v2 = vpop.f32.mrf.mxu0  ;;  %v8036_v13 = vld [vmem:[%s8869_s29 + $0x76c] sm:$0xf]  ;;  %v5991_v15 = vor.u32 %v7940_v5, %v5988_v6  ;;  %v6340_v53 = vld [vmem:[%s8869_s29 + $0x738] sm:$0xf0] }
 0x124   : > { %2263 = vmatpush.bf16.msra.mxu1 %v5559_v17  ;;  %v9433_v8 = vpop.f32.mrf.mxu1  ;;  %v6247_v17 = vor.u32 %v8004_v11, %v6244_v12  ;;  %v6068_v61 = vld [vmem:[%s8869_s29 + $0x518] sm:$0xf0] }
 0x125   : > { %2276 = vmatpush.bf16.msra.mxu2 %v5687_v18  ;;  %v7936_v18 = vld [vmem:[%s8869_s29 + $0x44c] sm:$0xf]  ;;  %v6196_v62 = vld [vmem:[%s8869_s29 + $0x618] sm:$0xf0]  ;;  %v2058_v5 = vadd.f32 %v9433_v8, %v9428_v2  ;;  %v2019_v2 = vadd.f32 %v9365_v31, %v9367_v33 }
 0x126   : > { %2289 = vmatpush.bf16.msra.mxu3 %v5815_v21  ;;  %2251 = vmatmul.bf16.vlgmr.msra.gmra.mxu0 %v9008_v43  ;;  %v6407_v43 = vor.u32 %v8044_v55, %v6404_v56  ;;  %v5975_v32 = vor.u32 %v7936_v18, %v5972_v19  ;;  %v6324_v0 = vld [vmem:[%s8869_s29 + $0x718] sm:$0xf0] }
 0x127   : > { %2295 = vmatpush.bf16.msrb.mxu0 %v6055_v22  ;;  %2264 = vmatmul.bf16.vlgmr.msra.gmra.mxu1 %v9010_v44  ;;  %v6007_v44 = vor.u32 %v7944_v59, %v6004_v60  ;;  %v6375_v22 = vor.u32 %v8036_v13, %v6372_v14 }
 0x128   : > { %2308 = vmatpush.bf16.msrb.mxu1 %v6183_v23  ;;  %2277 = vmatmul.bf16.vlgmr.msra.gmra.mxu2 %v8995_v27  ;;  %v6151_v27 = vor.u32 %v7980_v49, %v6148_v52  ;;  %v6100_v23 = vld [vmem:[%s8869_s29 + $0x558] sm:$0xf0]  ;;  %v7996_v49 = vld [vmem:[%s8869_s29 + $0x62c] sm:$0xf] }
 0x129   : > { %2321 = vmatpush.bf16.msrb.mxu2 %v6311_v24  ;;  %2290 = vmatmul.bf16.vlgmr.msra.gmra.mxu3 %v8999_v30  ;;  %v8008_v30 = vld [vmem:[%s8869_s29 + $0x68c] sm:$0xf]  ;;  %v6103_v35 = vor.u32 %v7968_v20, %v6100_v23 }
 0x12a   : > { %2334 = vmatpush.bf16.msrb.mxu3 %v6439_v29  ;;  %v6263_v4 = vor.u32 %v8008_v30, %v6260_v63  ;;  %v8000_v24 = vld [vmem:[%s8869_s29 + $0x64c] sm:$0xf]  ;;  %v6356_v29 = vld [vmem:[%s8869_s29 + $0x758] sm:$0xf0] }
 0x12b   : > { %2296 = vmatpush.bf16.msrb.mxu0 %v6039_v42  ;;  %v2070_v21 = vpop.f32.mrf.mxu2  ;;  %v2046_v34 = vpop.f32.mrf.mxu0  ;;  %v6231_v36 = vor.u32 %v8000_v24, %v6228_v25  ;;  %v5956_v42 = vld [vmem:[%s8869_s29 + $0x438] sm:$0xf0]  ;;  %v6359_v47 = vor.u32 %v8032_v28, %v6356_v29  ;;  %v8028_v52 = vld [vmem:[%s8869_s29 + $0x72c] sm:$0xf] }
 0x12c   : > { %2309 = vmatpush.bf16.msrb.mxu1 %v6167_v45  ;;  %v2083_v26 = vpop.f32.mrf.mxu3  ;;  %v7964_v45 = vld [vmem:[%s8869_s29 + $0x52c] sm:$0xf]  ;;  %v5959_v54 = vor.u32 %v7932_v39, %v5956_v42  ;;  %v6343_v60 = vor.u32 %v8028_v52, %v6340_v53  ;;  %v2071_v6 = vadd.f32 %v2070_v21, %v2058_v5 }
 0x12d   : > { %2322 = vmatpush.bf16.msrb.mxu2 %v6295_v46  ;;  %v2059_v46 = vpop.f32.mrf.mxu1  ;;  %v6087_v55 = vor.u32 %v7964_v45, %v6084_v48  ;;  %v8024_v63 = vld [vmem:[%s8869_s29 + $0x70c] sm:$0xf] }
 0x12e   : > { %2335 = vmatpush.bf16.msrb.mxu3 %v6423_v50  ;;  %v6212_v50 = vld [vmem:[%s8869_s29 + $0x638] sm:$0xf0]  ;;  %v2084_v7 = vadd.f32 %v2083_v26, %v2071_v6 }
 0x12f   : > { %2297 = vmatpush.bf16.msrb.mxu0 %v6023_v57  ;;  %v6215_v56 = vor.u32 %v7996_v49, %v6212_v50  ;;  %v7928_v57 = vld [vmem:[%s8869_s29 + $0x40c] sm:$0xf]  ;;  %v355_v6 = vld [vmem:[#allocation2 + $0x8] sm:$0xff] }
 0x130   : > { %2310 = vmatpush.bf16.msrb.mxu1 %v6151_v27  ;;  %v5940_v27 = vld [vmem:[%s8869_s29 + $0x418] sm:$0xf0] }
 0x131   : > { %2323 = vmatpush.bf16.msrb.mxu2 %v6279_v58  ;;  %v7960_v58 = vld [vmem:[%s8869_s29 + $0x50c] sm:$0xf]  ;;  %v5943_v1 = vor.u32 %v7928_v57, %v5940_v27 }
 0x132   : > { %2336 = vmatpush.bf16.msrb.mxu3 %v6407_v43  ;;  %v7992_v43 = vld [vmem:[%s8869_s29 + $0x60c] sm:$0xf] }
 0x133   : > { %2298 = vmatpush.bf16.msrb.mxu0 %v6007_v44  ;;  %v2072_v59 = vpop.f32.mrf.mxu2  ;;  %v6071_v44 = vor.u32 %v7960_v58, %v6068_v61 }
 0x134   : > { %2311 = vmatpush.bf16.msrb.mxu1 %v6135_v3  ;;  %v2085_v30 = vpop.f32.mrf.mxu3  ;;  %v6199_v3 = vor.u32 %v7992_v43, %v6196_v62 }
 0x135   : > { %2324 = vmatpush.bf16.msrb.mxu2 %v6263_v4  ;;  %v6327_v4 = vor.u32 %v8024_v63, %v6324_v0 }
 0x136   : > { %2337 = vmatpush.bf16.msrb.mxu3 %v6391_v9 }
 0x137   : > { %2299 = vmatpush.bf16.msrb.mxu0 %v5991_v15 }
 0x138   : > { %2312 = vmatpush.bf16.msrb.mxu1 %v6119_v16 }
 0x139   : > { %2325 = vmatpush.bf16.msrb.mxu2 %v6247_v17 }
 0x13a   : > { %2338 = vmatpush.bf16.msrb.mxu3 %v6375_v22 }
 0x13b   : > { %2300 = vmatpush.bf16.msrb.mxu0 %v5975_v32 }
 0x13c   : > { %2313 = vmatpush.bf16.msrb.mxu1 %v6103_v35 }
 0x13d   : > { %2326 = vmatpush.bf16.msrb.mxu2 %v6231_v36 }
 0x13e   : > { %2339 = vmatpush.bf16.msrb.mxu3 %v6359_v47 }
 0x13f   : > { %2301 = vmatpush.bf16.msrb.mxu0 %v5959_v54 }
 0x140   : > { %2314 = vmatpush.bf16.msrb.mxu1 %v6087_v55 }
 0x141   : > { %2327 = vmatpush.bf16.msrb.mxu2 %v6215_v56 }
 0x142   : > { %2340 = vmatpush.bf16.msrb.mxu3 %v6343_v60 }
 0x143   : > { %2302 = vmatpush.bf16.msrb.mxu0 %v5943_v1  ;;  %v2096_v9 = vpop.f32.mrf.mxu0 }
 0x144   : > { %2315 = vmatpush.bf16.msrb.mxu1 %v6071_v44  ;;  %v2097_v10 = vadd.f32 %v2096_v9, %v2084_v7  ;;  %v2109_v11 = vpop.f32.mrf.mxu1 }
 0x145   : > { %2328 = vmatpush.bf16.msrb.mxu2 %v6199_v3 }
 0x146   : > { %2341 = vmatpush.bf16.msrb.mxu3 %v6327_v4  ;;  %2303 = vmatmul.bf16.vlgmr.msrb.gmra.mxu0 %v9061_v51  ;;  %v2110_v12 = vadd.f32 %v2109_v11, %v2097_v10 }
 0x147   : > { %2316 = vmatmul.bf16.vlgmr.msrb.gmra.mxu1 %v9055_v41  ;;  %v2032_v41 = vadd.f32 %v9372_v38, %v2019_v2 }
 0x148   : > { %2329 = vmatmul.bf16.vlgmr.msrb.gmra.mxu2 %v9050_v37  ;;  %v354_v37 = vld [vmem:[#allocation2] sm:$0xff] }
 0x149   : > { %2342 = vmatmul.bf16.vlgmr.msrb.gmra.mxu3 %v9053_v40 }
 0x14b   : > { %v2122_v13 = vpop.f32.mrf.mxu2  ;;  %v2098_v16 = vpop.f32.mrf.mxu0 }
 0x14c   : > { %v2123_v8 = vadd.f32 %v2122_v13, %v2110_v12  ;;  %v2135_v14 = vpop.f32.mrf.mxu3  ;;  %v2111_v51 = vpop.f32.mrf.mxu1 }
 0x14e   : > { %v2136_v15 = vadd.f32 %v2135_v14, %v2123_v8 }
 0x150   : > { %v2351_v17 = vrot.slane %v2136_v15, 4 }
 0x152   : > { %v2354_v40 = vsel %vm2353_vm0, %v2032_v41, %v2351_v17 }
 0x153   : > { %v2358_v18 = vadd.f32 %v2354_v40, %v354_v37  ;;  %v2124_v19 = vpop.f32.mrf.mxu2 }
 0x154   : > { %v2137_v20 = vpop.f32.mrf.mxu3 }
 0x155   : > { %2360 = vst [vmem:[#allocation2] sm:$0xff] %v2358_v18 }
 0x163   : > { %v2148_v21 = vpop.f32.mrf.mxu0 }
 0x164   : > { %v2161_v22 = vpop.f32.mrf.mxu1 }
 0x165   : > { %v2162_v23 = vadd.f32 %v2161_v22, %v2148_v21 }
 0x16b   : > { %v2174_v31 = vpop.f32.mrf.mxu2  ;;  %v2150_v26 = vpop.f32.mrf.mxu0 }
 0x16c   : > { %v2175_v33 = vadd.f32 %v2174_v31, %v2162_v23  ;;  %v2187_v24 = vpop.f32.mrf.mxu3  ;;  %v2163_v28 = vpop.f32.mrf.mxu1 }
 0x16e   : > { %v2188_v25 = vadd.f32 %v2187_v24, %v2175_v33 }
 0x173   : > { %v2176_v29 = vpop.f32.mrf.mxu2 }
 0x174   : > { %v2189_v32 = vpop.f32.mrf.mxu3 }
 0x183   : > { %v2200_v38 = vpop.f32.mrf.mxu0 }
 0x184   : > { %v2201_v34 = vadd.f32 %v2200_v38, %v2188_v25  ;;  %v2213_v35 = vpop.f32.mrf.mxu1 }
 0x186   : > { %v2214_v36 = vadd.f32 %v2213_v35, %v2201_v34 }
 0x18b   : > { %v2226_v39 = vpop.f32.mrf.mxu2  ;;  %v2202_v45 = vpop.f32.mrf.mxu0 }
 0x18c   : > { %v2239_v42 = vpop.f32.mrf.mxu3  ;;  %v2215_v46 = vpop.f32.mrf.mxu1  ;;  %v2227_v63 = vadd.f32 %v2226_v39, %v2214_v36 }
 0x18e   : > { %v2240_v5 = vadd.f32 %v2239_v42, %v2227_v63 }
 0x193   : > { %v2228_v47 = vpop.f32.mrf.mxu2 }
 0x194   : > { %v2241_v48 = vpop.f32.mrf.mxu3 }
 0x1a3   : > { %v2252_v49 = vpop.f32.mrf.mxu0 }
 0x1a4   : > { %v2265_v50 = vpop.f32.mrf.mxu1 }
 0x1a5   : > { %v2266_v27 = vadd.f32 %v2265_v50, %v2252_v49 }
 0x1ab   : > { %v2278_v52 = vpop.f32.mrf.mxu2  ;;  %v2254_v54 = vpop.f32.mrf.mxu0 }
 0x1ac   : > { %v2291_v53 = vpop.f32.mrf.mxu3  ;;  %v2267_v55 = vpop.f32.mrf.mxu1  ;;  %v2279_v58 = vadd.f32 %v2278_v52, %v2266_v27 }
 0x1ae   : > { %v2292_v59 = vadd.f32 %v2291_v53, %v2279_v58 }
 0x1b3   : > { %v2280_v56 = vpop.f32.mrf.mxu2 }
 0x1b4   : > { %v2293_v57 = vpop.f32.mrf.mxu3 }
 0x1c3   : > { %v2304_v60 = vpop.f32.mrf.mxu0 }
 0x1c4   : > { %v2317_v61 = vpop.f32.mrf.mxu1  ;;  %v2305_v43 = vadd.f32 %v2304_v60, %v2292_v59 }
 0x1c6   : > { %v2318_v62 = vadd.f32 %v2317_v61, %v2305_v43 }
 0x1cb   : > { %v2330_v30 = vpop.f32.mrf.mxu2  ;;  %v2306_v44 = vpop.f32.mrf.mxu0 }
 0x1cc   : > { %v2331_v0 = vadd.f32 %v2330_v30, %v2318_v62  ;;  %v2343_v1 = vpop.f32.mrf.mxu3  ;;  %v2319_v3 = vpop.f32.mrf.mxu1 }
 0x1ce   : > { %v2344_v4 = vadd.f32 %v2343_v1, %v2331_v0 }
 0x1d0   : > { %v2352_v7 = vrot.slane %v2344_v4, 4 }
 0x1d1   : > { %2365 = sbr.rel (%p6440_p1) target bundleno = 1883 (0x75b), region = 72 }
 0x1d2   : > { %v2355_v9 = vsel %vm2353_vm0, %v2240_v5, %v2352_v7 }
 0x1d3   : > { %v2359_v10 = vadd.f32 %v2355_v9, %v355_v6  ;;  %v2332_v11 = vpop.f32.mrf.mxu2 }
 0x1d4   : > { %v2345_v12 = vpop.f32.mrf.mxu3 }
 0x1d5   : > { %2361 = vst [vmem:[#allocation2 + $0x8] sm:$0xff] %v2359_v10 }
 0x1d6   : > { %v2368_v13 = vld [vmem:[#allocation8] ss:$8 sm:$0xf]  ;;  %v2382_v20 = vld [vmem:[#allocation6] sm:$0x3]  ;;  %vm2392_vm1 = vcmask 31744  }
 0x1d7   : > { %v2370_v2 = vperm.slane %v2368_v13, 0  ;;  %v2371_v8 = vperm.slane %v2368_v13, 1  ;;  %v2372_v14 = vperm.slane %v2368_v13, 2  ;;  %v2373_v15 = vperm.slane %v2368_v13, 3  ;;  %v2366_v16 = vld [vmem:[#allocation2] sm:$0xff] }
 0x1d8   : > { %vm2488_vm2 = vcmask 1041408   ;;  %v8733_v39 = vmov 512.0   ;;  %v6563_v47 = vld [vmem:[#allocation9 + $0x230] sm:$0xf]  ;;  %v8085_v48 = vld [vmem:[#allocation9 + $0x254] sm:$0xf0] }
 0x1d9   : > { %v2374_v51 = vrot.slane %v2371_v8, 4  ;;  %v2375_v37 = vrot.slane %v2373_v15, 4  ;;  %8488 = vrcp.f32 %v8733_v39  ;;  %v6691_v49 = vld [vmem:[#allocation9 + $0x4b0] sm:$0xf]  ;;  %v6564_v50 = vor.u32 %v8085_v48, %v6563_v47  ;;  %v8117_v52 = vld [vmem:[#allocation9 + $0x4d4] sm:$0xf0] }
 0x1da   : > { %v6819_v53 = vld [vmem:[#allocation9 + $0x730] sm:$0xf]  ;;  %v8149_v54 = vld [vmem:[#allocation9 + $0x754] sm:$0xf0]  ;;  %v6692_v55 = vor.u32 %v8117_v52, %v6691_v49  ;;  %v6547_v58 = vld [vmem:[#allocation9 + $0x1e0] sm:$0xf] }
 0x1db   : > { %v2376_v17 = vsel %vm2353_vm0, %v2370_v2, %v2374_v51  ;;  %v2377_v18 = vsel %vm2353_vm0, %v2372_v14, %v2375_v37  ;;  %v6820_v56 = vor.u32 %v8149_v54, %v6819_v53  ;;  %v6947_v57 = vld [vmem:[#allocation9 + $0x9b0] sm:$0xf]  ;;  %v8181_v27 = vld [vmem:[#allocation9 + $0x9d4] sm:$0xf0]  ;;  %3348 = vmatpush.bf16.msra.mxu0 %v6564_v50  ;;  %v8081_v60 = vld [vmem:[#allocation9 + $0x204] sm:$0xf0] }
 0x1dc   : > { %v2367_v41 = vld [vmem:[#allocation2 + $0x8] sm:$0xff]  ;;  %v2380_v40 = vadd.f32 %v2376_v17, %v2366_v16  ;;  %v6948_v59 = vor.u32 %v8181_v27, %v6947_v57  ;;  %v6675_v61 = vld [vmem:[#allocation9 + $0x460] sm:$0xf]  ;;  %v8113_v43 = vld [vmem:[#allocation9 + $0x484] sm:$0xf0]  ;;  %3361 = vmatpush.bf16.msra.mxu1 %v6692_v55  ;;  %v6548_v62 = vor.u32 %v8081_v60, %v6547_v58 }
 0x1dd   : > { %v2381_v19 = vadd.f32 %v2377_v18, %v2367_v41  ;;  %v6676_v30 = vor.u32 %v8113_v43, %v6675_v61  ;;  %v6803_v63 = vld [vmem:[#allocation9 + $0x6e0] sm:$0xf]  ;;  %v8145_v0 = vld [vmem:[#allocation9 + $0x704] sm:$0xf0]  ;;  %v6531_v4 = vld [vmem:[#allocation9 + $0x190] sm:$0xf] }
 0x1de   : > { %2385 = vst [vmem:[#allocation1] ss:$2 sm:$0xff] %v2380_v40  ;;  %v6931_v1 = vld [vmem:[#allocation9 + $0x960] sm:$0xf]  ;;  %v6804_v44 = vor.u32 %v8145_v0, %v6803_v63  ;;  %v8177_v3 = vld [vmem:[#allocation9 + $0x984] sm:$0xf0] }
 0x1df   : > { %2387 = vst [vmem:[#allocation1 + $0x10] ss:$2 sm:$0xff] %v2381_v19  ;;  %v9498_v42 = vpop.eup %8488  ;;  %v8077_v5 = vld [vmem:[#allocation9 + $0x1b4] sm:$0xf0]  ;;  %v6932_v6 = vor.u32 %v8177_v3, %v6931_v1  ;;  %v6659_v7 = vld [vmem:[#allocation9 + $0x410] sm:$0xf]  ;;  %3349 = vmatpush.bf16.msra.mxu0 %v6548_v62 }
 0x1e0   : > { %v2499_v45 = vmul.f32 512.0, %v9498_v42  ;;  %v8109_v9 = vld [vmem:[#allocation9 + $0x434] sm:$0xf0]  ;;  %v6787_v10 = vld [vmem:[#allocation9 + $0x690] sm:$0xf]  ;;  %v6532_v11 = vor.u32 %v8077_v5, %v6531_v4  ;;  %3362 = vmatpush.bf16.msra.mxu1 %v6676_v30  ;;  %vm2503_vm3 = vweird.f32 %v9498_v42 }
 0x1e1   : > { %v8141_v12 = vld [vmem:[#allocation9 + $0x6b4] sm:$0xf0]  ;;  %v6915_v13 = vld [vmem:[#allocation9 + $0x910] sm:$0xf]  ;;  %v6660_v14 = vor.u32 %v8109_v9, %v6659_v7  ;;  %v6515_v16 = vld [vmem:[#allocation9 + $0x140] sm:$0xf] }
 0x1e2   : > { %v2500_v46 = vsub.f32 1.0, %v2499_v45  ;;  %v8173_v2 = vld [vmem:[#allocation9 + $0x934] sm:$0xf0]  ;;  %v6788_v15 = vor.u32 %v8141_v12, %v6787_v10  ;;  %v8073_v51 = vld [vmem:[#allocation9 + $0x164] sm:$0xf0] }
 0x1e3   : > { %v6643_v41 = vld [vmem:[#allocation9 + $0x3c0] sm:$0xf]  ;;  %v6916_v37 = vor.u32 %v8173_v2, %v6915_v13  ;;  %v8105_v17 = vld [vmem:[#allocation9 + $0x3e4] sm:$0xf0]  ;;  %3350 = vmatpush.bf16.msra.mxu0 %v6532_v11  ;;  %v6883_v39 = vld [vmem:[#allocation9 + $0x870] sm:$0xf] }
 0x1e4   : > { %v2501_v8 = vmul.f32 %v9498_v42, %v2500_v46  ;;  %v6771_v40 = vld [vmem:[#allocation9 + $0x640] sm:$0xf]  ;;  %v8137_v18 = vld [vmem:[#allocation9 + $0x664] sm:$0xf0]  ;;  %3363 = vmatpush.bf16.msra.mxu1 %v6660_v14  ;;  %v8165_v45 = vld [vmem:[#allocation9 + $0x894] sm:$0xf0] }
 0x1e5   : > { %v2388_v21 = vld.sshfl [vmem:[#allocation1] sm:$0xff pattern:$0x75316420]  ;;  %v2389_v22 = vld.sshfl [vmem:[#allocation1 + $0x8] sm:$0xff pattern:$0x75316420] }
 0x1e6   : > { %6441 = vmatpush.msk.msra.mxu2 %vm2353_vm0, %v2388_v21  ;;  %6443 = vmatpush.msk.msra.mxu3 %vm2353_vm0, %v2389_v22  ;;  %v2390_v23 = vld.sshfl [vmem:[#allocation1 + $0x10] sm:$0xff pattern:$0x75316420]  ;;  %v2391_v31 = vld.sshfl [vmem:[#allocation1 + $0x18] sm:$0xff pattern:$0x75316420]  ;;  %v6516_v21 = vor.u32 %v8073_v51, %v6515_v16  ;;  %v2502_v22 = vadd.f32 %v9498_v42, %v2501_v8 }
 0x1e7   : > { %6442 = vmatmul.msk.f32.vlgmr.msra.gmra.mxu2 %vm2392_vm1, %v2382_v20  ;;  %6444 = vmatmul.msk.f32.vlgmr.msra.gmra.mxu3 %vm2392_vm1, %v2382_v20  ;;  %v6899_v19 = vld [vmem:[#allocation9 + $0x8c0] sm:$0xf]  ;;  %v8065_v48 = vld [vmem:[#allocation9 + $0xc4] sm:$0xf0]  ;;  %v6467_v30 = vld [vmem:[#allocation9 + $0x50] sm:$0xf] }
 0x1e8   : > { %6445 = vmatpush.msk.msrb.mxu2 %vm2353_vm0, %v2390_v23  ;;  %6447 = vmatpush.msk.msrb.mxu3 %vm2353_vm0, %v2391_v31  ;;  %v6644_v23 = vor.u32 %v8105_v17, %v6643_v41  ;;  %v6772_v31 = vor.u32 %v8137_v18, %v6771_v40  ;;  %v6483_v47 = vld [vmem:[#allocation9 + $0xa0] sm:$0xf]  ;;  %v9505_v49 = vsel %vm2503_vm3, %v9498_v42, %v2502_v22  ;;  %v8097_v54 = vld [vmem:[#allocation9 + $0x344] sm:$0xf0]  ;;  %v8061_v63 = vld [vmem:[#allocation9 + $0x74] sm:$0xf0] }
 0x1e9   : > { %3351 = vmatpush.bf16.msra.mxu0 %v6516_v21  ;;  %v6611_v53 = vld [vmem:[#allocation9 + $0x320] sm:$0xf]  ;;  %v8129_v57 = vld [vmem:[#allocation9 + $0x5c4] sm:$0xf0]  ;;  %v6484_v61 = vor.u32 %v8065_v48, %v6483_v47  ;;  %v6595_v0 = vld [vmem:[#allocation9 + $0x2d0] sm:$0xf] }
 0x1ea   : > { %3374 = vmatpush.bf16.msra.mxu2 %v6820_v56  ;;  %3387 = vmatpush.bf16.msra.mxu3 %v6948_v59  ;;  %v6739_v55 = vld [vmem:[#allocation9 + $0x5a0] sm:$0xf]  ;;  %v6884_v56 = vor.u32 %v8165_v45, %v6883_v39  ;;  %v8161_v58 = vld [vmem:[#allocation9 + $0x844] sm:$0xf0]  ;;  %v6612_v42 = vor.u32 %v8097_v54, %v6611_v53  ;;  %v8093_v5 = vld [vmem:[#allocation9 + $0x2f4] sm:$0xf0] }
 0x1eb   : > { %3364 = vmatpush.bf16.msra.mxu1 %v6644_v23  ;;  %v6867_v27 = vld [vmem:[#allocation9 + $0x820] sm:$0xf]  ;;  %v6740_v43 = vor.u32 %v8129_v57, %v6739_v55  ;;  %v8125_v7 = vld [vmem:[#allocation9 + $0x574] sm:$0xf0]  ;;  %v6851_v9 = vld [vmem:[#allocation9 + $0x7d0] sm:$0xf] }
 0x1ec   : > { %v6868_v62 = vor.u32 %v8161_v58, %v6867_v27  ;;  %v8157_v10 = vld [vmem:[#allocation9 + $0x7f4] sm:$0xf0]  ;;  %v6451_v17 = vld [vmem:[#allocation9] sm:$0xf]  ;;  %v8057_v40 = vld [vmem:[#allocation9 + $0x24] sm:$0xf0] }
 0x1ed   : > { %v6852_v14 = vor.u32 %v8157_v10, %v6851_v9  ;;  %v6579_v18 = vld [vmem:[#allocation9 + $0x280] sm:$0xf]  ;;  %v8121_v22 = vld [vmem:[#allocation9 + $0x524] sm:$0xf0]  ;;  %v6821_v47 = vld [vmem:[#allocation9 + $0x758] sm:$0xf0] }
 0x1ee   : > { %3375 = vmatpush.bf16.msra.mxu2 %v6804_v44  ;;  %3388 = vmatpush.bf16.msra.mxu3 %v6932_v6  ;;  %v6723_v6 = vld [vmem:[#allocation9 + $0x550] sm:$0xf]  ;;  %v6707_v21 = vld [vmem:[#allocation9 + $0x500] sm:$0xf]  ;;  %v8179_v48 = vld [vmem:[#allocation9 + $0x9b4] sm:$0xf] }
 0x1ef   : > { %6446 = vmatmul.msk.f32.vlgmr.msrb.gmra.mxu2 %vm2392_vm1, %v2382_v20  ;;  %6448 = vmatmul.msk.f32.vlgmr.msrb.gmra.mxu3 %vm2392_vm1, %v2382_v20  ;;  %v8169_v20 = vld [vmem:[#allocation9 + $0x8e4] sm:$0xf0]  ;;  %v6724_v12 = vor.u32 %v8125_v7, %v6723_v6  ;;  %v8079_v53 = vld [vmem:[#allocation9 + $0x1e4] sm:$0xf]  ;;  %v6549_v54 = vld [vmem:[#allocation9 + $0x208] sm:$0xf0] }
 0x1f0   : > { %v8111_v57 = vld [vmem:[#allocation9 + $0x464] sm:$0xf]  ;;  %v6677_v27 = vld [vmem:[#allocation9 + $0x488] sm:$0xf0]  ;;  %v6661_v6 = vld [vmem:[#allocation9 + $0x438] sm:$0xf0] }
 0x1f1   : > { %v8143_v58 = vld [vmem:[#allocation9 + $0x6e4] sm:$0xf]  ;;  %v8139_v7 = vld [vmem:[#allocation9 + $0x694] sm:$0xf]  ;;  %v6789_v9 = vld [vmem:[#allocation9 + $0x6b8] sm:$0xf0] }
 0x1f2   : > { %3376 = vmatpush.bf16.msra.mxu2 %v6788_v15  ;;  %3389 = vmatpush.bf16.msra.mxu3 %v6916_v37 }
 0x1f6   : > { %3377 = vmatpush.bf16.msra.mxu2 %v6772_v31  ;;  %v6708_v31 = vor.u32 %v8121_v22, %v6707_v21  ;;  %v6629_v21 = vld [vmem:[#allocation9 + $0x398] sm:$0xf0]  ;;  %v8131_v22 = vld [vmem:[#allocation9 + $0x5f4] sm:$0xf] }
 0x26a   : > { %v9482_v33 = vpop.f32.mrf.mxu2  ;;  %v9484_v24 = vpop.f32.mrf.mxu3 }
 0x26b   : > { %v2489_v25 = vsel %vm2488_vm2, %v9482_v33, 0.0  ;;  %v2490_v26 = vsel %vm2488_vm2, %v9484_v24, 0.0 }
 0x26c   : > { %v2491_v28 = vadd.f32 %v2490_v26, %v2489_v25  ;;  %v6499_v25 = vld [vmem:[#allocation9 + $0xf0] sm:$0xf]  ;;  %v8069_v26 = vld [vmem:[#allocation9 + $0x114] sm:$0xf0] }
 0x26d   : > { %v6500_v46 = vor.u32 %v8069_v26, %v6499_v25  ;;  %v6835_v25 = vld [vmem:[#allocation9 + $0x780] sm:$0xf]  ;;  %v8153_v26 = vld [vmem:[#allocation9 + $0x7a4] sm:$0xf0] }
 0x26f   : > { %3352 = vmatpush.bf16.msra.mxu0 %v6500_v46  ;;  %v8147_v46 = vld [vmem:[#allocation9 + $0x734] sm:$0xf] }
 0x272   : > { %v9490_v29 = vpop.f32.mrf.mxu2  ;;  %v9492_v32 = vpop.f32.mrf.mxu3 }
 0x273   : > { %v2492_v38 = vsel %vm2488_vm2, %v9490_v29, 0.0  ;;  %v2494_v34 = vsel %vm2488_vm2, %v9492_v32, 0.0  ;;  %3353 = vmatpush.bf16.msra.mxu0 %v6484_v61  ;;  %v8175_v61 = vld [vmem:[#allocation9 + $0x964] sm:$0xf] }
 0x274   : > { %v2493_v35 = vadd.f32 %v2492_v38, %v2491_v28  ;;  %v6627_v28 = vld [vmem:[#allocation9 + $0x370] sm:$0xf]  ;;  %v6900_v38 = vor.u32 %v8169_v20, %v6899_v19  ;;  %v6452_v19 = vor.u32 %v8057_v40, %v6451_v17  ;;  %v8089_v20 = vld [vmem:[#allocation9 + $0x2a4] sm:$0xf0]  ;;  %v8067_v40 = vld [vmem:[#allocation9 + $0xf4] sm:$0xf] }
 0x275   : > { %v6580_v23 = vor.u32 %v8089_v20, %v6579_v18  ;;  %v6501_v18 = vld [vmem:[#allocation9 + $0x118] sm:$0xf0] }
 0x276   : > { %v2495_v36 = vadd.f32 %v2494_v34, %v2493_v35  ;;  %v8101_v34 = vld [vmem:[#allocation9 + $0x394] sm:$0xf0]  ;;  %v6755_v35 = vld [vmem:[#allocation9 + $0x5f0] sm:$0xf]  ;;  %3390 = vmatpush.bf16.msra.mxu3 %v6900_v38  ;;  %v6836_v38 = vor.u32 %v8153_v26, %v6835_v25  ;;  %v6504_v20 = vor.u32 %v8067_v40, %v6501_v18  ;;  %v8163_v26 = vld [vmem:[#allocation9 + $0x874] sm:$0xf] }
 0x277   : > { %v6628_v50 = vor.u32 %v8101_v34, %v6627_v28  ;;  %v8083_v28 = vld [vmem:[#allocation9 + $0x234] sm:$0xf]  ;;  %v6565_v34 = vld [vmem:[#allocation9 + $0x258] sm:$0xf0] }
 0x278   : > { %2496 = vadd.xlane.f32.xlu0 %v2495_v36  ;;  %v8133_v36 = vld [vmem:[#allocation9 + $0x614] sm:$0xf0]  ;;  %v6568_v39 = vor.u32 %v8083_v28, %v6565_v34  ;;  %v6885_v28 = vld [vmem:[#allocation9 + $0x898] sm:$0xf0]  ;;  %v8063_v34 = vld [vmem:[#allocation9 + $0xa4] sm:$0xf] }
 0x279   : > { %v6756_v52 = vor.u32 %v8133_v36, %v6755_v35  ;;  %3365 = vmatpush.bf16.msra.mxu1 %v6628_v50  ;;  %v8115_v35 = vld [vmem:[#allocation9 + $0x4b4] sm:$0xf]  ;;  %v6693_v36 = vld [vmem:[#allocation9 + $0x4d8] sm:$0xf0]  ;;  %v6824_v50 = vor.u32 %v8147_v46, %v6821_v47  ;;  %v8127_v46 = vld [vmem:[#allocation9 + $0x5a4] sm:$0xf] }
 0x27a   : > { %3391 = vmatpush.bf16.msra.mxu3 %v6884_v56  ;;  %v6696_v45 = vor.u32 %v8115_v35, %v6693_v36  ;;  %v6552_v56 = vor.u32 %v8079_v53, %v6549_v54  ;;  %v6485_v35 = vld [vmem:[#allocation9 + $0xc8] sm:$0xf0]  ;;  %v8095_v36 = vld [vmem:[#allocation9 + $0x324] sm:$0xf] }
 0x27b   : > { %3378 = vmatpush.bf16.msra.mxu2 %v6756_v52  ;;  %v6949_v52 = vld [vmem:[#allocation9 + $0x9d8] sm:$0xf0]  ;;  %v6741_v47 = vld [vmem:[#allocation9 + $0x5c8] sm:$0xf0] }
 0x27c   : > { %v6952_v55 = vor.u32 %v8179_v48, %v6949_v52  ;;  %v8159_v52 = vld [vmem:[#allocation9 + $0x824] sm:$0xf]  ;;  %v6869_v53 = vld [vmem:[#allocation9 + $0x848] sm:$0xf0] }
 0x27d   : > { %3366 = vmatpush.bf16.msra.mxu1 %v6612_v42  ;;  %v6933_v42 = vld [vmem:[#allocation9 + $0x988] sm:$0xf0]  ;;  %v6872_v54 = vor.u32 %v8159_v52, %v6869_v53  ;;  %v6827_v52 = vld [vmem:[#allocation9 + $0x738] sm:$0xf] }
 0x27e   : > { %3392 = vmatpush.bf16.msra.mxu3 %v6868_v62  ;;  %v6936_v62 = vor.u32 %v8175_v61, %v6933_v42  ;;  %v8155_v42 = vld [vmem:[#allocation9 + $0x7d4] sm:$0xf] }
 0x27f   : > { %3379 = vmatpush.bf16.msra.mxu2 %v6740_v43 }
 0x282   : > { %3393 = vmatpush.bf16.msra.mxu3 %v6852_v14  ;;  %v8135_v14 = vld [vmem:[#allocation9 + $0x644] sm:$0xf] }
 0x283   : > { %3380 = vmatpush.bf16.msra.mxu2 %v6724_v12  ;;  %v6517_v12 = vld [vmem:[#allocation9 + $0x168] sm:$0xf0] }
 0x286   : > { %3394 = vmatpush.bf16.msra.mxu3 %v6836_v38  ;;  %v6888_v38 = vor.u32 %v8163_v26, %v6885_v28 }
 0x287   : > { %3381 = vmatpush.bf16.msra.mxu2 %v6708_v31 }
 0x28a   : > { %3439 = vmatpush.bf16.msrb.mxu3 %v6952_v55  ;;  %v8059_v55 = vld [vmem:[#allocation9 + $0x54] sm:$0xf] }
 0x28b   : > { %3426 = vmatpush.bf16.msrb.mxu2 %v6824_v50  ;;  %v6744_v50 = vor.u32 %v8127_v46, %v6741_v47  ;;  %v8086_v47 = vld [vmem:[#allocation9 + $0x25c] sm:$0xf0] }
 0x28e   : > { %3440 = vmatpush.bf16.msrb.mxu3 %v6936_v62  ;;  %v8055_v62 = vld [vmem:[#allocation9 + $0x4] sm:$0xf] }
 0x2eb   : > { %v2497_v59 = vpop.xlane.xlu0 %2496 }
 0x2ec   : > { %v2505_v60 = vmul.f32 %v9505_v49, %v2497_v59  ;;  %v6680_v59 = vor.u32 %v8111_v57, %v6677_v27  ;;  %v8091_v57 = vld [vmem:[#allocation9 + $0x2d4] sm:$0xf]  ;;  %v6597_v27 = vld [vmem:[#allocation9 + $0x2f8] sm:$0xf0] }
 0x2ed   : > { %v6600_v61 = vor.u32 %v8091_v57, %v6597_v27  ;;  %v6955_v57 = vld [vmem:[#allocation9 + $0x9b8] sm:$0xf] }
 0x2ee   : > { %v9509_v1 = vsub.f32 %v9482_v33, %v2505_v60  ;;  %v9512_v44 = vsub.f32 %v9484_v24, %v2505_v60  ;;  %v9515_v3 = vsub.f32 %v9490_v29, %v2505_v60  ;;  %v9518_v4 = vsub.f32 %v9492_v32, %v2505_v60  ;;  %v6805_v60 = vld [vmem:[#allocation9 + $0x708] sm:$0xf0] }
 0x2ef   : > { %v6468_v29 = vor.u32 %v8061_v63, %v6467_v30  ;;  %v6596_v32 = vor.u32 %v8093_v5, %v6595_v0  ;;  %v6808_v43 = vor.u32 %v8143_v58, %v6805_v60  ;;  %v8075_v30 = vld [vmem:[#allocation9 + $0x194] sm:$0xf]  ;;  %v6533_v63 = vld [vmem:[#allocation9 + $0x1b8] sm:$0xf0] }
 0x2f0   : > { %v2510_v11 = vmul.f32 %v9509_v1, %v9509_v1  ;;  %v2511_v33 = vmul.f32 %v9512_v44, %v9512_v44  ;;  %v2512_v24 = vmul.f32 %v9515_v3, %v9515_v3  ;;  %v2513_v13 = vmul.f32 %v9518_v4, %v9518_v4  ;;  %v8107_v0 = vld [vmem:[#allocation9 + $0x414] sm:$0xf] }
 0x2f1   : > { %3354 = vmatpush.bf16.msra.mxu0 %v6468_v29  ;;  %3367 = vmatpush.bf16.msra.mxu1 %v6596_v32  ;;  %v6536_v5 = vor.u32 %v8075_v30, %v6533_v63  ;;  %v6664_v10 = vor.u32 %v8107_v0, %v6661_v6  ;;  %v8071_v32 = vld [vmem:[#allocation9 + $0x144] sm:$0xf]  ;;  %v8123_v58 = vld [vmem:[#allocation9 + $0x554] sm:$0xf]  ;;  %v6453_v63 = vld [vmem:[#allocation9 + $0x28] sm:$0xf0] }
 0x2f2   : > { %v2514_v2 = vsel %vm2488_vm2, %v2510_v11, 0.0  ;;  %v2515_v8 = vsel %vm2488_vm2, %v2511_v33, 0.0  ;;  %v2517_v16 = vsel %vm2488_vm2, %v2512_v24, 0.0  ;;  %v2519_v41 = vsel %vm2488_vm2, %v2513_v13, 0.0  ;;  %3427 = vmatpush.bf16.msrb.mxu2 %v6808_v43  ;;  %v8171_v33 = vld [vmem:[#allocation9 + $0x914] sm:$0xf] }
 0x2f3   : > { %v2516_v15 = vadd.f32 %v2515_v8, %v2514_v2  ;;  %v6792_v11 = vor.u32 %v8139_v7, %v6789_v9  ;;  %v6917_v24 = vld [vmem:[#allocation9 + $0x938] sm:$0xf0]  ;;  %v8103_v13 = vld [vmem:[#allocation9 + $0x3c4] sm:$0xf]  ;;  %v6520_v2 = vor.u32 %v8071_v32, %v6517_v12  ;;  %v6645_v8 = vld [vmem:[#allocation9 + $0x3e8] sm:$0xf0] }
 0x2f4   : > { %v6920_v29 = vor.u32 %v8171_v33, %v6917_v24  ;;  %v6853_v43 = vld [vmem:[#allocation9 + $0x7f8] sm:$0xf0]  ;;  %v8087_v0 = vld [vmem:[#allocation9 + $0x284] sm:$0xf]  ;;  %v6709_v9 = vld [vmem:[#allocation9 + $0x528] sm:$0xf0]  ;;  %v6456_v33 = vor.u32 %v8055_v62, %v6453_v63 }
 0x2f5   : > { %v2518_v51 = vadd.f32 %v2517_v16, %v2516_v15  ;;  %3355 = vmatpush.bf16.msra.mxu0 %v6452_v19  ;;  %3368 = vmatpush.bf16.msra.mxu1 %v6580_v23  ;;  %v6773_v15 = vld [vmem:[#allocation9 + $0x668] sm:$0xf0]  ;;  %v6648_v16 = vor.u32 %v8103_v13, %v6645_v8  ;;  %v8099_v19 = vld [vmem:[#allocation9 + $0x374] sm:$0xf]  ;;  %v6757_v23 = vld [vmem:[#allocation9 + $0x618] sm:$0xf0]  ;;  %v6856_v6 = vor.u32 %v8155_v42, %v6853_v43 }
 0x2f6   : > { %3428 = vmatpush.bf16.msrb.mxu2 %v6792_v11  ;;  %3441 = vmatpush.bf16.msrb.mxu3 %v6920_v29  ;;  %v6632_v31 = vor.u32 %v8099_v19, %v6629_v21  ;;  %v6760_v25 = vor.u32 %v8131_v22, %v6757_v23  ;;  %v8119_v7 = vld [vmem:[#allocation9 + $0x504] sm:$0xf]  ;;  %v6837_v11 = vld [vmem:[#allocation9 + $0x7a8] sm:$0xf0]  ;;  %v8082_v42 = vld [vmem:[#allocation9 + $0x20c] sm:$0xf0] }
 0x2f7   : > { %v2520_v37 = vadd.f32 %v2519_v41, %v2518_v51  ;;  %v6776_v51 = vor.u32 %v8135_v14, %v6773_v15  ;;  %v8167_v41 = vld [vmem:[#allocation9 + $0x8c4] sm:$0xf]  ;;  %v6712_v29 = vor.u32 %v8119_v7, %v6709_v9  ;;  %v8114_v63 = vld [vmem:[#allocation9 + $0x48c] sm:$0xf0] }
 0x2f8   : > { %v8178_v7 = vld [vmem:[#allocation9 + $0x98c] sm:$0xf0] }
 0x2f9   : > { %2521 = vadd.xlane.f32.xlu0 %v2520_v37  ;;  %3400 = vmatpush.bf16.msrb.mxu0 %v6568_v39  ;;  %v6901_v37 = vld [vmem:[#allocation9 + $0x8e8] sm:$0xf0]  ;;  %v6488_v39 = vor.u32 %v8063_v34, %v6485_v35  ;;  %v6571_v35 = vld [vmem:[#allocation9 + $0x238] sm:$0xf] }
 0x2fa   : > { %3413 = vmatpush.bf16.msrb.mxu1 %v6696_v45  ;;  %v6904_v17 = vor.u32 %v8167_v41, %v6901_v37  ;;  %3429 = vmatpush.bf16.msrb.mxu2 %v6776_v51  ;;  %v6613_v45 = vld [vmem:[#allocation9 + $0x348] sm:$0xf0]  ;;  %v2485_v51 = vld [vmem:[#allocation8 + $0x1] ss:$8 sm:$0xf]  ;;  %v6572_v27 = vor.u32 %v8086_v47, %v6571_v35 }
 0x2fb   : > { %v6616_v48 = vor.u32 %v8095_v36, %v6613_v45  ;;  %v2487_v37 = vld [vmem:[#allocation8 + $0x2] ss:$8 sm:$0xf]  ;;  %v2540_v40 = vperm.slane %v2485_v51, 0  ;;  %v2541_v19 = vperm.slane %v2485_v51, 1  ;;  %v2543_v21 = vperm.slane %v2485_v51, 3 }
 0x2fc   : > { %3442 = vmatpush.bf16.msrb.mxu3 %v6904_v17  ;;  %v2553_v18 = vperm.slane %v2487_v37, 0  ;;  %v2554_v23 = vperm.slane %v2487_v37, 1  ;;  %v8102_v35 = vld [vmem:[#allocation9 + $0x39c] sm:$0xf0] }
 0x2fd   : > { %3401 = vmatpush.bf16.msrb.mxu0 %v6552_v56  ;;  %v6469_v56 = vld [vmem:[#allocation9 + $0x78] sm:$0xf0] }
 0x2fe   : > { %3414 = vmatpush.bf16.msrb.mxu1 %v6680_v59  ;;  %3430 = vmatpush.bf16.msrb.mxu2 %v6760_v25  ;;  %v6725_v59 = vld [vmem:[#allocation9 + $0x578] sm:$0xf0]  ;;  %v6472_v60 = vor.u32 %v8059_v55, %v6469_v56  ;;  %v2556_v25 = vperm.slane %v2487_v37, 3 }
 0x2ff   : > { %v6728_v30 = vor.u32 %v8123_v58, %v6725_v59 }
 0x300   : > { %3443 = vmatpush.bf16.msrb.mxu3 %v6888_v38 }
 0x301   : > { %3402 = vmatpush.bf16.msrb.mxu0 %v6536_v5  ;;  %v6581_v5 = vld [vmem:[#allocation9 + $0x2a8] sm:$0xf0] }
 0x302   : > { %3415 = vmatpush.bf16.msrb.mxu1 %v6664_v10  ;;  %3431 = vmatpush.bf16.msrb.mxu2 %v6744_v50  ;;  %v8151_v10 = vld [vmem:[#allocation9 + $0x784] sm:$0xf]  ;;  %v6584_v24 = vor.u32 %v8087_v0, %v6581_v5  ;;  %v8118_v50 = vld [vmem:[#allocation9 + $0x4dc] sm:$0xf0]  ;;  %v6811_v0 = vld [vmem:[#allocation9 + $0x6e8] sm:$0xf] }
 0x303   : > { %v6840_v32 = vor.u32 %v8151_v10, %v6837_v11  ;;  %v8146_v5 = vld [vmem:[#allocation9 + $0x70c] sm:$0xf0]  ;;  %v6539_v11 = vld [vmem:[#allocation9 + $0x198] sm:$0xf] }
 0x304   : > { %3444 = vmatpush.bf16.msrb.mxu3 %v6872_v54 }
 0x305   : > { %3403 = vmatpush.bf16.msrb.mxu0 %v6520_v2 }
 0x306   : > { %3416 = vmatpush.bf16.msrb.mxu1 %v6648_v16  ;;  %3432 = vmatpush.bf16.msrb.mxu2 %v6728_v30  ;;  %v6683_v30 = vld [vmem:[#allocation9 + $0x468] sm:$0xf] }
 0x307   : > { %v6684_v10 = vor.u32 %v8114_v63, %v6683_v30  ;;  %v6603_v63 = vld [vmem:[#allocation9 + $0x2d8] sm:$0xf] }
 0x308   : > { %3445 = vmatpush.bf16.msrb.mxu3 %v6856_v6  ;;  %v6939_v6 = vld [vmem:[#allocation9 + $0x968] sm:$0xf] }
 0x309   : > { %3404 = vmatpush.bf16.msrb.mxu0 %v6504_v20  ;;  %v2542_v20 = vperm.slane %v2485_v51, 2  ;;  %v6523_v51 = vld [vmem:[#allocation9 + $0x148] sm:$0xf] }
 0x30a   : > { %3417 = vmatpush.bf16.msrb.mxu1 %v6632_v31  ;;  %3433 = vmatpush.bf16.msrb.mxu2 %v6712_v29  ;;  %v2555_v31 = vperm.slane %v2487_v37, 2  ;;  %v6940_v29 = vor.u32 %v8178_v7, %v6939_v6  ;;  %v8126_v6 = vld [vmem:[#allocation9 + $0x57c] sm:$0xf0]  ;;  %v6859_v7 = vld [vmem:[#allocation9 + $0x7d8] sm:$0xf] }
 0x30c   : > { %3446 = vmatpush.bf16.msrb.mxu3 %v6840_v32  ;;  %v6667_v32 = vld [vmem:[#allocation9 + $0x418] sm:$0xf] }
 0x30d   : > { %3405 = vmatpush.bf16.msrb.mxu0 %v6488_v39 }
 0x30e   : > { %3418 = vmatpush.bf16.msrb.mxu1 %v6616_v48  ;;  %v6699_v48 = vld [vmem:[#allocation9 + $0x4b8] sm:$0xf] }
 0x311   : > { %3406 = vmatpush.bf16.msrb.mxu0 %v6472_v60 }
 0x312   : > { %3419 = vmatpush.bf16.msrb.mxu1 %v6600_v61  ;;  %v6555_v61 = vld [vmem:[#allocation9 + $0x1e8] sm:$0xf] }
 0x313   : > { %v6556_v9 = vor.u32 %v8082_v42, %v6555_v61  ;;  %v6475_v42 = vld [vmem:[#allocation9 + $0x58] sm:$0xf] }
 0x315   : > { %3407 = vmatpush.bf16.msrb.mxu0 %v6456_v33  ;;  %v8078_v33 = vld [vmem:[#allocation9 + $0x1bc] sm:$0xf0] }
 0x316   : > { %3420 = vmatpush.bf16.msrb.mxu1 %v6584_v24  ;;  %v6812_v24 = vor.u32 %v8146_v5, %v6811_v0  ;;  %v8094_v0 = vld [vmem:[#allocation9 + $0x2fc] sm:$0xf0]  ;;  %v6731_v5 = vld [vmem:[#allocation9 + $0x558] sm:$0xf] }
 0x36c   : > { %v2522_v12 = vpop.xlane.xlu0 %2521 }
 0x36d   : > { %v2523_v13 = vmul.f32 %v2522_v12, %v9505_v49  ;;  %v8110_v12 = vld [vmem:[#allocation9 + $0x43c] sm:$0xf0] }
 0x36f   : > { %v2524_v2 = vadd.f32 1e-05, %v2523_v13  ;;  %v6795_v13 = vld [vmem:[#allocation9 + $0x698] sm:$0xf] }
 0x371   : > { %8490 = vrsqrt.f32 %v2524_v2  ;;  %vm2531_vm5 = vweird.f32 %v2524_v2 }
 0x377   : > { %v8491_v8 = vpop.eup %8490 }
 0x378   : > { %v2526_v14 = vmul.f32 %v8491_v8, %v2524_v2  ;;  %vm2532_vm4 = vweird.f32 %v8491_v8  ;;  %v8142_v2 = vld [vmem:[#allocation9 + $0x6bc] sm:$0xf0] }
 0x379   : > { %vm2533_vm6 = vmor %vm2531_vm5, %vm2532_vm4  ;;  %v6796_v37 = vor.u32 %v8142_v2, %v6795_v13  ;;  %v6715_v2 = vld [vmem:[#allocation9 + $0x508] sm:$0xf] }
 0x37a   : > { %v2527_v15 = vmul.f32 %v8491_v8, %v2526_v14  ;;  %v8174_v14 = vld [vmem:[#allocation9 + $0x93c] sm:$0xf0] }
 0x37c   : > { %v2528_v16 = vmul.f32 0.5, %v2527_v15  ;;  %v6540_v15 = vor.u32 %v8078_v33, %v6539_v11  ;;  %v6604_v33 = vor.u32 %v8094_v0, %v6603_v63  ;;  %v8104_v0 = vld [vmem:[#allocation9 + $0x3cc] sm:$0xf] }
 0x37e   : > { %v2529_v41 = vsub.f32 1.5, %v2528_v16  ;;  %v6668_v16 = vor.u32 %v8110_v12, %v6667_v32  ;;  %v8090_v32 = vld [vmem:[#allocation9 + $0x2ac] sm:$0xf0]  ;;  %v6732_v12 = vor.u32 %v8126_v6, %v6731_v5  ;;  %v6653_v5 = vld [vmem:[#allocation9 + $0x3f0] sm:$0xf0] }
 0x37f   : > { %v8136_v6 = vld [vmem:[#allocation9 + $0x64c] sm:$0xf] }
 0x380   : > { %v2530_v17 = vmul.f32 %v8491_v8, %v2529_v41  ;;  %v8074_v41 = vld [vmem:[#allocation9 + $0x16c] sm:$0xf0] }
 0x382   : > { %v2534_v22 = vsel %vm2533_vm6, %v8491_v8, %v2530_v17  ;;  %v6923_v8 = vld [vmem:[#allocation9 + $0x918] sm:$0xf] }
 0x383   : > { %v2535_v26 = vmul.f32 %v2534_v22, %v9509_v1  ;;  %v2536_v28 = vmul.f32 %v2534_v22, %v9512_v44  ;;  %v2537_v38 = vmul.f32 %v2534_v22, %v9515_v3  ;;  %v2538_v34 = vmul.f32 %v2534_v22, %v9518_v4  ;;  %v8150_v1 = vld [vmem:[#allocation9 + $0x75c] sm:$0xf0]  ;;  %v8170_v22 = vld [vmem:[#allocation9 + $0x8ec] sm:$0xf0] }
 0x384   : > { %v8182_v44 = vld [vmem:[#allocation9 + $0x9dc] sm:$0xf0]  ;;  %v6700_v3 = vor.u32 %v8118_v50, %v6699_v48  ;;  %v6828_v43 = vor.u32 %v8150_v1, %v6827_v52  ;;  %v6924_v17 = vor.u32 %v8174_v14, %v6923_v8  ;;  %v6491_v50 = vld [vmem:[#allocation9 + $0xa8] sm:$0xf]  ;;  %v8066_v52 = vld [vmem:[#allocation9 + $0xcc] sm:$0xf0] }
 0x385   : > { %v2548_v36 = vmul.f32 %v2540_v40, %v2535_v26  ;;  %v2549_v39 = vmul.f32 %v2541_v19, %v2536_v28  ;;  %v2550_v45 = vmul.f32 %v2542_v20, %v2537_v38  ;;  %v2551_v46 = vmul.f32 %v2543_v21, %v2538_v34  ;;  %v6651_v40 = vld [vmem:[#allocation9 + $0x3c8] sm:$0xf]  ;;  %v8138_v20 = vld [vmem:[#allocation9 + $0x66c] sm:$0xf0]  ;;  %v8070_v26 = vld [vmem:[#allocation9 + $0x11c] sm:$0xf0] }
 0x386   : > { %v6956_v62 = vor.u32 %v8182_v44, %v6955_v57  ;;  %v6779_v19 = vld [vmem:[#allocation9 + $0x648] sm:$0xf]  ;;  %v6635_v34 = vld [vmem:[#allocation9 + $0x378] sm:$0xf]  ;;  %v8130_v57 = vld [vmem:[#allocation9 + $0x5cc] sm:$0xf0] }
 0x387   : > { %v2561_v53 = vadd.f32 %v2553_v18, %v2548_v36  ;;  %v2562_v54 = vadd.f32 %v2554_v23, %v2549_v39  ;;  %v2563_v55 = vadd.f32 %v2555_v31, %v2550_v45  ;;  %v2564_v56 = vadd.f32 %v2556_v25, %v2551_v46  ;;  %v8106_v18 = vld [vmem:[#allocation9 + $0x3ec] sm:$0xf0]  ;;  %v6907_v21 = vld [vmem:[#allocation9 + $0x8c8] sm:$0xf]  ;;  %v6507_v25 = vld [vmem:[#allocation9 + $0xf8] sm:$0xf] }
 0x388   : > { %v6524_v23 = vor.u32 %v8074_v41, %v6523_v51  ;;  %v6652_v31 = vor.u32 %v8106_v18, %v6651_v40  ;;  %v6780_v28 = vor.u32 %v8138_v20, %v6779_v19  ;;  %v6908_v38 = vor.u32 %v8170_v22, %v6907_v21  ;;  %v6763_v36 = vld [vmem:[#allocation9 + $0x5f8] sm:$0xf]  ;;  %v8134_v39 = vld [vmem:[#allocation9 + $0x61c] sm:$0xf0]  ;;  %v6747_v1 = vld [vmem:[#allocation9 + $0x5a8] sm:$0xf] }
 0x389   : > { %v9537_v58 = vpack.c.bf16 %v2561_v53, %v2561_v53  ;;  %v9539_v4 = vpack.c.bf16 %v2562_v54, %v2562_v54  ;;  %v9541_v59 = vpack.c.bf16 %v2563_v55, %v2563_v55  ;;  %v9543_v60 = vpack.c.bf16 %v2564_v56, %v2564_v56  ;;  %v6891_v45 = vld [vmem:[#allocation9 + $0x878] sm:$0xf]  ;;  %v8166_v46 = vld [vmem:[#allocation9 + $0x89c] sm:$0xf0]  ;;  %v6619_v55 = vld [vmem:[#allocation9 + $0x328] sm:$0xf] }
 0x38a   : > { %v6508_v47 = vor.u32 %v8070_v26, %v6507_v25  ;;  %v6636_v48 = vor.u32 %v8102_v35, %v6635_v34  ;;  %v6764_v53 = vor.u32 %v8134_v39, %v6763_v36  ;;  %v6892_v54 = vor.u32 %v8166_v46, %v6891_v45  ;;  %v8098_v56 = vld [vmem:[#allocation9 + $0x34c] sm:$0xf0]  ;;  %v6875_v44 = vld [vmem:[#allocation9 + $0x828] sm:$0xf]  ;;  %v6573_v51 = vld [vmem:[#allocation9 + $0x260] sm:$0xf0] }
 0x38b   : > { %3356 = vmatmul.bf16.vlgmr.msra.gmra.mxu0 %v9537_v58  ;;  %3369 = vmatmul.bf16.vlgmr.msra.gmra.mxu1 %v9539_v4  ;;  %v6620_v61 = vor.u32 %v8098_v56, %v6619_v55  ;;  %v8122_v8 = vld [vmem:[#allocation9 + $0x52c] sm:$0xf0]  ;;  %v6843_v14 = vld [vmem:[#allocation9 + $0x788] sm:$0xf]  ;;  %v8116_v41 = vld [vmem:[#allocation9 + $0x4bc] sm:$0xf] }
 0x38c   : > { %3382 = vmatmul.bf16.vlgmr.msra.gmra.mxu2 %v9541_v59  ;;  %3395 = vmatmul.bf16.vlgmr.msra.gmra.mxu3 %v9543_v60  ;;  %v6829_v19 = vld [vmem:[#allocation9 + $0x760] sm:$0xf0]  ;;  %v8180_v20 = vld [vmem:[#allocation9 + $0x9bc] sm:$0xf]  ;;  %v6716_v22 = vor.u32 %v8122_v8, %v6715_v2  ;;  %v8080_v26 = vld [vmem:[#allocation9 + $0x1ec] sm:$0xf] }
 0x38d   : > { %3452 = vmatpush.bf16.msra.mxu0 %v6572_v27  ;;  %3465 = vmatpush.bf16.msra.mxu1 %v6700_v3  ;;  %v8162_v27 = vld [vmem:[#allocation9 + $0x84c] sm:$0xf0]  ;;  %v6492_v3 = vor.u32 %v8066_v52, %v6491_v50  ;;  %v6957_v21 = vld [vmem:[#allocation9 + $0x9e0] sm:$0xf0]  ;;  %v8112_v35 = vld [vmem:[#allocation9 + $0x46c] sm:$0xf] }
 0x38e   : > { %3478 = vmatpush.bf16.msra.mxu2 %v6828_v43  ;;  %3491 = vmatpush.bf16.msra.mxu3 %v6956_v62  ;;  %v8062_v43 = vld [vmem:[#allocation9 + $0x7c] sm:$0xf0]  ;;  %v6748_v62 = vor.u32 %v8130_v57, %v6747_v1  ;;  %v6876_v30 = vor.u32 %v8162_v27, %v6875_v44  ;;  %v6960_v34 = vor.u32 %v8180_v20, %v6957_v21  ;;  %v6685_v36 = vld [vmem:[#allocation9 + $0x490] sm:$0xf0]  ;;  %v8144_v39 = vld [vmem:[#allocation9 + $0x6ec] sm:$0xf] }
 0x38f   : > { %v6476_v11 = vor.u32 %v8062_v43, %v6475_v42  ;;  %v6813_v45 = vld [vmem:[#allocation9 + $0x710] sm:$0xf0]  ;;  %v8176_v46 = vld [vmem:[#allocation9 + $0x96c] sm:$0xf]  ;;  %v6688_v50 = vor.u32 %v8112_v35, %v6685_v36  ;;  %v8076_v52 = vld [vmem:[#allocation9 + $0x19c] sm:$0xf] }
 0x390   : > { %v8108_v56 = vld [vmem:[#allocation9 + $0x41c] sm:$0xf]  ;;  %v6669_v1 = vld [vmem:[#allocation9 + $0x440] sm:$0xf0]  ;;  %v8072_v43 = vld [vmem:[#allocation9 + $0x14c] sm:$0xf] }
 0x391   : > { %3453 = vmatpush.bf16.msra.mxu0 %v6556_v9  ;;  %3466 = vmatpush.bf16.msra.mxu1 %v6684_v10  ;;  %v8158_v9 = vld [vmem:[#allocation9 + $0x7fc] sm:$0xf0]  ;;  %v6459_v10 = vld [vmem:[#allocation9 + $0x8] sm:$0xf]  ;;  %v8140_v57 = vld [vmem:[#allocation9 + $0x69c] sm:$0xf]  ;;  %v6672_v42 = vor.u32 %v8108_v56, %v6669_v1 }
 0x392   : > { %3479 = vmatpush.bf16.msra.mxu2 %v6812_v24  ;;  %3492 = vmatpush.bf16.msra.mxu3 %v6940_v29  ;;  %v8058_v24 = vld [vmem:[#allocation9 + $0x2c] sm:$0xf0]  ;;  %v6587_v29 = vld [vmem:[#allocation9 + $0x288] sm:$0xf]  ;;  %v6860_v13 = vor.u32 %v8158_v9, %v6859_v7  ;;  %v6797_v44 = vld [vmem:[#allocation9 + $0x6c0] sm:$0xf0] }
 0x393   : > { %v6460_v40 = vor.u32 %v8058_v24, %v6459_v10  ;;  %v6588_v18 = vor.u32 %v8090_v32, %v6587_v29  ;;  %v8172_v27 = vld [vmem:[#allocation9 + $0x91c] sm:$0xf]  ;;  %v6781_v7 = vld [vmem:[#allocation9 + $0x670] sm:$0xf0]  ;;  %v8168_v9 = vld [vmem:[#allocation9 + $0x8cc] sm:$0xf] }
 0x394   : > { %v6909_v10 = vld [vmem:[#allocation9 + $0x8f0] sm:$0xf0]  ;;  %v8068_v24 = vld [vmem:[#allocation9 + $0xfc] sm:$0xf]  ;;  %v6509_v29 = vld [vmem:[#allocation9 + $0x120] sm:$0xf0]  ;;  %v6784_v32 = vor.u32 %v8136_v6, %v6781_v7 }
 0x395   : > { %3454 = vmatpush.bf16.msra.mxu0 %v6540_v15  ;;  %3467 = vmatpush.bf16.msra.mxu1 %v6668_v16  ;;  %v8154_v15 = vld [vmem:[#allocation9 + $0x7ac] sm:$0xf0]  ;;  %v8084_v16 = vld [vmem:[#allocation9 + $0x23c] sm:$0xf]  ;;  %v6637_v2 = vld [vmem:[#allocation9 + $0x3a0] sm:$0xf0] }
 0x396   : > { %3480 = vmatpush.bf16.msra.mxu2 %v6796_v37  ;;  %3493 = vmatpush.bf16.msra.mxu3 %v6924_v17  ;;  %v6701_v37 = vld [vmem:[#allocation9 + $0x4e0] sm:$0xf0]  ;;  %v8148_v17 = vld [vmem:[#allocation9 + $0x73c] sm:$0xf]  ;;  %v6621_v20 = vld [vmem:[#allocation9 + $0x350] sm:$0xf0] }
 0x397   : > { %v6704_v25 = vor.u32 %v8116_v41, %v6701_v37  ;;  %v8132_v8 = vld [vmem:[#allocation9 + $0x5fc] sm:$0xf]  ;;  %v8064_v37 = vld [vmem:[#allocation9 + $0xac] sm:$0xf] }
 0x398   : > { %v8128_v21 = vld [vmem:[#allocation9 + $0x5ac] sm:$0xf]  ;;  %v8092_v36 = vld [vmem:[#allocation9 + $0x2dc] sm:$0xf] }
 0x399   : > { %3455 = vmatpush.bf16.msra.mxu0 %v6524_v23  ;;  %3468 = vmatpush.bf16.msra.mxu1 %v6652_v31  ;;  %v6844_v23 = vor.u32 %v8154_v15, %v6843_v14  ;;  %v6576_v31 = vor.u32 %v8084_v16, %v6573_v51  ;;  %v6765_v14 = vld [vmem:[#allocation9 + $0x620] sm:$0xf0]  ;;  %v8164_v15 = vld [vmem:[#allocation9 + $0x87c] sm:$0xf]  ;;  %v6512_v51 = vor.u32 %v8068_v24, %v6509_v29  ;;  %v8241_v24 = vld [vmem:[#allocation9 + $0x494] sm:$0xf0] }
 0x39a   : > { %3481 = vmatpush.bf16.msra.mxu2 %v6780_v28  ;;  %3494 = vmatpush.bf16.msra.mxu3 %v6908_v38  ;;  %v6557_v28 = vld [vmem:[#allocation9 + $0x210] sm:$0xf0]  ;;  %v6832_v38 = vor.u32 %v8148_v17, %v6829_v19  ;;  %v6893_v16 = vld [vmem:[#allocation9 + $0x8a0] sm:$0xf0]  ;;  %v8096_v19 = vld [vmem:[#allocation9 + $0x32c] sm:$0xf] }
 0x39b   : > { %3408 = vmatmul.bf16.vlgmr.msrb.gmra.mxu0 %v9537_v58  ;;  %3421 = vmatmul.bf16.vlgmr.msrb.gmra.mxu1 %v9539_v4  ;;  %v6493_v17 = vld [vmem:[#allocation9 + $0xd0] sm:$0xf0]  ;;  %v7331_v29 = vld [vmem:[#allocation9 + $0x740] sm:$0xf] }
 0x39c   : > { %3434 = vmatmul.bf16.vlgmr.msrb.gmra.mxu2 %v9541_v59  ;;  %3447 = vmatmul.bf16.vlgmr.msrb.gmra.mxu3 %v9543_v60 }
 0x39d   : > { %3456 = vmatpush.bf16.msra.mxu0 %v6508_v47  ;;  %3469 = vmatpush.bf16.msra.mxu1 %v6636_v48  ;;  %v6941_v47 = vld [vmem:[#allocation9 + $0x990] sm:$0xf0]  ;;  %v6560_v48 = vor.u32 %v8080_v26, %v6557_v28  ;;  %v6624_v26 = vor.u32 %v8096_v19, %v6621_v20  ;;  %v8060_v28 = vld [vmem:[#allocation9 + $0x5c] sm:$0xf]  ;;  %v7155_v20 = vld [vmem:[#allocation9 + $0x3d0] sm:$0xf] }
 0x39e   : > { %3482 = vmatpush.bf16.msra.mxu2 %v6764_v53  ;;  %3495 = vmatpush.bf16.msra.mxu3 %v6892_v54  ;;  %v6541_v53 = vld [vmem:[#allocation9 + $0x1c0] sm:$0xf0]  ;;  %v6816_v54 = vor.u32 %v8144_v39, %v6813_v45  ;;  %v6944_v55 = vor.u32 %v8176_v46, %v6941_v47  ;;  %v8124_v45 = vld [vmem:[#allocation9 + $0x55c] sm:$0xf] }
 0x39f   : > { %v6605_v39 = vld [vmem:[#allocation9 + $0x300] sm:$0xf0]  ;;  %v8156_v47 = vld [vmem:[#allocation9 + $0x7dc] sm:$0xf] }
 0x3a0   : > { %v6733_v46 = vld [vmem:[#allocation9 + $0x580] sm:$0xf0] }
 0x3a1   : > { %3457 = vmatpush.bf16.msra.mxu0 %v6492_v3  ;;  %3470 = vmatpush.bf16.msra.mxu1 %v6620_v61  ;;  %v6925_v3 = vld [vmem:[#allocation9 + $0x940] sm:$0xf0]  ;;  %v6544_v61 = vor.u32 %v8076_v52, %v6541_v53  ;;  %v6608_v52 = vor.u32 %v8092_v36, %v6605_v39  ;;  %v8056_v53 = vld [vmem:[#allocation9 + $0xc] sm:$0xf]  ;;  %v6736_v56 = vor.u32 %v8124_v45, %v6733_v46  ;;  %v7123_v36 = vld [vmem:[#allocation9 + $0x330] sm:$0xf] }
 0x3a2   : > { %3483 = vmatpush.bf16.msra.mxu2 %v6748_v62  ;;  %3496 = vmatpush.bf16.msra.mxu3 %v6876_v30  ;;  %v6525_v62 = vld [vmem:[#allocation9 + $0x170] sm:$0xf0]  ;;  %v6800_v30 = vor.u32 %v8140_v57, %v6797_v44  ;;  %v6928_v63 = vor.u32 %v8172_v27, %v6925_v3  ;;  %v8120_v44 = vld [vmem:[#allocation9 + $0x50c] sm:$0xf]  ;;  %v8225_v39 = vld [vmem:[#allocation9 + $0x354] sm:$0xf0] }
 0x3a3   : > { %v6589_v57 = vld [vmem:[#allocation9 + $0x2b0] sm:$0xf0]  ;;  %v8152_v3 = vld [vmem:[#allocation9 + $0x78c] sm:$0xf]  ;;  %v6979_v46 = vld [vmem:[#allocation9 + $0x60] sm:$0xf] }
 0x3a4   : > { %v6717_v27 = vld [vmem:[#allocation9 + $0x530] sm:$0xf0] }
 0x3a5   : > { %3458 = vmatpush.bf16.msra.mxu0 %v6476_v11  ;;  %3471 = vmatpush.bf16.msra.mxu1 %v6604_v33  ;;  %v6528_v11 = vor.u32 %v8072_v43, %v6525_v62  ;;  %v6656_v33 = vor.u32 %v8104_v0, %v6653_v5  ;;  %v8213_v43 = vld [vmem:[#allocation9 + $0x264] sm:$0xf0]  ;;  %v7203_v62 = vld [vmem:[#allocation9 + $0x4c0] sm:$0xf]  ;;  %v6720_v5 = vor.u32 %v8120_v44, %v6717_v27 }
 0x3a6   : > { %3484 = vmatpush.bf16.msra.mxu2 %v6732_v12  ;;  %3497 = vmatpush.bf16.msra.mxu3 %v6860_v13  ;;  %v6912_v12 = vor.u32 %v8168_v9, %v6909_v10  ;;  %v8100_v13 = vld [vmem:[#allocation9 + $0x37c] sm:$0xf]  ;;  %v7059_v9 = vld [vmem:[#allocation9 + $0x1f0] sm:$0xf] }
 0x3a7   : > { %v6640_v41 = vor.u32 %v8100_v13, %v6637_v2  ;;  %v7043_v2 = vld [vmem:[#allocation9 + $0x1a0] sm:$0xf] }
 0x3a9   : > { %3459 = vmatpush.bf16.msra.mxu0 %v6460_v40  ;;  %3472 = vmatpush.bf16.msra.mxu1 %v6588_v18  ;;  %v6768_v40 = vor.u32 %v8132_v8, %v6765_v14  ;;  %v6896_v18 = vor.u32 %v8164_v15, %v6893_v16  ;;  %v8205_v8 = vld [vmem:[#allocation9 + $0x1c4] sm:$0xf0]  ;;  %v7171_v15 = vld [vmem:[#allocation9 + $0x420] sm:$0xf] }
 0x3aa   : > { %3485 = vmatpush.bf16.msra.mxu2 %v6716_v22  ;;  %3498 = vmatpush.bf16.msra.mxu3 %v6844_v23  ;;  %v6749_v22 = vld [vmem:[#allocation9 + $0x5d0] sm:$0xf0]  ;;  %v8160_v23 = vld [vmem:[#allocation9 + $0x82c] sm:$0xf]  ;;  %v8237_v16 = vld [vmem:[#allocation9 + $0x444] sm:$0xf0] }
 0x3ab   : > { %v7172_v19 = vor.u32 %v8237_v16, %v7171_v15  ;;  %v8239_v15 = vld [vmem:[#allocation9 + $0x474] sm:$0xf]  ;;  %v7189_v16 = vld [vmem:[#allocation9 + $0x498] sm:$0xf0] }
 0x3ac   : > { %3460 = vmatmul.bf16.vlgmr.msra.gmra.mxu0 %v9537_v58  ;;  %3473 = vmatmul.bf16.vlgmr.msra.gmra.mxu1 %v9539_v4 }
 0x3ad   : > { %3504 = vmatpush.bf16.msrb.mxu0 %v6576_v31  ;;  %3517 = vmatpush.bf16.msrb.mxu1 %v6704_v25  ;;  %v6877_v31 = vld [vmem:[#allocation9 + $0x850] sm:$0xf0]  ;;  %v6496_v25 = vor.u32 %v8064_v37, %v6493_v17  ;;  %v7044_v17 = vor.u32 %v8205_v8, %v7043_v2  ;;  %v8195_v8 = vld [vmem:[#allocation9 + $0x104] sm:$0xf] }
 0x3ae   : > { %3530 = vmatpush.bf16.msrb.mxu2 %v6832_v38  ;;  %3543 = vmatpush.bf16.msrb.mxu3 %v6960_v34  ;;  %v6477_v38 = vld [vmem:[#allocation9 + $0x80] sm:$0xf0]  ;;  %v6752_v34 = vor.u32 %v8128_v21, %v6749_v22  ;;  %v6880_v35 = vor.u32 %v8160_v23, %v6877_v31  ;;  %v7299_v21 = vld [vmem:[#allocation9 + $0x6a0] sm:$0xf]  ;;  %v8197_v31 = vld [vmem:[#allocation9 + $0x124] sm:$0xf0] }
 0x3af   : > { %3486 = vmatmul.bf16.vlgmr.msra.gmra.mxu2 %v9541_v59  ;;  %3499 = vmatmul.bf16.vlgmr.msra.gmra.mxu3 %v9543_v60 }
 0x3b1   : > { %3505 = vmatpush.bf16.msrb.mxu0 %v6560_v48  ;;  %3518 = vmatpush.bf16.msrb.mxu1 %v6688_v50  ;;  %v6861_v48 = vld [vmem:[#allocation9 + $0x800] sm:$0xf0]  ;;  %v6480_v50 = vor.u32 %v8060_v28, %v6477_v38  ;;  %v6995_v38 = vld [vmem:[#allocation9 + $0xb0] sm:$0xf] }
 0x3b2   : > { %3531 = vmatpush.bf16.msrb.mxu2 %v6816_v54  ;;  %3544 = vmatpush.bf16.msrb.mxu3 %v6944_v55  ;;  %v6461_v54 = vld [vmem:[#allocation9 + $0x30] sm:$0xf0]  ;;  %v8088_v55 = vld [vmem:[#allocation9 + $0x28c] sm:$0xf]  ;;  %v6864_v1 = vor.u32 %v8156_v47, %v6861_v48  ;;  %v7124_v47 = vor.u32 %v8225_v39, %v7123_v36  ;;  %v8189_v48 = vld [vmem:[#allocation9 + $0x84] sm:$0xf0] }
 0x3b3   : > { %v6592_v0 = vor.u32 %v8088_v55, %v6589_v57  ;;  %v6963_v55 = vld [vmem:[#allocation9 + $0x10] sm:$0xf]  ;;  %v7077_v57 = vld [vmem:[#allocation9 + $0x268] sm:$0xf0]  ;;  %v8249_v39 = vld [vmem:[#allocation9 + $0x534] sm:$0xf0] }
 0x3b4   : > { %v7219_v36 = vld [vmem:[#allocation9 + $0x510] sm:$0xf] }
 0x3b5   : > { %3506 = vmatpush.bf16.msrb.mxu0 %v6544_v61  ;;  %3519 = vmatpush.bf16.msrb.mxu1 %v6672_v42  ;;  %v6845_v61 = vld [vmem:[#allocation9 + $0x7b0] sm:$0xf0]  ;;  %v7075_v42 = vld [vmem:[#allocation9 + $0x240] sm:$0xf] }
 0x3b6   : > { %3532 = vmatpush.bf16.msrb.mxu2 %v6800_v30  ;;  %3545 = vmatpush.bf16.msrb.mxu3 %v6928_v63  ;;  %v8245_v30 = vld [vmem:[#allocation9 + $0x4e4] sm:$0xf0]  ;;  %v6464_v63 = vor.u32 %v8056_v53, %v6461_v54  ;;  %v6848_v6 = vor.u32 %v8152_v3, %v6845_v61  ;;  %v7076_v7 = vor.u32 %v8213_v43, %v7075_v42  ;;  %v8207_v3 = vld [vmem:[#allocation9 + $0x1f4] sm:$0xf]  ;;  %v7061_v61 = vld [vmem:[#allocation9 + $0x218] sm:$0xf0] }
 0x3b7   : > { %v7204_v10 = vor.u32 %v8245_v30, %v7203_v62  ;;  %v6980_v53 = vor.u32 %v8189_v48, %v6979_v46  ;;  %v7064_v42 = vor.u32 %v8207_v3, %v7061_v61  ;;  %v8203_v43 = vld [vmem:[#allocation9 + $0x1a4] sm:$0xf]  ;;  %v7045_v62 = vld [vmem:[#allocation9 + $0x1c8] sm:$0xf0]  ;;  %v7220_v46 = vor.u32 %v8249_v39, %v7219_v36  ;;  %v8223_v3 = vld [vmem:[#allocation9 + $0x334] sm:$0xf] }
 0x3b8   : > { %v7048_v30 = vor.u32 %v8203_v43, %v7045_v62  ;;  %v8227_v48 = vld [vmem:[#allocation9 + $0x384] sm:$0xf]  ;;  %v7125_v61 = vld [vmem:[#allocation9 + $0x358] sm:$0xf0]  ;;  %v7083_v36 = vld [vmem:[#allocation9 + $0x248] sm:$0xf] }
 0x3b9   : > { %3507 = vmatpush.bf16.msrb.mxu0 %v6528_v11  ;;  %3520 = vmatpush.bf16.msrb.mxu1 %v6656_v33  ;;  %v8209_v11 = vld [vmem:[#allocation9 + $0x214] sm:$0xf0]  ;;  %v7187_v33 = vld [vmem:[#allocation9 + $0x470] sm:$0xf]  ;;  %v7128_v43 = vor.u32 %v8223_v3, %v7125_v61  ;;  %v7317_v62 = vld [vmem:[#allocation9 + $0x718] sm:$0xf0] }
 0x3ba   : > { %3533 = vmatpush.bf16.msrb.mxu2 %v6784_v32  ;;  %3546 = vmatpush.bf16.msrb.mxu3 %v6912_v12  ;;  %v8277_v32 = vld [vmem:[#allocation9 + $0x764] sm:$0xf0]  ;;  %v7060_v13 = vor.u32 %v8209_v11, %v7059_v9  ;;  %v7188_v14 = vor.u32 %v8241_v24, %v7187_v33  ;;  %v8243_v33 = vld [vmem:[#allocation9 + $0x4c4] sm:$0xf]  ;;  %v7205_v24 = vld [vmem:[#allocation9 + $0x4e8] sm:$0xf0] }
 0x3bb   : > { %v7332_v12 = vor.u32 %v8277_v32, %v7331_v29  ;;  %v7267_v29 = vld [vmem:[#allocation9 + $0x600] sm:$0xf]  ;;  %v7208_v32 = vor.u32 %v8243_v33, %v7205_v24  ;;  %v7301_v33 = vld [vmem:[#allocation9 + $0x6c8] sm:$0xf0]  ;;  %v8281_v3 = vld [vmem:[#allocation9 + $0x7b4] sm:$0xf0] }
 0x3bd   : > { %3508 = vmatpush.bf16.msrb.mxu0 %v6512_v51  ;;  %3521 = vmatpush.bf16.msrb.mxu1 %v6640_v41  ;;  %v7315_v51 = vld [vmem:[#allocation9 + $0x6f0] sm:$0xf]  ;;  %v8273_v41 = vld [vmem:[#allocation9 + $0x714] sm:$0xf0] }
 0x3be   : > { %3534 = vmatpush.bf16.msrb.mxu2 %v6768_v40  ;;  %3547 = vmatpush.bf16.msrb.mxu3 %v6896_v18  ;;  %v7316_v37 = vor.u32 %v8273_v41, %v7315_v51  ;;  %v7027_v40 = vld [vmem:[#allocation9 + $0x150] sm:$0xf]  ;;  %v8201_v18 = vld [vmem:[#allocation9 + $0x174] sm:$0xf0]  ;;  %v7192_v51 = vor.u32 %v8239_v15, %v7189_v16 }
 0x3bf   : > { %v7028_v23 = vor.u32 %v8201_v18, %v7027_v40  ;;  %v8191_v40 = vld [vmem:[#allocation9 + $0xb4] sm:$0xf]  ;;  %v6997_v18 = vld [vmem:[#allocation9 + $0xd8] sm:$0xf0] }
 0x3c1   : > { %3509 = vmatpush.bf16.msrb.mxu0 %v6496_v25  ;;  %3522 = vmatpush.bf16.msrb.mxu1 %v6624_v26  ;;  %v7139_v25 = vld [vmem:[#allocation9 + $0x380] sm:$0xf]  ;;  %v8229_v26 = vld [vmem:[#allocation9 + $0x3a4] sm:$0xf0] }
 0x3c2   : > { %3535 = vmatpush.bf16.msrb.mxu2 %v6752_v34  ;;  %3548 = vmatpush.bf16.msrb.mxu3 %v6880_v35  ;;  %v7140_v34 = vor.u32 %v8229_v26, %v7139_v25  ;;  %v8193_v35 = vld [vmem:[#allocation9 + $0xd4] sm:$0xf0]  ;;  %v8231_v25 = vld [vmem:[#allocation9 + $0x3d4] sm:$0xf]  ;;  %v7157_v26 = vld [vmem:[#allocation9 + $0x3f8] sm:$0xf0] }
 0x3c3   : > { %v6996_v45 = vor.u32 %v8193_v35, %v6995_v38  ;;  %v6965_v38 = vld [vmem:[#allocation9 + $0x38] sm:$0xf0] }
 0x3c5   : > { %3510 = vmatpush.bf16.msrb.mxu0 %v6480_v50  ;;  %3523 = vmatpush.bf16.msrb.mxu1 %v6608_v52  ;;  %v7107_v50 = vld [vmem:[#allocation9 + $0x2e0] sm:$0xf]  ;;  %v8221_v52 = vld [vmem:[#allocation9 + $0x304] sm:$0xf0] }
 0x3c6   : > { %3536 = vmatpush.bf16.msrb.mxu2 %v6736_v56  ;;  %3549 = vmatpush.bf16.msrb.mxu3 %v6864_v1  ;;  %v7108_v54 = vor.u32 %v8221_v52, %v7107_v50  ;;  %v8185_v56 = vld [vmem:[#allocation9 + $0x34] sm:$0xf0]  ;;  %v8211_v1 = vld [vmem:[#allocation9 + $0x244] sm:$0xf]  ;;  %v7141_v50 = vld [vmem:[#allocation9 + $0x3a8] sm:$0xf0] }
 0x3c7   : > { %v6964_v44 = vor.u32 %v8185_v56, %v6963_v55  ;;  %v7080_v27 = vor.u32 %v8211_v1, %v7077_v57  ;;  %v7333_v55 = vld [vmem:[#allocation9 + $0x768] sm:$0xf0]  ;;  %v7443_v1 = vld [vmem:[#allocation9 + $0x970] sm:$0xf]  ;;  %v8305_v57 = vld [vmem:[#allocation9 + $0x994] sm:$0xf0] }
 0x3c9   : > { %3511 = vmatpush.bf16.msrb.mxu0 %v6464_v63  ;;  %3524 = vmatpush.bf16.msrb.mxu1 %v6592_v0  ;;  %v7091_v63 = vld [vmem:[#allocation9 + $0x290] sm:$0xf]  ;;  %v8217_v0 = vld [vmem:[#allocation9 + $0x2b4] sm:$0xf0] }
 0x3ca   : > { %3537 = vmatpush.bf16.msrb.mxu2 %v6720_v5  ;;  %3550 = vmatpush.bf16.msrb.mxu3 %v6848_v6  ;;  %v7283_v5 = vld [vmem:[#allocation9 + $0x650] sm:$0xf]  ;;  %v8199_v6 = vld [vmem:[#allocation9 + $0x154] sm:$0xf]  ;;  %v7092_v9 = vor.u32 %v8217_v0, %v7091_v63  ;;  %v7427_v0 = vld [vmem:[#allocation9 + $0x920] sm:$0xf] }
 0x3cc   : > { %3512 = vmatmul.bf16.vlgmr.msrb.gmra.mxu0 %v9537_v58  ;;  %3525 = vmatmul.bf16.vlgmr.msrb.gmra.mxu1 %v9539_v4  ;;  %v8233_v58 = vld [vmem:[#allocation9 + $0x3f4] sm:$0xf0]  ;;  %v8269_v4 = vld [vmem:[#allocation9 + $0x6c4] sm:$0xf0] }
 0x3cd   : > { %4343 = vmatpush.bf16.msra.mxu0 %v7076_v7  ;;  %4356 = vmatpush.bf16.msra.mxu1 %v7204_v10  ;;  %v7300_v22 = vor.u32 %v8269_v4, %v7299_v21  ;;  %v7029_v7 = vld [vmem:[#allocation9 + $0x178] sm:$0xf0]  ;;  %v8265_v10 = vld [vmem:[#allocation9 + $0x674] sm:$0xf0]  ;;  %v7000_v4 = vor.u32 %v8191_v40, %v6997_v18  ;;  %v7395_v40 = vld [vmem:[#allocation9 + $0x880] sm:$0xf] }
 0x3ce   : > { %3538 = vmatmul.bf16.vlgmr.msrb.gmra.mxu2 %v9541_v59  ;;  %3551 = vmatmul.bf16.vlgmr.msrb.gmra.mxu3 %v9543_v60  ;;  %v7011_v59 = vld [vmem:[#allocation9 + $0x100] sm:$0xf]  ;;  %v7156_v60 = vor.u32 %v8233_v58, %v7155_v20  ;;  %v7284_v11 = vor.u32 %v8265_v10, %v7283_v5  ;;  %v8235_v20 = vld [vmem:[#allocation9 + $0x424] sm:$0xf]  ;;  %v7173_v58 = vld [vmem:[#allocation9 + $0x448] sm:$0xf0] }
 0x3cf   : > { %4369 = vmatpush.bf16.msra.mxu2 %v7332_v12  ;;  %v7012_v28 = vor.u32 %v8197_v31, %v7011_v59  ;;  %v8261_v12 = vld [vmem:[#allocation9 + $0x624] sm:$0xf0]  ;;  %v7176_v21 = vor.u32 %v8235_v20, %v7173_v58  ;;  %v8187_v59 = vld [vmem:[#allocation9 + $0x64] sm:$0xf]  ;;  %v7269_v58 = vld [vmem:[#allocation9 + $0x628] sm:$0xf0] }
 0x3d0   : > { %v7268_v2 = vor.u32 %v8261_v12, %v7267_v29  ;;  %v8301_v5 = vld [vmem:[#allocation9 + $0x944] sm:$0xf0]  ;;  %v8267_v10 = vld [vmem:[#allocation9 + $0x6a4] sm:$0xf]  ;;  %v8297_v12 = vld [vmem:[#allocation9 + $0x8f4] sm:$0xf0] }
 0x3d1   : > { %4344 = vmatpush.bf16.msra.mxu0 %v7060_v13  ;;  %4357 = vmatpush.bf16.msra.mxu1 %v7188_v14  ;;  %v7032_v13 = vor.u32 %v8199_v6, %v7029_v7  ;;  %v7013_v14 = vld [vmem:[#allocation9 + $0x128] sm:$0xf0]  ;;  %v7428_v6 = vor.u32 %v8301_v5, %v7427_v0  ;;  %v8219_v7 = vld [vmem:[#allocation9 + $0x2e4] sm:$0xf]  ;;  %v7304_v24 = vor.u32 %v8267_v10, %v7301_v33  ;;  %v8293_v18 = vld [vmem:[#allocation9 + $0x8a4] sm:$0xf0] }
 0x3d2   : > { %v7016_v41 = vor.u32 %v8195_v8, %v7013_v14  ;;  %v7093_v8 = vld [vmem:[#allocation9 + $0x2b8] sm:$0xf0]  ;;  %v8263_v14 = vld [vmem:[#allocation9 + $0x654] sm:$0xf]  ;;  %v8259_v20 = vld [vmem:[#allocation9 + $0x604] sm:$0xf] }
 0x3d3   : > { %4370 = vmatpush.bf16.msra.mxu2 %v7316_v37  ;;  %v7251_v37 = vld [vmem:[#allocation9 + $0x5b0] sm:$0xf]  ;;  %v8307_v0 = vld [vmem:[#allocation9 + $0x9c4] sm:$0xf] }
 0x3d5   : > { %4345 = vmatpush.bf16.msra.mxu0 %v7044_v17  ;;  %4358 = vmatpush.bf16.msra.mxu1 %v7172_v19  ;;  %v8257_v17 = vld [vmem:[#allocation9 + $0x5d4] sm:$0xf0] }
 0x3d6   : > { %v7252_v19 = vor.u32 %v8257_v17, %v7251_v37 }
 0x3d7   : > { %4371 = vmatpush.bf16.msra.mxu2 %v7300_v22  ;;  %v7235_v22 = vld [vmem:[#allocation9 + $0x560] sm:$0xf] }
 0x3d9   : > { %4346 = vmatpush.bf16.msra.mxu0 %v7028_v23  ;;  %4359 = vmatpush.bf16.msra.mxu1 %v7156_v60  ;;  %v8253_v23 = vld [vmem:[#allocation9 + $0x584] sm:$0xf0]  ;;  %v6981_v60 = vld [vmem:[#allocation9 + $0x88] sm:$0xf0] }
 0x3da   : > { %v7236_v31 = vor.u32 %v8253_v23, %v7235_v22  ;;  %v6984_v35 = vor.u32 %v8187_v59, %v6981_v60  ;;  %v8289_v22 = vld [vmem:[#allocation9 + $0x854] sm:$0xf0] }
 0x3db   : > { %4372 = vmatpush.bf16.msra.mxu2 %v7284_v11 }
 0x3dd   : > { %4347 = vmatpush.bf16.msra.mxu0 %v7012_v28  ;;  %4360 = vmatpush.bf16.msra.mxu1 %v7140_v34  ;;  %v8183_v28 = vld [vmem:[#allocation9 + $0x14] sm:$0xf]  ;;  %v7160_v34 = vor.u32 %v8231_v25, %v7157_v26  ;;  %v7253_v26 = vld [vmem:[#allocation9 + $0x5d8] sm:$0xf0] }
 0x3de   : > { %v8255_v25 = vld [vmem:[#allocation9 + $0x5b4] sm:$0xf] }
 0x3df   : > { %4373 = vmatpush.bf16.msra.mxu2 %v7268_v2  ;;  %v8215_v2 = vld [vmem:[#allocation9 + $0x294] sm:$0xf] }
 0x3e1   : > { %4348 = vmatpush.bf16.msra.mxu0 %v6996_v45  ;;  %4361 = vmatpush.bf16.msra.mxu1 %v7124_v47  ;;  %v7459_v45 = vld [vmem:[#allocation9 + $0x9c0] sm:$0xf]  ;;  %v8309_v47 = vld [vmem:[#allocation9 + $0x9e4] sm:$0xf0] }
 0x3e2   : > { %v7460_v52 = vor.u32 %v8309_v47, %v7459_v45  ;;  %v8214_v45 = vld [vmem:[#allocation9 + $0x26c] sm:$0xf0]  ;;  %v8285_v47 = vld [vmem:[#allocation9 + $0x804] sm:$0xf0] }
 0x3e3   : > { %4374 = vmatpush.bf16.msra.mxu2 %v7252_v19  ;;  %v7396_v19 = vor.u32 %v8293_v18, %v7395_v40 }
 0x3e4   : > { %4382 = vmatpush.bf16.msra.mxu3 %v7460_v52  ;;  %v7237_v52 = vld [vmem:[#allocation9 + $0x588] sm:$0xf0] }
 0x3e5   : > { %4349 = vmatpush.bf16.msra.mxu0 %v6980_v53  ;;  %4362 = vmatpush.bf16.msra.mxu1 %v7108_v54  ;;  %v7144_v53 = vor.u32 %v8227_v48, %v7141_v50  ;;  %v8275_v54 = vld [vmem:[#allocation9 + $0x744] sm:$0xf] }
 0x3e6   : > { %v7336_v56 = vor.u32 %v8275_v54, %v7333_v55  ;;  %v8251_v50 = vld [vmem:[#allocation9 + $0x564] sm:$0xf]  ;;  %v7084_v55 = vor.u32 %v8214_v45, %v7083_v36  ;;  %v8242_v36 = vld [vmem:[#allocation9 + $0x49c] sm:$0xf0] }
 0x3e7   : > { %4375 = vmatpush.bf16.msra.mxu2 %v7236_v31  ;;  %v7240_v54 = vor.u32 %v8251_v50, %v7237_v52 }
 0x3e9   : > { %4350 = vmatpush.bf16.msra.mxu0 %v6964_v44  ;;  %4363 = vmatpush.bf16.msra.mxu1 %v7092_v9  ;;  %v6968_v44 = vor.u32 %v8183_v28, %v6965_v38  ;;  %v7109_v9 = vld [vmem:[#allocation9 + $0x308] sm:$0xf0] }
 0x3ea   : > { %v7112_v11 = vor.u32 %v8219_v7, %v7109_v9  ;;  %v7461_v9 = vld [vmem:[#allocation9 + $0x9e8] sm:$0xf0] }
 0x3eb   : > { %4376 = vmatpush.bf16.msra.mxu2 %v7220_v46  ;;  %v7363_v46 = vld [vmem:[#allocation9 + $0x7e0] sm:$0xf] }
 0x3ec   : > { %v7364_v48 = vor.u32 %v8285_v47, %v7363_v46  ;;  %v8291_v47 = vld [vmem:[#allocation9 + $0x884] sm:$0xf] }
 0x3ed   : > { %4395 = vmatpush.bf16.msrb.mxu0 %v7080_v27  ;;  %4408 = vmatpush.bf16.msrb.mxu1 %v7208_v32  ;;  %v7444_v27 = vor.u32 %v8305_v57, %v7443_v1  ;;  %v7411_v32 = vld [vmem:[#allocation9 + $0x8d0] sm:$0xf]  ;;  %v7067_v1 = vld [vmem:[#allocation9 + $0x1f8] sm:$0xf] }
 0x3ef   : > { %4421 = vmatpush.bf16.msrb.mxu2 %v7336_v56  ;;  %4383 = vmatpush.bf16.msra.mxu3 %v7444_v27  ;;  %v7347_v27 = vld [vmem:[#allocation9 + $0x790] sm:$0xf] }
 0x3f1   : > { %4396 = vmatpush.bf16.msrb.mxu0 %v7064_v42  ;;  %4409 = vmatpush.bf16.msrb.mxu1 %v7192_v51  ;;  %v8271_v42 = vld [vmem:[#allocation9 + $0x6f4] sm:$0xf]  ;;  %v7096_v51 = vor.u32 %v8215_v2, %v7093_v8 }
 0x3f2   : > { %v7320_v63 = vor.u32 %v8271_v42, %v7317_v62  ;;  %v8247_v62 = vld [vmem:[#allocation9 + $0x514] sm:$0xf] }
 0x3f3   : > { %4384 = vmatpush.bf16.msra.mxu3 %v7428_v6 }
 0x3f4   : > { %4422 = vmatpush.bf16.msrb.mxu2 %v7320_v63  ;;  %v7221_v63 = vld [vmem:[#allocation9 + $0x538] sm:$0xf0] }
 0x3f5   : > { %4397 = vmatpush.bf16.msrb.mxu0 %v7048_v30  ;;  %4410 = vmatpush.bf16.msrb.mxu1 %v7176_v21  ;;  %v9561_v30 = vld [vmem:[#allocation8 + $0x3] ss:$8 sm:$0xf]  ;;  %v7272_v21 = vor.u32 %v8259_v20, %v7269_v58  ;;  %v7224_v7 = vor.u32 %v8247_v62, %v7221_v63 }
 0x3f6   : > { %v2700_v29 = vperm.slane %v9561_v30, 0  ;;  %v2701_v56 = vperm.slane %v9561_v30, 1  ;;  %v7019_v58 = vld [vmem:[#allocation9 + $0x108] sm:$0xf]  ;;  %v2702_v50 = vperm.slane %v9561_v30, 2 }
 0x3f8   : > { %4423 = vmatpush.bf16.msrb.mxu2 %v7304_v24  ;;  %v7051_v24 = vld [vmem:[#allocation9 + $0x1a8] sm:$0xf] }
 0x3f9   : > { %4398 = vmatpush.bf16.msrb.mxu0 %v7032_v13  ;;  %4411 = vmatpush.bf16.msrb.mxu1 %v7160_v34  ;;  %v7412_v13 = vor.u32 %v8297_v12, %v7411_v32  ;;  %v8303_v32 = vld [vmem:[#allocation9 + $0x974] sm:$0xf]  ;;  %v7445_v12 = vld [vmem:[#allocation9 + $0x998] sm:$0xf0] }
 0x3fb   : > { %4385 = vmatpush.bf16.msra.mxu3 %v7412_v13  ;;  %v7448_v13 = vor.u32 %v8303_v32, %v7445_v12 }
 0x3fd   : > { %4399 = vmatpush.bf16.msrb.mxu0 %v7016_v41  ;;  %4412 = vmatpush.bf16.msrb.mxu1 %v7144_v53  ;;  %v7285_v41 = vld [vmem:[#allocation9 + $0x678] sm:$0xf0] }
 0x3fe   : > { %v7288_v37 = vor.u32 %v8263_v14, %v7285_v41  ;;  %v7035_v14 = vld [vmem:[#allocation9 + $0x158] sm:$0xf]  ;;  %v8299_v41 = vld [vmem:[#allocation9 + $0x924] sm:$0xf] }
 0x3ff   : > { %4386 = vmatpush.bf16.msra.mxu3 %v7396_v19 }
 0x400   : > { %4424 = vmatpush.bf16.msrb.mxu2 %v7288_v37  ;;  %v7429_v37 = vld [vmem:[#allocation9 + $0x948] sm:$0xf0] }
 0x401   : > { %4400 = vmatpush.bf16.msrb.mxu0 %v7000_v4  ;;  %4413 = vmatpush.bf16.msrb.mxu1 %v7128_v43  ;;  %v7379_v4 = vld [vmem:[#allocation9 + $0x830] sm:$0xf]  ;;  %v7348_v43 = vor.u32 %v8281_v3, %v7347_v27  ;;  %v7432_v19 = vor.u32 %v8299_v41, %v7429_v37 }
 0x402   : > { %v7380_v31 = vor.u32 %v8289_v22, %v7379_v4  ;;  %v8198_v4 = vld [vmem:[#allocation9 + $0x12c] sm:$0xf0]  ;;  %v7211_v22 = vld [vmem:[#allocation9 + $0x4c8] sm:$0xf] }
 0x403   : > { %v8238_v27 = vld [vmem:[#allocation9 + $0x44c] sm:$0xf0] }
 0x404   : > { %4425 = vmatpush.bf16.msrb.mxu2 %v7272_v21  ;;  %4387 = vmatpush.bf16.msra.mxu3 %v7380_v31  ;;  %v8230_v41 = vld [vmem:[#allocation9 + $0x3ac] sm:$0xf0] }
 0x405   : > { %4401 = vmatpush.bf16.msrb.mxu0 %v6984_v35  ;;  %4414 = vmatpush.bf16.msrb.mxu1 %v7112_v11  ;;  %v7256_v35 = vor.u32 %v8255_v25, %v7253_v26  ;;  %v7464_v11 = vor.u32 %v8307_v0, %v7461_v9  ;;  %v7020_v25 = vor.u32 %v8198_v4, %v7019_v58  ;;  %v6971_v0 = vld [vmem:[#allocation9 + $0x18] sm:$0xf]  ;;  %v8212_v9 = vld [vmem:[#allocation9 + $0x24c] sm:$0xf]  ;;  %v8279_v58 = vld [vmem:[#allocation9 + $0x794] sm:$0xf] }
 0x408   : > { %v3357_v15 = vpop.f32.mrf.mxu0  ;;  %v3370_v16 = vpop.f32.mrf.mxu1  ;;  %4426 = vmatpush.bf16.msrb.mxu2 %v7256_v35  ;;  %4388 = vmatpush.bf16.msra.mxu3 %v7364_v48  ;;  %v7195_v35 = vld [vmem:[#allocation9 + $0x478] sm:$0xf]  ;;  %v7397_v48 = vld [vmem:[#allocation9 + $0x8a8] sm:$0xf0] }
 0x409   : > { %4402 = vmatpush.bf16.msrb.mxu0 %v6968_v44  ;;  %v3358_v17 = vadd.f32 %v3357_v15, %v2700_v29  ;;  %4415 = vmatpush.bf16.msrb.mxu1 %v7096_v51  ;;  %v8210_v44 = vld [vmem:[#allocation9 + $0x21c] sm:$0xf0]  ;;  %v8206_v29 = vld [vmem:[#allocation9 + $0x1cc] sm:$0xf0]  ;;  %v7400_v3 = vor.u32 %v8291_v47, %v7397_v48  ;;  %v7115_v48 = vld [vmem:[#allocation9 + $0x2e8] sm:$0xf] }
 0x40a   : > { %v7068_v10 = vor.u32 %v8210_v44, %v7067_v1  ;;  %v7052_v2 = vor.u32 %v8206_v29, %v7051_v24  ;;  %v8202_v15 = vld [vmem:[#allocation9 + $0x17c] sm:$0xf0]  ;;  %v8190_v1 = vld [vmem:[#allocation9 + $0x8c] sm:$0xf0]  ;;  %v7179_v44 = vld [vmem:[#allocation9 + $0x428] sm:$0xf] }
 0x40b   : > { %v3371_v23 = vadd.f32 %v3370_v16, %v3358_v17  ;;  %v7036_v20 = vor.u32 %v8202_v15, %v7035_v14  ;;  %v7180_v63 = vor.u32 %v8238_v27, %v7179_v44  ;;  %v7365_v24 = vld [vmem:[#allocation9 + $0x808] sm:$0xf0]  ;;  %v7099_v27 = vld [vmem:[#allocation9 + $0x298] sm:$0xf] }
 0x40c   : > { %4427 = vmatpush.bf16.msrb.mxu2 %v7240_v54  ;;  %4389 = vmatpush.bf16.msra.mxu3 %v7348_v43  ;;  %v6987_v54 = vld [vmem:[#allocation9 + $0x68] sm:$0xf] }
 0x40d   : > { %v6988_v62 = vor.u32 %v8190_v1, %v6987_v54  ;;  %v7037_v54 = vld [vmem:[#allocation9 + $0x180] sm:$0xf0] }
 0x40f   : > { %v3383_v59 = vpop.f32.mrf.mxu2  ;;  %v3396_v60 = vpop.f32.mrf.mxu3 }
 0x410   : > { %v3384_v28 = vadd.f32 %v3383_v59, %v3371_v23  ;;  %v3359_v38 = vpop.f32.mrf.mxu0  ;;  %v3372_v34 = vpop.f32.mrf.mxu1  ;;  %4428 = vmatpush.bf16.msrb.mxu2 %v7224_v7  ;;  %4434 = vmatpush.bf16.msrb.mxu3 %v7464_v11  ;;  %v8246_v23 = vld [vmem:[#allocation9 + $0x4ec] sm:$0xf0]  ;;  %v8295_v59 = vld [vmem:[#allocation9 + $0x8d4] sm:$0xf]  ;;  %v8234_v7 = vld [vmem:[#allocation9 + $0x3fc] sm:$0xf0] }
 0x411   : > { %v7212_v26 = vor.u32 %v8246_v23, %v7211_v22  ;;  %v8194_v34 = vld [vmem:[#allocation9 + $0xdc] sm:$0xf0]  ;;  %v7085_v11 = vld [vmem:[#allocation9 + $0x270] sm:$0xf0] }
 0x412   : > { %v3397_v39 = vadd.f32 %v3396_v60, %v3384_v28  ;;  %v7413_v60 = vld [vmem:[#allocation9 + $0x8f8] sm:$0xf0]  ;;  %v7003_v28 = vld [vmem:[#allocation9 + $0xb8] sm:$0xf] }
 0x413   : > { %v7004_v52 = vor.u32 %v8194_v34, %v7003_v28 }
 0x414   : > { %v3556_v53 = vmax.f32 %v3397_v39, 0.0  ;;  %4435 = vmatpush.bf16.msrb.mxu3 %v7448_v13  ;;  %v7416_v39 = vor.u32 %v8295_v59, %v7413_v60  ;;  %v7131_v59 = vld [vmem:[#allocation9 + $0x338] sm:$0xf]  ;;  %v8226_v60 = vld [vmem:[#allocation9 + $0x35c] sm:$0xf0] }
 0x416   : > { %v9565_v57 = vpack.c.bf16 %v3556_v53, %v3556_v53  ;;  %v7196_v53 = vor.u32 %v8242_v36, %v7195_v35  ;;  %v7323_v35 = vld [vmem:[#allocation9 + $0x6f8] sm:$0xf]  ;;  %v8274_v36 = vld [vmem:[#allocation9 + $0x71c] sm:$0xf0] }
 0x417   : > { %v3385_v61 = vpop.f32.mrf.mxu2  ;;  %v3398_v42 = vpop.f32.mrf.mxu3 }
 0x418   : > { %4351 = vmatmul.bf16.vlgmr.msra.gmra.mxu0 %v9565_v57  ;;  %v3409_v5 = vpop.f32.mrf.mxu0  ;;  %v3422_v6 = vpop.f32.mrf.mxu1  ;;  %4436 = vmatpush.bf16.msrb.mxu3 %v7432_v19  ;;  %v8287_v61 = vld [vmem:[#allocation9 + $0x834] sm:$0xf]  ;;  %v7381_v42 = vld [vmem:[#allocation9 + $0x858] sm:$0xf0] }
 0x419   : > { %4447 = vmatpush.bf16.msra.mxu0 %v7084_v55  ;;  %v3410_v33 = vadd.f32 %v3409_v5, %v2701_v56  ;;  %v8186_v5 = vld [vmem:[#allocation9 + $0x3c] sm:$0xf0] }
 0x41a   : > { %v6972_v13 = vor.u32 %v8186_v5, %v6971_v0  ;;  %v7291_v0 = vld [vmem:[#allocation9 + $0x658] sm:$0xf]  ;;  %v8266_v5 = vld [vmem:[#allocation9 + $0x67c] sm:$0xf0] }
 0x41b   : > { %v3423_v8 = vadd.f32 %v3422_v6, %v3410_v33  ;;  %v7163_v6 = vld [vmem:[#allocation9 + $0x3d8] sm:$0xf]  ;;  %v8283_v33 = vld [vmem:[#allocation9 + $0x7e4] sm:$0xf] }
 0x41c   : > { %4437 = vmatpush.bf16.msrb.mxu3 %v7416_v39  ;;  %v7368_v37 = vor.u32 %v8283_v33, %v7365_v24  ;;  %v8192_v33 = vld [vmem:[#allocation9 + $0xbc] sm:$0xf]  ;;  %v7005_v24 = vld [vmem:[#allocation9 + $0xe0] sm:$0xf0] }
 0x41d   : > { %4448 = vmatpush.bf16.msra.mxu0 %v7068_v10  ;;  %v7384_v10 = vor.u32 %v8287_v61, %v7381_v42  ;;  %v8196_v61 = vld [vmem:[#allocation9 + $0x10c] sm:$0xf] }
 0x41f   : > { %v3435_v16 = vpop.f32.mrf.mxu2  ;;  %v3448_v51 = vpop.f32.mrf.mxu3 }
 0x420   : > { %v3436_v17 = vadd.f32 %v3435_v16, %v3423_v8  ;;  %v3411_v40 = vpop.f32.mrf.mxu0  ;;  %v3424_v18 = vpop.f32.mrf.mxu1  ;;  %4438 = vmatpush.bf16.msrb.mxu3 %v7400_v3  ;;  %v7088_v16 = vor.u32 %v8212_v9, %v7085_v11  ;;  %v8218_v3 = vld [vmem:[#allocation9 + $0x2bc] sm:$0xf0]  ;;  %v7275_v11 = vld [vmem:[#allocation9 + $0x608] sm:$0xf] }
 0x421   : > { %4449 = vmatpush.bf16.msra.mxu0 %v7052_v2  ;;  %v7164_v2 = vor.u32 %v8234_v7, %v7163_v6  ;;  %v8208_v40 = vld [vmem:[#allocation9 + $0x1fc] sm:$0xf]  ;;  %v7069_v18 = vld [vmem:[#allocation9 + $0x220] sm:$0xf0]  ;;  %v7100_v6 = vor.u32 %v8218_v3, %v7099_v27 }
 0x422   : > { %v3449_v21 = vadd.f32 %v3448_v51, %v3436_v17  ;;  %v7147_v51 = vld [vmem:[#allocation9 + $0x388] sm:$0xf]  ;;  %v7072_v23 = vor.u32 %v8208_v40, %v7069_v18  ;;  %v8236_v40 = vld [vmem:[#allocation9 + $0x42c] sm:$0xf]  ;;  %v7181_v18 = vld [vmem:[#allocation9 + $0x450] sm:$0xf0] }
 0x423   : > { %v7339_v17 = vld [vmem:[#allocation9 + $0x748] sm:$0xf]  ;;  %v7148_v4 = vor.u32 %v8230_v41, %v7147_v51  ;;  %v7259_v51 = vld [vmem:[#allocation9 + $0x5b8] sm:$0xf]  ;;  %v8188_v41 = vld [vmem:[#allocation9 + $0x6c] sm:$0xf] }
 0x424   : > { %v3557_v31 = vmax.f32 %v3449_v21, 0.0  ;;  %4439 = vmatpush.bf16.msrb.mxu3 %v7384_v10  ;;  %v7349_v21 = vld [vmem:[#allocation9 + $0x7b8] sm:$0xf0]  ;;  %v7292_v10 = vor.u32 %v8266_v5, %v7291_v0  ;;  %v7133_v5 = vld [vmem:[#allocation9 + $0x360] sm:$0xf0] }
 0x425   : > { %4450 = vmatpush.bf16.msra.mxu0 %v7036_v20  ;;  %v8278_v20 = vld [vmem:[#allocation9 + $0x76c] sm:$0xf0]  ;;  %v7352_v28 = vor.u32 %v8279_v58, %v7349_v21  ;;  %v7184_v58 = vor.u32 %v8236_v40, %v7181_v18  ;;  %v7243_v21 = vld [vmem:[#allocation9 + $0x568] sm:$0xf]  ;;  %v8224_v0 = vld [vmem:[#allocation9 + $0x33c] sm:$0xf] }
 0x426   : > { %v9568_v38 = vpack.c.bf16 %v3557_v31, %v3557_v31  ;;  %v7340_v31 = vor.u32 %v8278_v20, %v7339_v17  ;;  %v8258_v17 = vld [vmem:[#allocation9 + $0x5dc] sm:$0xf0]  ;;  %v7293_v40 = vld [vmem:[#allocation9 + $0x680] sm:$0xf0] }
 0x427   : > { %v3437_v45 = vpop.f32.mrf.mxu2  ;;  %v3450_v46 = vpop.f32.mrf.mxu3  ;;  %v7260_v20 = vor.u32 %v8258_v17, %v7259_v51  ;;  %v8298_v51 = vld [vmem:[#allocation9 + $0x8fc] sm:$0xf0]  ;;  %v8264_v17 = vld [vmem:[#allocation9 + $0x65c] sm:$0xf] }
 0x428   : > { %4364 = vmatmul.bf16.vlgmr.msra.gmra.mxu1 %v9568_v38  ;;  %4403 = vmatmul.bf16.vlgmr.msrb.gmra.mxu0 %v9565_v57  ;;  %v7132_v46 = vor.u32 %v8226_v60, %v7131_v59  ;;  %v8232_v59 = vld [vmem:[#allocation9 + $0x3dc] sm:$0xf]  ;;  %v7165_v60 = vld [vmem:[#allocation9 + $0x400] sm:$0xf0] }
 0x429   : > { %4451 = vmatpush.bf16.msra.mxu0 %v7020_v25  ;;  %4460 = vmatpush.bf16.msra.mxu1 %v7212_v26  ;;  %v3461_v55 = vpop.f32.mrf.mxu0  ;;  %v3474_v56 = vpop.f32.mrf.mxu1  ;;  %v8204_v25 = vld [vmem:[#allocation9 + $0x1ac] sm:$0xf]  ;;  %v7053_v26 = vld [vmem:[#allocation9 + $0x1d0] sm:$0xf0] }
 0x42a   : > { %v3462_v43 = vadd.f32 %v3461_v55, %v2702_v50  ;;  %4440 = vmatpush.bf16.msrb.mxu3 %v7368_v37  ;;  %v7056_v47 = vor.u32 %v8204_v25, %v7053_v26  ;;  %v8222_v50 = vld [vmem:[#allocation9 + $0x30c] sm:$0xf0]  ;;  %v7307_v55 = vld [vmem:[#allocation9 + $0x6a8] sm:$0xf]  ;;  %v6989_v37 = vld [vmem:[#allocation9 + $0x90] sm:$0xf0] }
 0x42b   : > { %v7116_v1 = vor.u32 %v8222_v50, %v7115_v48  ;;  %v8250_v48 = vld [vmem:[#allocation9 + $0x53c] sm:$0xf0]  ;;  %v7467_v50 = vld [vmem:[#allocation9 + $0x9c8] sm:$0xf] }
 0x42c   : > { %v3475_v29 = vadd.f32 %v3474_v56, %v3462_v43  ;;  %v8270_v56 = vld [vmem:[#allocation9 + $0x6cc] sm:$0xf0]  ;;  %v7021_v43 = vld [vmem:[#allocation9 + $0x130] sm:$0xf0] }
 0x42d   : > { %4452 = vmatpush.bf16.msra.mxu0 %v7004_v52  ;;  %4461 = vmatpush.bf16.msra.mxu1 %v7196_v53  ;;  %v7324_v52 = vor.u32 %v8274_v36, %v7323_v35  ;;  %v8200_v53 = vld [vmem:[#allocation9 + $0x15c] sm:$0xf]  ;;  %v7308_v42 = vor.u32 %v8270_v56, %v7307_v55  ;;  %v7024_v7 = vor.u32 %v8196_v61, %v7021_v43  ;;  %v7149_v55 = vld [vmem:[#allocation9 + $0x3b0] sm:$0xf0]  ;;  %v8276_v56 = vld [vmem:[#allocation9 + $0x74c] sm:$0xf] }
 0x42e   : > { %4441 = vmatpush.bf16.msrb.mxu3 %v7352_v28  ;;  %v7040_v44 = vor.u32 %v8200_v53, %v7037_v54  ;;  %v8310_v53 = vld [vmem:[#allocation9 + $0x9ec] sm:$0xf0]  ;;  %v8228_v54 = vld [vmem:[#allocation9 + $0x38c] sm:$0xf] }
 0x42f   : > { %v7468_v3 = vor.u32 %v8310_v53, %v7467_v50  ;;  %v7152_v61 = vor.u32 %v8228_v54, %v7149_v55  ;;  %v8282_v50 = vld [vmem:[#allocation9 + $0x7bc] sm:$0xf0]  ;;  %v7229_v53 = vld [vmem:[#allocation9 + $0x540] sm:$0xf0]  ;;  %v8308_v54 = vld [vmem:[#allocation9 + $0x9cc] sm:$0xf] }
 0x430   : > { %v7469_v55 = vld [vmem:[#allocation9 + $0x9f0] sm:$0xf0] }
 0x431   : > { %4453 = vmatpush.bf16.msra.mxu0 %v6988_v62  ;;  %4462 = vmatpush.bf16.msra.mxu1 %v7180_v63  ;;  %v3463_v14 = vpop.f32.mrf.mxu0  ;;  %v3476_v15 = vpop.f32.mrf.mxu1  ;;  %v8244_v62 = vld [vmem:[#allocation9 + $0x4cc] sm:$0xf]  ;;  %v7213_v63 = vld [vmem:[#allocation9 + $0x4f0] sm:$0xf0] }
 0x432   : > { %v3487_v32 = vpop.f32.mrf.mxu2  ;;  %v3500_v12 = vpop.f32.mrf.mxu3  ;;  %v7216_v9 = vor.u32 %v8244_v62, %v7213_v63  ;;  %v8306_v63 = vld [vmem:[#allocation9 + $0x99c] sm:$0xf0] }
 0x433   : > { %v3488_v8 = vadd.f32 %v3487_v32, %v3475_v29  ;;  %v8262_v29 = vld [vmem:[#allocation9 + $0x62c] sm:$0xf0]  ;;  %v8240_v32 = vld [vmem:[#allocation9 + $0x47c] sm:$0xf] }
 0x434   : > { %v7276_v15 = vor.u32 %v8262_v29, %v7275_v11 }
 0x435   : > { %v3501_v19 = vadd.f32 %v3500_v12, %v3488_v8  ;;  %4454 = vmatpush.bf16.msra.mxu0 %v6972_v13  ;;  %4463 = vmatpush.bf16.msra.mxu1 %v7164_v2  ;;  %v7197_v12 = vld [vmem:[#allocation9 + $0x4a0] sm:$0xf0]  ;;  %v2703_v13 = vperm.slane %v9561_v30, 3  ;;  %v7008_v2 = vor.u32 %v8192_v33, %v7005_v24  ;;  %v6992_v30 = vor.u32 %v8188_v41, %v6989_v37  ;;  %v7435_v24 = vld [vmem:[#allocation9 + $0x928] sm:$0xf] }
 0x436   : > { %v7136_v33 = vor.u32 %v8224_v0, %v7133_v5  ;;  %v8216_v41 = vld [vmem:[#allocation9 + $0x29c] sm:$0xf]  ;;  %v7101_v37 = vld [vmem:[#allocation9 + $0x2c0] sm:$0xf0] }
 0x437   : > { %v3558_v22 = vmax.f32 %v3501_v19, 0.0  ;;  %v7421_v0 = vld [vmem:[#allocation9 + $0x900] sm:$0xf0] }
 0x438   : > { %4416 = vmatmul.bf16.vlgmr.msrb.gmra.mxu1 %v9568_v38  ;;  %4455 = vmatmul.bf16.vlgmr.msra.gmra.mxu0 %v9565_v57 }
 0x439   : > { %4499 = vmatpush.bf16.msrb.mxu0 %v7088_v16  ;;  %v9573_v34 = vpack.c.bf16 %v3558_v22, %v3558_v22  ;;  %4464 = vmatpush.bf16.msra.mxu1 %v7148_v4  ;;  %v7200_v16 = vor.u32 %v8240_v32, %v7197_v12  ;;  %v8184_v4 = vld [vmem:[#allocation9 + $0x1c] sm:$0xf]  ;;  %v6973_v22 = vld [vmem:[#allocation9 + $0x40] sm:$0xf0]  ;;  %v8302_v32 = vld [vmem:[#allocation9 + $0x94c] sm:$0xf0] }
 0x43a   : > { %v3489_v39 = vpop.f32.mrf.mxu2  ;;  %v3502_v45 = vpop.f32.mrf.mxu3  ;;  %v6976_v28 = vor.u32 %v8184_v4, %v6973_v22  ;;  %v7117_v12 = vld [vmem:[#allocation9 + $0x310] sm:$0xf0] }
 0x43b   : > { %4377 = vmatmul.bf16.vlgmr.msra.gmra.mxu2 %v9573_v34  ;;  %v7277_v4 = vld [vmem:[#allocation9 + $0x630] sm:$0xf0] }
 0x43c   : > { %4473 = vmatpush.bf16.msra.mxu2 %v7340_v31 }
 0x43d   : > { %4500 = vmatpush.bf16.msrb.mxu0 %v7072_v23  ;;  %4465 = vmatpush.bf16.msra.mxu1 %v7132_v46  ;;  %v8254_v23 = vld [vmem:[#allocation9 + $0x58c] sm:$0xf0]  ;;  %v7168_v46 = vor.u32 %v8232_v59, %v7165_v60  ;;  %v7387_v59 = vld [vmem:[#allocation9 + $0x838] sm:$0xf]  ;;  %v8290_v60 = vld [vmem:[#allocation9 + $0x85c] sm:$0xf0] }
 0x43e   : > { %v7244_v45 = vor.u32 %v8254_v23, %v7243_v21  ;;  %v8260_v21 = vld [vmem:[#allocation9 + $0x60c] sm:$0xf] }
 0x43f   : > { %v7280_v23 = vor.u32 %v8260_v21, %v7277_v4 }
 0x440   : > { %4474 = vmatpush.bf16.msra.mxu2 %v7324_v52 }
 0x441   : > { %4501 = vmatpush.bf16.msrb.mxu0 %v7056_v47  ;;  %4466 = vmatpush.bf16.msra.mxu1 %v7116_v1  ;;  %v7227_v47 = vld [vmem:[#allocation9 + $0x518] sm:$0xf]  ;;  %v7341_v1 = vld [vmem:[#allocation9 + $0x770] sm:$0xf0] }
 0x442   : > { %v7228_v27 = vor.u32 %v8250_v48, %v7227_v47  ;;  %v7344_v62 = vor.u32 %v8276_v56, %v7341_v1  ;;  %v7355_v48 = vld [vmem:[#allocation9 + $0x798] sm:$0xf]  ;;  %v7472_v1 = vor.u32 %v8308_v54, %v7469_v55 }
 0x444   : > { %4475 = vmatpush.bf16.msra.mxu2 %v7308_v42  ;;  %v7451_v42 = vld [vmem:[#allocation9 + $0x978] sm:$0xf] }
 0x445   : > { %4502 = vmatpush.bf16.msrb.mxu0 %v7040_v44  ;;  %4467 = vmatpush.bf16.msra.mxu1 %v7100_v6  ;;  %v7452_v11 = vor.u32 %v8306_v63, %v7451_v42  ;;  %v7437_v42 = vld [vmem:[#allocation9 + $0x950] sm:$0xf0]  ;;  %v8296_v63 = vld [vmem:[#allocation9 + $0x8dc] sm:$0xf] }
 0x446   : > { %v7424_v5 = vor.u32 %v8296_v63, %v7421_v0 }
 0x448   : > { %4476 = vmatpush.bf16.msra.mxu2 %v7292_v10  ;;  %4468 = vmatmul.bf16.vlgmr.msra.gmra.mxu1 %v9568_v38  ;;  %v7325_v10 = vld [vmem:[#allocation9 + $0x720] sm:$0xf0] }
 0x449   : > { %4503 = vmatpush.bf16.msrb.mxu0 %v7024_v7  ;;  %4512 = vmatpush.bf16.msrb.mxu1 %v7216_v9  ;;  %v3513_v8 = vpop.f32.mrf.mxu0  ;;  %v3526_v14 = vpop.f32.mrf.mxu1  ;;  %v8272_v9 = vld [vmem:[#allocation9 + $0x6fc] sm:$0xf] }
 0x44a   : > { %v3514_v19 = vadd.f32 %v3513_v8, %v2703_v13  ;;  %v7328_v29 = vor.u32 %v8272_v9, %v7325_v10  ;;  %v8268_v13 = vld [vmem:[#allocation9 + $0x6ac] sm:$0xf]  ;;  %v7436_v8 = vor.u32 %v8302_v32, %v7435_v24  ;;  %v8288_v10 = vld [vmem:[#allocation9 + $0x83c] sm:$0xf] }
 0x44b   : > { %4429 = vmatmul.bf16.vlgmr.msrb.gmra.mxu2 %v9573_v34  ;;  %v8284_v24 = vld [vmem:[#allocation9 + $0x7ec] sm:$0xf] }
 0x44c   : > { %4477 = vmatpush.bf16.msra.mxu2 %v7276_v15  ;;  %v3527_v31 = vadd.f32 %v3526_v14, %v3514_v19  ;;  %v7419_v15 = vld [vmem:[#allocation9 + $0x8d8] sm:$0xf]  ;;  %v7104_v19 = vor.u32 %v8216_v41, %v7101_v37 }
 0x44d   : > { %4504 = vmatpush.bf16.msrb.mxu0 %v7008_v2  ;;  %4513 = vmatpush.bf16.msrb.mxu1 %v7200_v16  ;;  %v7309_v2 = vld [vmem:[#allocation9 + $0x6d0] sm:$0xf0]  ;;  %v7420_v18 = vor.u32 %v8298_v51, %v7419_v15 }
 0x44e   : > { %v7312_v16 = vor.u32 %v8268_v13, %v7309_v2  ;;  %v3689_v2 = vld [vmem:[#allocation8 + $0x4] ss:$8 sm:$0xf] }
 0x450   : > { %4478 = vmatpush.bf16.msra.mxu2 %v7260_v20  ;;  %v7403_v20 = vld [vmem:[#allocation9 + $0x888] sm:$0xf] }
 0x451   : > { %v3539_v25 = vpop.f32.mrf.mxu2  ;;  %v3552_v26 = vpop.f32.mrf.mxu3  ;;  %4505 = vmatpush.bf16.msrb.mxu0 %v6992_v30  ;;  %4514 = vmatpush.bf16.msrb.mxu1 %v7184_v58  ;;  %v7296_v30 = vor.u32 %v8264_v17, %v7293_v40  ;;  %v8294_v58 = vld [vmem:[#allocation9 + $0x8ac] sm:$0xf0]  ;;  %v3696_v40 = vperm.slane %v3689_v2, 1 }
 0x452   : > { %v3540_v35 = vadd.f32 %v3539_v25, %v3527_v31  ;;  %v3515_v36 = vpop.f32.mrf.mxu0  ;;  %v3528_v39 = vpop.f32.mrf.mxu1  ;;  %v7404_v22 = vor.u32 %v8294_v58, %v7403_v20  ;;  %v8256_v31 = vld [vmem:[#allocation9 + $0x5bc] sm:$0xf]  ;;  %v7261_v25 = vld [vmem:[#allocation9 + $0x5e0] sm:$0xf0] }
 0x453   : > { %v8286_v36 = vld [vmem:[#allocation9 + $0x80c] sm:$0xf0]  ;;  %v8252_v39 = vld [vmem:[#allocation9 + $0x56c] sm:$0xf] }
 0x454   : > { %v3553_v52 = vadd.f32 %v3552_v26, %v3540_v35  ;;  %4479 = vmatpush.bf16.msra.mxu2 %v7244_v45  ;;  %v7388_v26 = vor.u32 %v8290_v60, %v7387_v59  ;;  %v7371_v35 = vld [vmem:[#allocation9 + $0x7e8] sm:$0xf]  ;;  %v7245_v45 = vld [vmem:[#allocation9 + $0x590] sm:$0xf0] }
 0x455   : > { %4506 = vmatpush.bf16.msrb.mxu0 %v6976_v28  ;;  %4515 = vmatpush.bf16.msrb.mxu1 %v7168_v46  ;;  %v7264_v28 = vor.u32 %v8256_v31, %v7261_v25  ;;  %v7372_v46 = vor.u32 %v8286_v36, %v7371_v35  ;;  %v7248_v47 = vor.u32 %v8252_v39, %v7245_v45 }
 0x456   : > { %v3559_v44 = vmax.f32 %v3553_v52, 0.0  ;;  %v8248_v52 = vld [vmem:[#allocation9 + $0x51c] sm:$0xf] }
 0x457   : > { %v7232_v56 = vor.u32 %v8248_v52, %v7229_v53 }
 0x458   : > { %v9581_v43 = vpack.c.bf16 %v3559_v44, %v3559_v44  ;;  %4507 = vmatmul.bf16.vlgmr.msrb.gmra.mxu0 %v9565_v57  ;;  %4480 = vmatpush.bf16.msra.mxu2 %v7228_v27  ;;  %v8220_v57 = vld [vmem:[#allocation9 + $0x2ec] sm:$0xf]  ;;  %v8304_v44 = vld [vmem:[#allocation9 + $0x97c] sm:$0xf]  ;;  %v7453_v27 = vld [vmem:[#allocation9 + $0x9a0] sm:$0xf0] }
 0x459   : > { %v3541_v6 = vpop.f32.mrf.mxu2  ;;  %v3554_v7 = vpop.f32.mrf.mxu3  ;;  %4516 = vmatpush.bf16.msrb.mxu1 %v7152_v61  ;;  %v7120_v14 = vor.u32 %v8220_v57, %v7117_v12  ;;  %v8300_v61 = vld [vmem:[#allocation9 + $0x92c] sm:$0xf]  ;;  %v8280_v57 = vld [vmem:[#allocation9 + $0x79c] sm:$0xf] }
 0x45a   : > { %4390 = vmatmul.bf16.vlgmr.msra.gmra.mxu3 %v9581_v43  ;;  %v8292_v6 = vld [vmem:[#allocation9 + $0x88c] sm:$0xf]  ;;  %v7405_v7 = vld [vmem:[#allocation9 + $0x8b0] sm:$0xf0] }
 0x45b   : > { %4486 = vmatpush.bf16.msra.mxu3 %v7468_v3  ;;  %4481 = vmatmul.bf16.vlgmr.msra.gmra.mxu2 %v9573_v34  ;;  %v7456_v3 = vor.u32 %v8304_v44, %v7453_v27  ;;  %v7408_v9 = vor.u32 %v8292_v6, %v7405_v7  ;;  %v3698_v44 = vperm.slane %v3689_v2, 3 }
 0x45c   : > { %4525 = vmatpush.bf16.msrb.mxu2 %v7344_v62  ;;  %v7440_v62 = vor.u32 %v8300_v61, %v7437_v42 }
 0x45d   : > { %4517 = vmatpush.bf16.msrb.mxu1 %v7136_v33 }
 0x45f   : > { %4487 = vmatpush.bf16.msra.mxu3 %v7452_v11  ;;  %v7389_v11 = vld [vmem:[#allocation9 + $0x860] sm:$0xf0] }
 0x460   : > { %4526 = vmatpush.bf16.msrb.mxu2 %v7328_v29  ;;  %v7392_v33 = vor.u32 %v8288_v10, %v7389_v11  ;;  %v7373_v29 = vld [vmem:[#allocation9 + $0x810] sm:$0xf0] }
 0x461   : > { %4518 = vmatpush.bf16.msrb.mxu1 %v7120_v14  ;;  %v7376_v32 = vor.u32 %v8284_v24, %v7373_v29  ;;  %v3695_v14 = vperm.slane %v3689_v2, 0 }
 0x463   : > { %4488 = vmatpush.bf16.msra.mxu3 %v7436_v8 }
 0x464   : > { %4527 = vmatpush.bf16.msrb.mxu2 %v7312_v16 }
 0x465   : > { %4519 = vmatpush.bf16.msrb.mxu1 %v7104_v19 }
 0x467   : > { %4489 = vmatpush.bf16.msra.mxu3 %v7420_v18 }
 0x468   : > { %4528 = vmatpush.bf16.msrb.mxu2 %v7296_v30  ;;  %4520 = vmatmul.bf16.vlgmr.msrb.gmra.mxu1 %v9568_v38  ;;  %v7356_v38 = vor.u32 %v8282_v50, %v7355_v48 }
 0x46a   : > { %4442 = vmatmul.bf16.vlgmr.msrb.gmra.mxu3 %v9581_v43 }
 0x46b   : > { %4490 = vmatpush.bf16.msra.mxu3 %v7404_v22 }
 0x46c   : > { %4529 = vmatpush.bf16.msrb.mxu2 %v7280_v23 }
 0x46f   : > { %4491 = vmatpush.bf16.msra.mxu3 %v7388_v26 }
 0x470   : > { %4530 = vmatpush.bf16.msrb.mxu2 %v7264_v28 }
 0x473   : > { %4492 = vmatpush.bf16.msra.mxu3 %v7372_v46 }
 0x474   : > { %4531 = vmatpush.bf16.msrb.mxu2 %v7248_v47 }
 0x477   : > { %4493 = vmatpush.bf16.msra.mxu3 %v7356_v38 }
 0x478   : > { %4532 = vmatpush.bf16.msrb.mxu2 %v7232_v56 }
 0x47a   : > { %4494 = vmatmul.bf16.vlgmr.msra.gmra.mxu3 %v9581_v43 }
 0x47b   : > { %4538 = vmatpush.bf16.msrb.mxu3 %v7472_v1  ;;  %4533 = vmatmul.bf16.vlgmr.msrb.gmra.mxu2 %v9573_v34  ;;  %v7357_v34 = vld [vmem:[#allocation9 + $0x7c0] sm:$0xf0] }
 0x47c   : > { %v7360_v12 = vor.u32 %v8280_v57, %v7357_v34 }
 0x47f   : > { %4539 = vmatpush.bf16.msrb.mxu3 %v7456_v3 }
 0x483   : > { %4540 = vmatpush.bf16.msrb.mxu3 %v7440_v62 }
 0x487   : > { %4541 = vmatpush.bf16.msrb.mxu3 %v7424_v5 }
 0x48b   : > { %4542 = vmatpush.bf16.msrb.mxu3 %v7408_v9 }
 0x48f   : > { %4543 = vmatpush.bf16.msrb.mxu3 %v7392_v33 }
 0x493   : > { %4544 = vmatpush.bf16.msrb.mxu3 %v7376_v32 }
 0x495   : > { %v4352_v13 = vpop.f32.mrf.mxu0 }
 0x496   : > { %v4353_v15 = vadd.f32 %v4352_v13, %v3695_v14  ;;  %v7595_v14 = vld [vmem:[#allocation9 + $0x4d0] sm:$0xf] }
 0x497   : > { %4545 = vmatpush.bf16.msrb.mxu3 %v7360_v12 }
 0x49a   : > { %4546 = vmatmul.bf16.vlgmr.msrb.gmra.mxu3 %v9581_v43  ;;  %v3697_v43 = vperm.slane %v3689_v2, 2  ;;  %v7531_v2 = vld [vmem:[#allocation9 + $0x250] sm:$0xf] }
 0x49d   : > { %v4354_v8 = vpop.f32.mrf.mxu0 }
 0x49e   : > { %v8326_v8 = vld [vmem:[#allocation9 + $0x274] sm:$0xf0] }
 0x4a5   : > { %v4365_v16 = vpop.f32.mrf.mxu1  ;;  %v4404_v51 = vpop.f32.mrf.mxu0 }
 0x4a6   : > { %v4366_v41 = vadd.f32 %v4365_v16, %v4353_v15  ;;  %v4405_v18 = vadd.f32 %v4404_v51, %v3696_v40  ;;  %v7532_v15 = vor.u32 %v8326_v8, %v7531_v2  ;;  %v8342_v16 = vld [vmem:[#allocation9 + $0x4f4] sm:$0xf0]  ;;  %v7659_v51 = vld [vmem:[#allocation9 + $0x750] sm:$0xf] }
 0x4a7   : > { %v7723_v40 = vld [vmem:[#allocation9 + $0x9d0] sm:$0xf] }
 0x4a8   : > { %5023 = vmatpush.bf16.msra.mxu0 %v7532_v15  ;;  %v8318_v15 = vld [vmem:[#allocation9 + $0x134] sm:$0xf0] }
 0x4ad   : > { %v4367_v37 = vpop.f32.mrf.mxu1  ;;  %v4406_v17 = vpop.f32.mrf.mxu0 }
 0x4ae   : > { %v7596_v37 = vor.u32 %v8342_v16, %v7595_v14  ;;  %v7499_v14 = vld [vmem:[#allocation9 + $0x110] sm:$0xf] }
 0x4af   : > { %v7563_v16 = vld [vmem:[#allocation9 + $0x390] sm:$0xf] }
 0x4b0   : > { %5036 = vmatpush.bf16.msra.mxu1 %v7596_v37  ;;  %v7627_v37 = vld [vmem:[#allocation9 + $0x610] sm:$0xf] }
 0x4b5   : > { %v4417_v19 = vpop.f32.mrf.mxu1  ;;  %v4456_v30 = vpop.f32.mrf.mxu0 }
 0x4b6   : > { %v4418_v20 = vadd.f32 %v4417_v19, %v4405_v18  ;;  %v4457_v23 = vadd.f32 %v4456_v30, %v3697_v43  ;;  %v8374_v18 = vld [vmem:[#allocation9 + $0x9f4] sm:$0xf0]  ;;  %v7523_v19 = vld [vmem:[#allocation9 + $0x200] sm:$0xf] }
 0x4b7   : > { %v7724_v30 = vor.u32 %v8374_v18, %v7723_v40  ;;  %v7651_v43 = vld [vmem:[#allocation9 + $0x700] sm:$0xf] }
 0x4b9   : > { %5062 = vmatpush.bf16.msra.mxu3 %v7724_v30  ;;  %v8366_v30 = vld [vmem:[#allocation9 + $0x8b4] sm:$0xf0] }
 0x4bd   : > { %v4419_v21 = vpop.f32.mrf.mxu1  ;;  %v4458_v22 = vpop.f32.mrf.mxu0 }
 0x4be   : > { %v4378_v58 = vpop.f32.mrf.mxu2  ;;  %v8340_v21 = vld [vmem:[#allocation9 + $0x4a4] sm:$0xf0] }
 0x4bf   : > { %v4379_v4 = vadd.f32 %v4378_v58, %v4366_v41  ;;  %v8358_v41 = vld [vmem:[#allocation9 + $0x774] sm:$0xf0]  ;;  %v7587_v58 = vld [vmem:[#allocation9 + $0x480] sm:$0xf] }
 0x4c0   : > { %v7660_v17 = vor.u32 %v8358_v41, %v7659_v51  ;;  %v7588_v22 = vor.u32 %v8340_v21, %v7587_v58  ;;  %v7500_v51 = vor.u32 %v8318_v15, %v7499_v14  ;;  %v8334_v41 = vld [vmem:[#allocation9 + $0x3b4] sm:$0xf0]  ;;  %v7491_v58 = vld [vmem:[#allocation9 + $0xc0] sm:$0xf]  ;;  %v8316_v21 = vld [vmem:[#allocation9 + $0xe4] sm:$0xf0] }
 0x4c1   : > { %v7564_v40 = vor.u32 %v8334_v41, %v7563_v16  ;;  %v8323_v14 = vld [vmem:[#allocation9 + $0x204] sm:$0xf]  ;;  %v7525_v15 = vld [vmem:[#allocation9 + $0x228] sm:$0xf0] }
 0x4c2   : > { %5049 = vmatpush.bf16.msra.mxu2 %v7660_v17  ;;  %5037 = vmatpush.bf16.msra.mxu1 %v7588_v22  ;;  %v8350_v17 = vld [vmem:[#allocation9 + $0x634] sm:$0xf0]  ;;  %v7492_v22 = vor.u32 %v8316_v21, %v7491_v58  ;;  %v8339_v41 = vld [vmem:[#allocation9 + $0x484] sm:$0xf]  ;;  %v8321_v21 = vld [vmem:[#allocation9 + $0x1b4] sm:$0xf] }
 0x4c3   : > { %v7628_v18 = vor.u32 %v8350_v17, %v7627_v37  ;;  %v7589_v37 = vld [vmem:[#allocation9 + $0x4a8] sm:$0xf0]  ;;  %v8355_v17 = vld [vmem:[#allocation9 + $0x704] sm:$0xf] }
 0x4c5   : > { %v4469_v60 = vpop.f32.mrf.mxu1 }
 0x4c6   : > { %v4380_v59 = vpop.f32.mrf.mxu2  ;;  %v4470_v31 = vadd.f32 %v4469_v60, %v4457_v23  ;;  %v8356_v23 = vld [vmem:[#allocation9 + $0x724] sm:$0xf0] }
 0x4c7   : > { %v7715_v59 = vld [vmem:[#allocation9 + $0x980] sm:$0xf]  ;;  %v7652_v60 = vor.u32 %v8356_v23, %v7651_v43  ;;  %v8332_v43 = vld [vmem:[#allocation9 + $0x364] sm:$0xf0] }
 0x4c8   : > { %v7619_v23 = vld [vmem:[#allocation9 + $0x5c0] sm:$0xf] }
 0x4c9   : > { %5050 = vmatpush.bf16.msra.mxu2 %v7652_v60 }
 0x4cd   : > { %v4471_v26 = vpop.f32.mrf.mxu1 }
 0x4ce   : > { %v4430_v25 = vpop.f32.mrf.mxu2  ;;  %v8322_v26 = vld [vmem:[#allocation9 + $0x1d4] sm:$0xf0] }
 0x4cf   : > { %v4431_v28 = vadd.f32 %v4430_v25, %v4418_v20  ;;  %v8324_v20 = vld [vmem:[#allocation9 + $0x224] sm:$0xf0]  ;;  %v7515_v25 = vld [vmem:[#allocation9 + $0x1b0] sm:$0xf] }
 0x4d5   : > { %v4508_v35 = vpop.f32.mrf.mxu0 }
 0x4d6   : > { %v4432_v36 = vpop.f32.mrf.mxu2  ;;  %v4509_v62 = vadd.f32 %v4508_v35, %v3698_v44  ;;  %v7579_v35 = vld [vmem:[#allocation9 + $0x430] sm:$0xf]  ;;  %v8352_v44 = vld [vmem:[#allocation9 + $0x684] sm:$0xf0] }
 0x4d7   : > { %v8338_v36 = vld [vmem:[#allocation9 + $0x454] sm:$0xf0] }
 0x4dd   : > { %v4391_v39 = vpop.f32.mrf.mxu3  ;;  %v4510_v45 = vpop.f32.mrf.mxu0 }
 0x4de   : > { %v4482_v46 = vpop.f32.mrf.mxu2  ;;  %v9593_v61 = vadd.f32 %v4391_v39, %v4379_v4  ;;  %v7524_v4 = vor.u32 %v8324_v20, %v7523_v19  ;;  %v7643_v39 = vld [vmem:[#allocation9 + $0x6b0] sm:$0xf]  ;;  %v7516_v45 = vor.u32 %v8322_v26, %v7515_v25  ;;  %v7683_v25 = vld [vmem:[#allocation9 + $0x840] sm:$0xf]  ;;  %v8364_v26 = vld [vmem:[#allocation9 + $0x864] sm:$0xf0] }
 0x4df   : > { %v4483_v27 = vadd.f32 %v4482_v46, %v4470_v31  ;;  %v8372_v31 = vld [vmem:[#allocation9 + $0x9a4] sm:$0xf0]  ;;  %v8354_v46 = vld [vmem:[#allocation9 + $0x6d4] sm:$0xf0]  ;;  %v7691_v19 = vld [vmem:[#allocation9 + $0x890] sm:$0xf] }
 0x4e0   : > { %v4551_v0 = vmax.f32 %v9593_v61, 0.0  ;;  %5024 = vmatpush.bf16.msra.mxu0 %v7524_v4  ;;  %v7692_v20 = vor.u32 %v8366_v30, %v7691_v19  ;;  %v7555_v4 = vld [vmem:[#allocation9 + $0x340] sm:$0xf]  ;;  %v8371_v19 = vld [vmem:[#allocation9 + $0x984] sm:$0xf] }
 0x4e1   : > { %v7556_v60 = vor.u32 %v8332_v43, %v7555_v4  ;;  %v7717_v30 = vld [vmem:[#allocation9 + $0x9a8] sm:$0xf0]  ;;  %v7517_v4 = vld [vmem:[#allocation9 + $0x1d8] sm:$0xf0] }
 0x4e2   : > { %v4559_v11 = vsel %vm2488_vm2, %v4551_v0, 0.0  ;;  %v7720_v58 = vor.u32 %v8371_v19, %v7717_v30  ;;  %v7520_v43 = vor.u32 %v8321_v21, %v7517_v4  ;;  %v7613_v19 = vld [vmem:[#allocation9 + $0x598] sm:$0xf0]  ;;  %v8361_v30 = vld [vmem:[#allocation9 + $0x7f4] sm:$0xf] }
 0x4e3   : > { %v7677_v21 = vld [vmem:[#allocation9 + $0x818] sm:$0xf0]  ;;  %v8311_v4 = vld [vmem:[#allocation9 + $0x24] sm:$0xf] }
 0x4e4   : > { %5025 = vmatpush.bf16.msra.mxu0 %v7516_v45 }
 0x4e5   : > { %v4393_v47 = vpop.f32.mrf.mxu3  ;;  %v4521_v48 = vpop.f32.mrf.mxu1 }
 0x4e6   : > { %v4484_v50 = vpop.f32.mrf.mxu2  ;;  %v4522_v5 = vadd.f32 %v4521_v48, %v4509_v62  ;;  %v7707_v47 = vld [vmem:[#allocation9 + $0x930] sm:$0xf]  ;;  %v8370_v48 = vld [vmem:[#allocation9 + $0x954] sm:$0xf0]  ;;  %v8368_v62 = vld [vmem:[#allocation9 + $0x904] sm:$0xf0] }
 0x4e7   : > { %v7580_v50 = vor.u32 %v8338_v36, %v7579_v35  ;;  %v7483_v35 = vld [vmem:[#allocation9 + $0x70] sm:$0xf]  ;;  %v8314_v36 = vld [vmem:[#allocation9 + $0x94] sm:$0xf0] }
 0x4e8   : > { %v7484_v45 = vor.u32 %v8314_v36, %v7483_v35  ;;  %v8319_v35 = vld [vmem:[#allocation9 + $0x164] sm:$0xf] }
 0x4e9   : > { %5038 = vmatpush.bf16.msra.mxu1 %v7580_v50 }
 0x4ed   : > { %v4443_v52 = vpop.f32.mrf.mxu3  ;;  %v4523_v53 = vpop.f32.mrf.mxu1 }
 0x4ee   : > { %v9591_v3 = vadd.f32 %v4443_v52, %v4431_v28  ;;  %v7716_v28 = vor.u32 %v8372_v31, %v7715_v59  ;;  %v7644_v52 = vor.u32 %v8354_v46, %v7643_v39  ;;  %v7507_v53 = vld [vmem:[#allocation9 + $0x160] sm:$0xf]  ;;  %v8348_v59 = vld [vmem:[#allocation9 + $0x5e4] sm:$0xf0]  ;;  %v7547_v39 = vld [vmem:[#allocation9 + $0x2f0] sm:$0xf] }
 0x4ef   : > { %v7620_v31 = vor.u32 %v8348_v59, %v7619_v23  ;;  %v8330_v46 = vld [vmem:[#allocation9 + $0x314] sm:$0xf0]  ;;  %v7581_v23 = vld [vmem:[#allocation9 + $0x458] sm:$0xf0]  ;;  %v8353_v59 = vld [vmem:[#allocation9 + $0x6b4] sm:$0xf] }
 0x4f0   : > { %v4552_v63 = vmax.f32 %v9591_v3, 0.0  ;;  %5063 = vmatpush.bf16.msra.mxu3 %v7716_v28  ;;  %5051 = vmatpush.bf16.msra.mxu2 %v7644_v52  ;;  %v7684_v28 = vor.u32 %v8364_v26, %v7683_v25  ;;  %v7548_v50 = vor.u32 %v8330_v46, %v7547_v39  ;;  %v8369_v26 = vld [vmem:[#allocation9 + $0x934] sm:$0xf]  ;;  %v7509_v39 = vld [vmem:[#allocation9 + $0x188] sm:$0xf0] }
 0x4f1   : > { %v7573_v46 = vld [vmem:[#allocation9 + $0x408] sm:$0xf0] }
 0x4f2   : > { %v4560_v7 = vsel %vm2488_vm2, %v4552_v63, 0.0 }
 0x4f3   : > { %v4561_v29 = vadd.f32 %v4560_v7, %v4559_v11 }
 0x4f5   : > { %v4445_v54 = vpop.f32.mrf.mxu3 }
 0x4f6   : > { %v8320_v54 = vld [vmem:[#allocation9 + $0x184] sm:$0xf0] }
 0x4fd   : > { %v4495_v55 = vpop.f32.mrf.mxu3 }
 0x4fe   : > { %v4534_v38 = vpop.f32.mrf.mxu2  ;;  %v9595_v42 = vadd.f32 %v4495_v55, %v4483_v27  ;;  %v7571_v55 = vld [vmem:[#allocation9 + $0x3e0] sm:$0xf] }
 0x4ff   : > { %v4535_v9 = vadd.f32 %v4534_v38, %v4522_v5  ;;  %v7708_v38 = vor.u32 %v8370_v48, %v7707_v47  ;;  %v7699_v27 = vld [vmem:[#allocation9 + $0x8e0] sm:$0xf]  ;;  %v7508_v5 = vor.u32 %v8320_v54, %v7507_v53  ;;  %v7611_v47 = vld [vmem:[#allocation9 + $0x570] sm:$0xf]  ;;  %v8346_v48 = vld [vmem:[#allocation9 + $0x594] sm:$0xf0] }
 0x500   : > { %v4553_v6 = vmax.f32 %v9595_v42, 0.0  ;;  %v7612_v52 = vor.u32 %v8346_v48, %v7611_v47  ;;  %v7675_v53 = vld [vmem:[#allocation9 + $0x7f0] sm:$0xf]  ;;  %v8362_v54 = vld [vmem:[#allocation9 + $0x814] sm:$0xf0] }
 0x501   : > { %5064 = vmatpush.bf16.msra.mxu3 %v7708_v38  ;;  %5026 = vmatpush.bf16.msra.mxu0 %v7508_v5  ;;  %v7475_v38 = vld [vmem:[#allocation9 + $0x20] sm:$0xf]  ;;  %v8344_v5 = vld [vmem:[#allocation9 + $0x544] sm:$0xf0]  ;;  %v8351_v47 = vld [vmem:[#allocation9 + $0x664] sm:$0xf] }
 0x502   : > { %v4562_v24 = vsel %vm2488_vm2, %v4553_v6, 0.0  ;;  %v7637_v48 = vld [vmem:[#allocation9 + $0x688] sm:$0xf0] }
 0x503   : > { %v4563_v57 = vadd.f32 %v4562_v24, %v4561_v29 }
 0x505   : > { %v4497_v56 = vpop.f32.mrf.mxu3  ;;  %5027 = vmatpush.bf16.msra.mxu0 %v7500_v51  ;;  %v7528_v51 = vor.u32 %v8323_v14, %v7525_v15  ;;  %v8363_v14 = vld [vmem:[#allocation9 + $0x844] sm:$0xf] }
 0x506   : > { %v4536_v1 = vpop.f32.mrf.mxu2  ;;  %v8336_v56 = vld [vmem:[#allocation9 + $0x404] sm:$0xf0] }
 0x507   : > { %v7635_v1 = vld [vmem:[#allocation9 + $0x660] sm:$0xf]  ;;  %v7572_v7 = vor.u32 %v8336_v56, %v7571_v55  ;;  %v7676_v55 = vor.u32 %v8362_v54, %v7675_v53  ;;  %v8312_v56 = vld [vmem:[#allocation9 + $0x44] sm:$0xf0]  ;;  %v7701_v54 = vld [vmem:[#allocation9 + $0x908] sm:$0xf0] }
 0x509   : > { %5039 = vmatpush.bf16.msra.mxu1 %v7572_v7  ;;  %5028 = vmatpush.bf16.msra.mxu0 %v7492_v22  ;;  %v8337_v22 = vld [vmem:[#allocation9 + $0x434] sm:$0xf] }
 0x50d   : > { %5040 = vmatpush.bf16.msra.mxu1 %v7564_v40  ;;  %5029 = vmatpush.bf16.msra.mxu0 %v7484_v45  ;;  %v7592_v40 = vor.u32 %v8339_v41, %v7589_v37  ;;  %v8335_v45 = vld [vmem:[#allocation9 + $0x3e4] sm:$0xf]  ;;  %v8313_v41 = vld [vmem:[#allocation9 + $0x74] sm:$0xf] }
 0x50e   : > { %v7576_v53 = vor.u32 %v8335_v45, %v7573_v46 }
 0x511   : > { %5041 = vmatpush.bf16.msra.mxu1 %v7556_v60  ;;  %v7645_v60 = vld [vmem:[#allocation9 + $0x6d8] sm:$0xf0] }
 0x512   : > { %v7648_v25 = vor.u32 %v8353_v59, %v7645_v60  ;;  %v7541_v59 = vld [vmem:[#allocation9 + $0x2c8] sm:$0xf0]  ;;  %v7680_v60 = vor.u32 %v8361_v30, %v7677_v21  ;;  %v8385_v30 = vld [vmem:[#allocation11 + $0x50] sm:$0xff]  ;;  %v8383_v21 = vld [vmem:[#allocation11 + $0x40] sm:$0xff] }
 0x515   : > { %5042 = vmatpush.bf16.msra.mxu1 %v7548_v50  ;;  %v8367_v50 = vld [vmem:[#allocation9 + $0x8e4] sm:$0xf] }
 0x51d   : > { %v4547_v10 = vpop.f32.mrf.mxu3 }
 0x51e   : > { %v9606_v33 = vadd.f32 %v4547_v10, %v4535_v9  ;;  %v7636_v9 = vor.u32 %v8352_v44, %v7635_v1  ;;  %v7700_v10 = vor.u32 %v8368_v62, %v7699_v27  ;;  %v7539_v1 = vld [vmem:[#allocation9 + $0x2a0] sm:$0xf]  ;;  %v7476_v44 = vor.u32 %v8312_v56, %v7475_v38  ;;  %v8328_v27 = vld [vmem:[#allocation9 + $0x2c4] sm:$0xf0]  ;;  %v8317_v56 = vld [vmem:[#allocation9 + $0x114] sm:$0xf] }
 0x51f   : > { %v7603_v62 = vld [vmem:[#allocation9 + $0x520] sm:$0xf]  ;;  %v7540_v7 = vor.u32 %v8328_v27, %v7539_v1  ;;  %v7704_v38 = vor.u32 %v8367_v50, %v7701_v54  ;;  %v7501_v1 = vld [vmem:[#allocation9 + $0x138] sm:$0xf0] }
 0x520   : > { %v4554_v32 = vmax.f32 %v9606_v33, 0.0  ;;  %5052 = vmatpush.bf16.msra.mxu2 %v7636_v9  ;;  %5065 = vmatpush.bf16.msra.mxu3 %v7700_v10  ;;  %v7604_v9 = vor.u32 %v8344_v5, %v7603_v62  ;;  %v7667_v10 = vld [vmem:[#allocation9 + $0x7a0] sm:$0xf]  ;;  %v7504_v27 = vor.u32 %v8317_v56, %v7501_v1  ;;  %v7565_v62 = vld [vmem:[#allocation9 + $0x3b8] sm:$0xf0] }
 0x521   : > { %5030 = vmatpush.bf16.msra.mxu0 %v7476_v44  ;;  %5043 = vmatpush.bf16.msra.mxu1 %v7540_v7  ;;  %v8333_v44 = vld [vmem:[#allocation9 + $0x394] sm:$0xf]  ;;  %v7629_v7 = vld [vmem:[#allocation9 + $0x638] sm:$0xf0] }
 0x522   : > { %v4564_v34 = vsel %vm2488_vm2, %v4554_v32, 0.0  ;;  %v8349_v5 = vld [vmem:[#allocation9 + $0x614] sm:$0xf] }
 0x523   : > { %v4565_v12 = vadd.f32 %v4564_v34, %v4563_v57  ;;  %v4558_v54 = vld [vmem:[#allocation8 + $0x6] ss:$8 sm:$0xf] }
 0x524   : > { %5053 = vmatpush.bf16.msra.mxu2 %v7628_v18  ;;  %5066 = vmatpush.bf16.msra.mxu3 %v7692_v20  ;;  %v7653_v18 = vld [vmem:[#allocation9 + $0x728] sm:$0xf0]  ;;  %v4616_v56 = vperm.slane %v4558_v54, 0 }
 0x525   : > { %v4549_v13 = vpop.f32.mrf.mxu3  ;;  %4566 = vadd.xlane.f32.xlu1 %v4565_v12  ;;  %v7656_v20 = vor.u32 %v8355_v17, %v7653_v18  ;;  %v7485_v17 = vld [vmem:[#allocation9 + $0x98] sm:$0xf0]  ;;  %v8345_v18 = vld [vmem:[#allocation9 + $0x574] sm:$0xf] }
 0x528   : > { %5054 = vmatpush.bf16.msra.mxu2 %v7620_v31  ;;  %5067 = vmatpush.bf16.msra.mxu3 %v7684_v28  ;;  %v7584_v31 = vor.u32 %v8337_v22, %v7581_v23  ;;  %v7709_v28 = vld [vmem:[#allocation9 + $0x958] sm:$0xf0]  ;;  %v7616_v22 = vor.u32 %v8345_v18, %v7613_v19  ;;  %v8327_v23 = vld [vmem:[#allocation9 + $0x2a4] sm:$0xf] }
 0x529   : > { %v7712_v36 = vor.u32 %v8369_v26, %v7709_v28  ;;  %v8359_v26 = vld [vmem:[#allocation9 + $0x7a4] sm:$0xf]  ;;  %v7669_v28 = vld [vmem:[#allocation9 + $0x7c8] sm:$0xf0]  ;;  %v8386_v19 = vld [vmem:[#allocation11 + $0x58] sm:$0xff] }
 0x52a   : > { %v8387_v18 = vld [vmem:[#allocation11 + $0x60] sm:$0xff] }
 0x52c   : > { %5055 = vmatpush.bf16.msra.mxu2 %v7612_v52  ;;  %5068 = vmatpush.bf16.msra.mxu3 %v7676_v55  ;;  %v7512_v52 = vor.u32 %v8319_v35, %v7509_v39  ;;  %v7640_v55 = vor.u32 %v8351_v47, %v7637_v48  ;;  %v7672_v47 = vor.u32 %v8359_v26, %v7669_v28 }
 0x530   : > { %5056 = vmatpush.bf16.msra.mxu2 %v7604_v9 }
 0x598   : > { %v4567_v11 = vpop.xlane.xlu1 %4566 }
 0x599   : > { %v4568_v24 = vmul.f32 %v4567_v11, %v9505_v49  ;;  %v8360_v11 = vld [vmem:[#allocation9 + $0x7c4] sm:$0xf0] }
 0x59b   : > { %v9618_v29 = vsub.f32 %v4551_v0, %v4568_v24  ;;  %v9622_v57 = vsub.f32 %v4552_v63, %v4568_v24  ;;  %v9626_v34 = vsub.f32 %v4553_v6, %v4568_v24  ;;  %v9630_v12 = vsub.f32 %v4554_v32, %v4568_v24  ;;  %v8325_v24 = vld [vmem:[#allocation9 + $0x254] sm:$0xf] }
 0x59d   : > { %v4573_v13 = vmul.f32 %v9618_v29, %v9618_v29  ;;  %v4574_v61 = vmul.f32 %v9622_v57, %v9622_v57  ;;  %v4575_v0 = vmul.f32 %v9626_v34, %v9626_v34  ;;  %v4576_v3 = vmul.f32 %v9630_v12, %v9630_v12 }
 0x59f   : > { %v4577_v42 = vsel %vm2488_vm2, %v4573_v13, 0.0  ;;  %v4578_v63 = vsel %vm2488_vm2, %v4574_v61, 0.0  ;;  %v4580_v33 = vsel %vm2488_vm2, %v4575_v0, 0.0  ;;  %v4582_v2 = vsel %vm2488_vm2, %v4576_v3, 0.0  ;;  %v7533_v61 = vld [vmem:[#allocation9 + $0x278] sm:$0xf0] }
 0x5a0   : > { %v4579_v6 = vadd.f32 %v4578_v63, %v4577_v42  ;;  %v7668_v13 = vor.u32 %v8360_v11, %v7667_v10  ;;  %v8341_v0 = vld [vmem:[#allocation9 + $0x4d4] sm:$0xf]  ;;  %v7597_v3 = vld [vmem:[#allocation9 + $0x4f8] sm:$0xf0]  ;;  %v7536_v42 = vor.u32 %v8325_v24, %v7533_v61  ;;  %v7568_v10 = vor.u32 %v8333_v44, %v7565_v62  ;;  %v8315_v61 = vld [vmem:[#allocation9 + $0xc4] sm:$0xf] }
 0x5a1   : > { %v7600_v63 = vor.u32 %v8341_v0, %v7597_v3  ;;  %v7632_v11 = vor.u32 %v8349_v5, %v7629_v7  ;;  %v8365_v24 = vld [vmem:[#allocation9 + $0x894] sm:$0xf]  ;;  %v4617_v5 = vperm.slane %v4558_v54, 1  ;;  %v4618_v7 = vperm.slane %v4558_v54, 2 }
 0x5a2   : > { %v4581_v32 = vadd.f32 %v4580_v33, %v4579_v6  ;;  %v8357_v6 = vld [vmem:[#allocation9 + $0x754] sm:$0xf]  ;;  %v7661_v33 = vld [vmem:[#allocation9 + $0x778] sm:$0xf0]  ;;  %5069 = vmatpush.bf16.msra.mxu3 %v7668_v13  ;;  %5075 = vmatpush.bf16.msrb.mxu0 %v7536_v42  ;;  %v7493_v42 = vld [vmem:[#allocation9 + $0xe8] sm:$0xf0] }
 0x5a3   : > { %5088 = vmatpush.bf16.msrb.mxu1 %v7600_v63  ;;  %v7693_v13 = vld [vmem:[#allocation9 + $0x8b8] sm:$0xf0]  ;;  %v8331_v63 = vld [vmem:[#allocation9 + $0x344] sm:$0xf] }
 0x5a4   : > { %v4583_v8 = vadd.f32 %v4582_v2, %v4581_v32  ;;  %v8373_v32 = vld [vmem:[#allocation9 + $0x9d4] sm:$0xf]  ;;  %v7664_v2 = vor.u32 %v8357_v6, %v7661_v33  ;;  %v7696_v3 = vor.u32 %v8365_v24, %v7693_v13  ;;  %v7557_v6 = vld [vmem:[#allocation9 + $0x368] sm:$0xf0]  ;;  %v7496_v33 = vor.u32 %v8315_v61, %v7493_v42 }
 0x5a6   : > { %4584 = vadd.xlane.f32.xlu1 %v4583_v8  ;;  %v7725_v8 = vld [vmem:[#allocation9 + $0x9f8] sm:$0xf0]  ;;  %5101 = vmatpush.bf16.msrb.mxu2 %v7664_v2  ;;  %v8347_v2 = vld [vmem:[#allocation9 + $0x5c4] sm:$0xf] }
 0x5a7   : > { %v7728_v16 = vor.u32 %v8373_v32, %v7725_v8  ;;  %5076 = vmatpush.bf16.msrb.mxu0 %v7528_v51  ;;  %5089 = vmatpush.bf16.msrb.mxu1 %v7592_v40  ;;  %v7560_v32 = vor.u32 %v8331_v63, %v7557_v6  ;;  %v7621_v8 = vld [vmem:[#allocation9 + $0x5e8] sm:$0xf0]  ;;  %v7549_v40 = vld [vmem:[#allocation9 + $0x318] sm:$0xf0] }
 0x5a8   : > { %v7685_v51 = vld [vmem:[#allocation9 + $0x868] sm:$0xf0] }
 0x5a9   : > { %5114 = vmatpush.bf16.msrb.mxu3 %v7728_v16  ;;  %v7624_v16 = vor.u32 %v8347_v2, %v7621_v8  ;;  %v7688_v37 = vor.u32 %v8363_v14, %v7685_v51  ;;  %v8390_v51 = vld [vmem:[#allocation11 + $0x78] sm:$0xff] }
 0x5aa   : > { %5102 = vmatpush.bf16.msrb.mxu2 %v7656_v20  ;;  %v7488_v20 = vor.u32 %v8313_v41, %v7485_v17  ;;  %v8377_v41 = vld [vmem:[#allocation11 + $0x10] sm:$0xff]  ;;  %v8376_v17 = vld [vmem:[#allocation11 + $0x8] sm:$0xff] }
 0x5ab   : > { %5077 = vmatpush.bf16.msrb.mxu0 %v7520_v43  ;;  %5090 = vmatpush.bf16.msrb.mxu1 %v7584_v31  ;;  %v7477_v43 = vld [vmem:[#allocation9 + $0x48] sm:$0xf0]  ;;  %v8343_v31 = vld [vmem:[#allocation9 + $0x524] sm:$0xf] }
 0x5ac   : > { %v7480_v35 = vor.u32 %v8311_v4, %v7477_v43 }
 0x5ad   : > { %5115 = vmatpush.bf16.msrb.mxu3 %v7720_v58 }
 0x5ae   : > { %5103 = vmatpush.bf16.msrb.mxu2 %v7648_v25  ;;  %v7605_v25 = vld [vmem:[#allocation9 + $0x548] sm:$0xf0] }
 0x5af   : > { %5078 = vmatpush.bf16.msrb.mxu0 %v7512_v52  ;;  %5091 = vmatpush.bf16.msrb.mxu1 %v7576_v53  ;;  %v7608_v45 = vor.u32 %v8343_v31, %v7605_v25  ;;  %v4556_v52 = vld [vmem:[#allocation8 + $0x5] ss:$8 sm:$0xf] }
 0x5b0   : > { %v4604_v1 = vperm.slane %v4556_v52, 1  ;;  %v4605_v44 = vperm.slane %v4556_v52, 2 }
 0x5b1   : > { %5116 = vmatpush.bf16.msrb.mxu3 %v7712_v36  ;;  %v7544_v36 = vor.u32 %v8327_v23, %v7541_v59 }
 0x5b2   : > { %5104 = vmatpush.bf16.msrb.mxu2 %v7640_v55 }
 0x5b3   : > { %5079 = vmatpush.bf16.msrb.mxu0 %v7504_v27  ;;  %5092 = vmatpush.bf16.msrb.mxu1 %v7568_v10  ;;  %v4606_v27 = vperm.slane %v4556_v52, 3 }
 0x5b5   : > { %5117 = vmatpush.bf16.msrb.mxu3 %v7704_v38  ;;  %v4603_v38 = vperm.slane %v4556_v52, 0 }
 0x5b6   : > { %5105 = vmatpush.bf16.msrb.mxu2 %v7632_v11 }
 0x5b7   : > { %5080 = vmatpush.bf16.msrb.mxu0 %v7496_v33  ;;  %5093 = vmatpush.bf16.msrb.mxu1 %v7560_v32 }
 0x5b9   : > { %5118 = vmatpush.bf16.msrb.mxu3 %v7696_v3 }
 0x5ba   : > { %5106 = vmatpush.bf16.msrb.mxu2 %v7624_v16  ;;  %v8382_v16 = vld [vmem:[#allocation11 + $0x38] sm:$0xff] }
 0x5bb   : > { %5081 = vmatpush.bf16.msrb.mxu0 %v7488_v20  ;;  %v8384_v20 = vld [vmem:[#allocation11 + $0x48] sm:$0xff] }
 0x5bd   : > { %5119 = vmatpush.bf16.msrb.mxu3 %v7688_v37  ;;  %v8389_v37 = vld [vmem:[#allocation11 + $0x70] sm:$0xff] }
 0x5be   : > { %5107 = vmatpush.bf16.msrb.mxu2 %v7616_v22 }
 0x5bf   : > { %5082 = vmatpush.bf16.msrb.mxu0 %v7480_v35 }
 0x5c1   : > { %5120 = vmatpush.bf16.msrb.mxu3 %v7680_v60 }
 0x5c2   : > { %5108 = vmatpush.bf16.msrb.mxu2 %v7608_v45 }
 0x5c5   : > { %5121 = vmatpush.bf16.msrb.mxu3 %v7672_v47 }
 0x619   : > { %v4585_v9 = vpop.xlane.xlu1 %4584 }
 0x61a   : > { %v4586_v0 = vmul.f32 %v4585_v9, %v9505_v49  ;;  %v8329_v49 = vld [vmem:[#allocation9 + $0x2f4] sm:$0xf]  ;;  %v4619_v9 = vperm.slane %v4558_v54, 3 }
 0x61b   : > { %v7552_v58 = vor.u32 %v8329_v49, %v7549_v40  ;;  %v8388_v49 = vld [vmem:[#allocation11 + $0x68] sm:$0xff]  ;;  %v8375_v40 = vld [vmem:[#allocation11] sm:$0xff] }
 0x61c   : > { %v4587_v15 = vadd.f32 1e-05, %v4586_v0 }
 0x61d   : > { %5094 = vmatpush.bf16.msrb.mxu1 %v7552_v58  ;;  %v4693_v58 = vld [vmem:[#allocation8 + $0x7] ss:$8 sm:$0x3] }
 0x61e   : > { %8492 = vrsqrt.f32 %v4587_v15  ;;  %vm4594_vm8 = vweird.f32 %v4587_v15  ;;  %v4699_v4 = vperm.slane %v4693_v58, 0  ;;  %v4700_v45 = vperm.slane %v4693_v58, 1 }
 0x621   : > { %5095 = vmatpush.bf16.msrb.mxu1 %v7544_v36 }
 0x624   : > { %v8493_v39 = vpop.eup %8492 }
 0x625   : > { %v4589_v46 = vmul.f32 %v8493_v39, %v4587_v15  ;;  %vm4595_vm7 = vweird.f32 %v8493_v39 }
 0x626   : > { %vm4596_vm9 = vmor %vm4594_vm8, %vm4595_vm7 }
 0x627   : > { %v4590_v48 = vmul.f32 %v8493_v39, %v4589_v46 }
 0x629   : > { %v4591_v50 = vmul.f32 0.5, %v4590_v48 }
 0x62b   : > { %v4592_v53 = vsub.f32 1.5, %v4591_v50 }
 0x62d   : > { %v4593_v55 = vmul.f32 %v8493_v39, %v4592_v53 }
 0x62f   : > { %v4597_v62 = vsel %vm4596_vm9, %v8493_v39, %v4593_v55 }
 0x630   : > { %v4598_v10 = vmul.f32 %v4597_v62, %v9618_v29  ;;  %v4599_v11 = vmul.f32 %v4597_v62, %v9622_v57  ;;  %v4600_v24 = vmul.f32 %v4597_v62, %v9626_v34  ;;  %v4601_v13 = vmul.f32 %v4597_v62, %v9630_v12  ;;  %v8381_v29 = vld [vmem:[#allocation11 + $0x30] sm:$0xff]  ;;  %v8380_v57 = vld [vmem:[#allocation11 + $0x28] sm:$0xff]  ;;  %v8379_v34 = vld [vmem:[#allocation11 + $0x20] sm:$0xff] }
 0x631   : > { %v8378_v12 = vld [vmem:[#allocation11 + $0x18] sm:$0xff] }
 0x632   : > { %v4611_v61 = vmul.f32 %v4603_v38, %v4598_v10  ;;  %v4612_v0 = vmul.f32 %v4604_v1, %v4599_v11  ;;  %v4613_v3 = vmul.f32 %v4605_v44, %v4600_v24  ;;  %v4614_v42 = vmul.f32 %v4606_v27, %v4601_v13  ;;  %v5161_v11 = vld [vmem:[#allocation8 + $0x20] ss:$0 sm:$0xff] }
 0x634   : > { %v4624_v63 = vadd.f32 %v4616_v56, %v4611_v61  ;;  %v4625_v6 = vadd.f32 %v4617_v5, %v4612_v0  ;;  %v4626_v33 = vadd.f32 %v4618_v7, %v4613_v3  ;;  %v4627_v32 = vadd.f32 %v4619_v9, %v4614_v42 }
 0x636   : > { %v4694_v2 = vpack.c.bf16 %v4624_v63, %v4624_v63  ;;  %v4695_v8 = vpack.c.bf16 %v4625_v6, %v4625_v6  ;;  %v4696_v14 = vpack.c.bf16 %v4626_v33, %v4626_v33  ;;  %v4697_v15 = vpack.c.bf16 %v4627_v32, %v4627_v32 }
 0x638   : > { %5031 = vmatmul.bf16.vlgmr.msra.gmra.mxu0 %v4694_v2  ;;  %5044 = vmatmul.bf16.vlgmr.msra.gmra.mxu1 %v4695_v8 }
 0x639   : > { %5057 = vmatmul.bf16.vlgmr.msra.gmra.mxu2 %v4696_v14  ;;  %5070 = vmatmul.bf16.vlgmr.msra.gmra.mxu3 %v4697_v15 }
 0x63a   : > { %5260 = vmatpush.bf16.msra.mxu0 %v8382_v16  ;;  %5273 = vmatpush.bf16.msra.mxu1 %v8390_v51 }
 0x63e   : > { %5261 = vmatpush.bf16.msra.mxu0 %v8381_v29  ;;  %5274 = vmatpush.bf16.msra.mxu1 %v8389_v37 }
 0x642   : > { %5262 = vmatpush.bf16.msra.mxu0 %v8380_v57  ;;  %5275 = vmatpush.bf16.msra.mxu1 %v8388_v49 }
 0x646   : > { %5263 = vmatpush.bf16.msra.mxu0 %v8379_v34  ;;  %5276 = vmatpush.bf16.msra.mxu1 %v8387_v18 }
 0x648   : > { %5083 = vmatmul.bf16.vlgmr.msrb.gmra.mxu0 %v4694_v2  ;;  %5096 = vmatmul.bf16.vlgmr.msrb.gmra.mxu1 %v4695_v8 }
 0x649   : > { %5109 = vmatmul.bf16.vlgmr.msrb.gmra.mxu2 %v4696_v14  ;;  %5122 = vmatmul.bf16.vlgmr.msrb.gmra.mxu3 %v4697_v15 }
 0x64a   : > { %5264 = vmatpush.bf16.msra.mxu0 %v8378_v12  ;;  %5277 = vmatpush.bf16.msra.mxu1 %v8386_v19 }
 0x64e   : > { %5265 = vmatpush.bf16.msra.mxu0 %v8377_v41  ;;  %5278 = vmatpush.bf16.msra.mxu1 %v8385_v30 }
 0x652   : > { %5266 = vmatpush.bf16.msra.mxu0 %v8376_v17  ;;  %5279 = vmatpush.bf16.msra.mxu1 %v8384_v20 }
 0x656   : > { %5267 = vmatpush.bf16.msra.mxu0 %v8375_v40  ;;  %5280 = vmatpush.bf16.msra.mxu1 %v8383_v21 }
 0x6b5   : > { %v5032_v22 = vpop.f32.mrf.mxu0  ;;  %v5045_v43 = vpop.f32.mrf.mxu1 }
 0x6b6   : > { %v5033_v23 = vadd.f32 %v5032_v22, %v4699_v4 }
 0x6b8   : > { %v5046_v59 = vadd.f32 %v5045_v43, %v5033_v23 }
 0x6bc   : > { %v5058_v60 = vpop.f32.mrf.mxu2  ;;  %v5071_v31 = vpop.f32.mrf.mxu3 }
 0x6bd   : > { %v5059_v25 = vadd.f32 %v5058_v60, %v5046_v59  ;;  %v5034_v26 = vpop.f32.mrf.mxu0  ;;  %v5047_v28 = vpop.f32.mrf.mxu1 }
 0x6bf   : > { %v5072_v35 = vadd.f32 %v5071_v31, %v5059_v25 }
 0x6c1   : > { %v5127_v36 = vmax.f32 %v5072_v35, 0.0 }
 0x6c3   : > { %v5162_v39 = vpack.c.bf16 %v5127_v36, %v5127_v36 }
 0x6c4   : > { %v5060_v46 = vpop.f32.mrf.mxu2  ;;  %v5073_v47 = vpop.f32.mrf.mxu3 }
 0x6c5   : > { %5268 = vmatmul.bf16.vlgmr.msra.gmra.mxu0 %v5162_v39  ;;  %v5084_v48 = vpop.f32.mrf.mxu0  ;;  %v5097_v50 = vpop.f32.mrf.mxu1 }
 0x6c6   : > { %v5085_v52 = vadd.f32 %v5084_v48, %v4700_v45 }
 0x6c8   : > { %v5098_v53 = vadd.f32 %v5097_v50, %v5085_v52 }
 0x6cc   : > { %v5110_v54 = vpop.f32.mrf.mxu2  ;;  %v5123_v55 = vpop.f32.mrf.mxu3 }
 0x6cd   : > { %v5111_v38 = vadd.f32 %v5110_v54, %v5098_v53  ;;  %v5086_v56 = vpop.f32.mrf.mxu0  ;;  %v5099_v1 = vpop.f32.mrf.mxu1 }
 0x6cf   : > { %v5124_v44 = vadd.f32 %v5123_v55, %v5111_v38 }
 0x6d1   : > { %v5128_v27 = vmax.f32 %v5124_v44, 0.0 }
 0x6d3   : > { %v5163_v62 = vpack.c.bf16 %v5128_v27, %v5128_v27 }
 0x6d4   : > { %v5112_v5 = vpop.f32.mrf.mxu2  ;;  %v5125_v7 = vpop.f32.mrf.mxu3 }
 0x6d5   : > { %5281 = vmatmul.bf16.vlgmr.msra.gmra.mxu1 %v5163_v62 }
 0x742   : > { %v5269_v9 = vpop.f32.mrf.mxu0 }
 0x743   : > { %v5270_v24 = vadd.f32 %v5269_v9, %v5161_v11 }
 0x74a   : > { %v5271_v10 = vpop.f32.mrf.mxu0 }
 0x752   : > { %v5282_v13 = vpop.f32.mrf.mxu1 }
 0x753   : > { %v5283_v61 = vadd.f32 %v5282_v13, %v5270_v24 }
 0x755   : > { %5286 = vst [vmem:[#allocation12] sm:$0x3] %v5283_v61 }
 0x75a   : > { %v5284_v0 = vpop.f32.mrf.mxu1 }
 0x75b PF: > { %p8439_p4 = scmp.eq.s32.totalorder %s8789_s25, 2  ;;  %s8734_s9 = smov [#allocation12]  }
 0x75c   : > { %s5293_s10 = sshll.u32 %s8734_s9, 4  ;;  %s5295_s13 = sshll.u32 %s9672_s6, 4  ;;  %s5294_s10 = int_to_ptr.vmem [resolvable:$true] %s5293_s10  ;;  %s5296_s13 = int_to_ptr.hbm [resolvable:$true] %s5295_s13 }
 0x75d   : > { %8410 = dma.vmem_to_hbm [thread:$0]  (%p8439_p4), %s5294_s10, 32, %s5296_s13, [#allocation5]  }
 0x75e   : > { %8701 = dma.done.wait (%p8439_p4), [#allocation5], 32  }
 0x75f   : > { %8703 = vsyncadd (%p8439_p4), [#allocation5], 4294967264 }
 0x760 PF: > { %p19_p5 = scmp.ge.s32.totalorder %s8835_s14, 5   ;;  %s9677_s21 = smov %s8710_s22 }
 0x761   : > { %s9678_s22 = smov %s8714_s23  ;;  %s9679_s23 = smov %s8844_s17 }
 0x762   : > { %s9680_s24 = smov %s8835_s14  ;;  %21 = sbr.rel (!%p19_p5) target bundleno = 6 (0x6), region = 119 }
 0x767   :  { %5309 = vsyncpa [#allocation4], 1 }
 0x768   :  { %5311 = vsyncpa [#allocation4 + $0x1], 1 }
 0x769   :  { %5312 = vsyncpa [#allocation7], 1 }
 0x76a   :  { %5313 = vsyncpa [#allocation10], 1 }
 0x76b   :  { %5314 = vsyncpa [#allocation5], 1 }
 0x76c   :  { %5316 = vsyncpa [#allocation5 + $0x1], 1 }

</bundles_post_ra>
